<compile_context>
chip_gen: v7x
topology: tpu7x:2x2x1
jax: 0.10.0
libtpu: 0.0.40
codegen_flags: <defaults>
</compile_context>

<pallas_src>
import math
from functools import partial

import jax
import jax.numpy as jnp
from jax.experimental import pallas as pl
from jax.experimental.pallas import tpu as pltpu


# ----------------------------- kernel helpers ------------------------------

def _layer_norm(x, gamma, beta, eps=1e-5):
    """f32 layer norm over the last axis (gamma/beta are (1, D))."""
    mu = jnp.mean(x, axis=-1, keepdims=True)
    xc = x - mu
    var = jnp.mean(xc * xc, axis=-1, keepdims=True)
    return xc * jax.lax.rsqrt(var + eps) * gamma + beta


def _attention(q2, k2, v2, batch, w_o_heads, b_o, nhead):
    """Multi-head attention core.

    q2: (B*Tq, D) f32 projected queries (head-interleaved columns)
    k2, v2: (B*S, D) f32 projected keys / values
    w_o_heads: (H, hd, D) bf16 output projection pre-split per head
    b_o: (1, D) f32 output bias
    Head outputs are accumulated through their Wo row-block, so no concat.
    """
    N, D = q2.shape
    M = k2.shape[0]
    Tq = N // batch
    S = M // batch
    hd = D // nhead
    scale = 1.0 / math.sqrt(hd)

    out = None
    for h in range(nhead):                      # static unroll, nhead is small
        sl = slice(h * hd, (h + 1) * hd)
        # leading-dim reshapes (B*T, hd) -> (B, T, hd) are layout-free
        qh = (q2[:, sl] * scale).reshape(batch, Tq, hd)
        kh = k2[:, sl].reshape(batch, S, hd)
        vh = v2[:, sl].reshape(batch, S, hd)

        s = jnp.einsum('btd,bsd->bts', qh, kh,
                       preferred_element_type=jnp.float32)       # (B, Tq, S)
        s = s - jnp.max(s, axis=-1, keepdims=True)
        p = jnp.exp(s)
        p = p * pl.reciprocal(jnp.sum(p, axis=-1, keepdims=True), approx=True)
        oh = jnp.einsum('bts,bsd->btd', p, vh,
                        preferred_element_type=jnp.float32)      # (B, Tq, hd)

        contrib = jnp.dot(oh.reshape(N, hd).astype(jnp.bfloat16), w_o_heads[h],
                          preferred_element_type=jnp.float32)    # (N, D)
        out = contrib if out is None else out + contrib
    return out + b_o


# ------------------------------ Pallas kernel -------------------------------

def _decoder_layer_kernel(
    tgt_ref, mem_ref,
    w_qkv_s_ref,          # (D, 3D) bf16  fused self-attn QKV
    w_q_c_ref,             # (D, D)  bf16  cross-attn Q
    w_kv_c_ref,            # (D, 2D) bf16  fused cross-attn KV
    w_o_ref,               # (2, H, hd, D) bf16 output projections (self, cross)
    w1_ref, w2_ref,        # (D, F), (F, D) bf16 FFN
    b1_ref,                # (1, F) f32
    vec_ref,               # (15, D) f32 stacked biases + LN params
    out_ref,
    *, nhead,
):
    f32 = jnp.float32
    bf16 = jnp.bfloat16

    B, T, D = tgt_ref.shape
    S = mem_ref.shape[1]
    N = B * T
    M = B * S

    # flattened (B*T, D) / (B*S, D) activation slabs (leading-dim reshape only)
    x2 = tgt_ref[...].reshape(N, D)
    m2 = mem_ref[...].reshape(M, D)

    vd = vec_ref[...]                       # (15, D) f32
    (BQ_S, BK_S, BV_S, BO_S, BQ_C, BK_C, BV_C, BO_C, B2,
     LN1G, LN1B, LN2G, LN2B, LN3G, LN3B) = range(15)
    row = lambda i: vd[i:i + 1, :]          # (1, D)

    # --- self-attention block + LN1 (post-norm) ---
    qkv = jnp.dot(x2.astype(bf16), w_qkv_s_ref[...],
                  preferred_element_type=f32)               # (N, 3D) one fused push
    q2 = qkv[:, 0 * D:1 * D] + row(BQ_S)
    k2 = qkv[:, 1 * D:2 * D] + row(BK_S)
    v2 = qkv[:, 2 * D:3 * D] + row(BV_S)
    sa = _attention(q2, k2, v2, B, w_o_ref[0], row(BO_S), nhead)
    x2 = _layer_norm(x2 + sa, row(LN1G), row(LN1B))

    # --- cross-attention block + LN2 ---
    kv = jnp.dot(m2.astype(bf16), w_kv_c_ref[...],
                 preferred_element_type=f32)                # (M, 2D) fused KV push
    k2 = kv[:, 0 * D:1 * D] + row(BK_C)
    v2 = kv[:, 1 * D:2 * D] + row(BV_C)
    q2 = jnp.dot(x2.astype(bf16), w_q_c_ref[...],
                 preferred_element_type=f32) + row(BQ_C)
    ca = _attention(q2, k2, v2, B, w_o_ref[1], row(BO_C), nhead)
    x2 = _layer_norm(x2 + ca, row(LN2G), row(LN2B))

    # --- feed-forward block + LN3 (bf16 operands, f32 accumulate) ---
    h = jnp.dot(x2.astype(bf16), w1_ref[...],
                preferred_element_type=f32) + b1_ref[...]
    h = jnp.maximum(h, 0.0)
    ff = jnp.dot(h.astype(bf16), w2_ref[...],
                 preferred_element_type=f32) + row(B2)
    x2 = _layer_norm(x2 + ff, row(LN3G), row(LN3B))

    out_ref[...] = x2.reshape(B, T, D).astype(out_ref.dtype)


# ------------------------------- wrapper ------------------------------------

def decoder_forward(tgt, memory, params, nhead):
    """tgt: (B, T, D), memory: (B, S, D). Returns (B, T, D)."""
    B, T, D = tgt.shape
    assert D % nhead == 0
    hd = D // nhead
    bf16 = jnp.bfloat16
    f32 = jnp.float32

    # ---- wrapper-side weight packing (free layout plumbing, done once) ----
    w_qkv_s = jnp.concatenate(
        [params["wq_s"], params["wk_s"], params["wv_s"]], axis=1).astype(bf16)   # (D, 3D)
    w_q_c = params["wq_c"].astype(bf16)                                          # (D, D)
    w_kv_c = jnp.concatenate(
        [params["wk_c"], params["wv_c"]], axis=1).astype(bf16)                   # (D, 2D)
    w_o = jnp.stack([params["wo_s"].reshape(nhead, hd, D),
                     params["wo_c"].reshape(nhead, hd, D)], axis=0).astype(bf16)  # (2,H,hd,D)
    w1 = params["w1"].astype(bf16)                                               # (D, F)
    w2 = params["w2"].astype(bf16)                                               # (F, D)
    b1 = params["b1"].astype(f32)                                                # (1, F)
    vec_d = jnp.concatenate([
        params["bq_s"], params["bk_s"], params["bv_s"], params["bo_s"],
        params["bq_c"], params["bk_c"], params["bv_c"], params["bo_c"],
        params["b2"],
        params["ln1_g"], params["ln1_b"], params["ln2_g"], params["ln2_b"],
        params["ln3_g"], params["ln3_b"],
    ], axis=0).astype(f32)                                                       # (15, D)

    inputs = (tgt.astype(f32), memory.astype(f32),
              w_qkv_s, w_q_c, w_kv_c, w_o, w1, w2, b1, vec_d)

    vmem_spec = pl.BlockSpec(memory_space=pltpu.MemorySpace.VMEM)
    kernel = partial(_decoder_layer_kernel, nhead=nhead)

    # Single invocation, no grid: everything lives in VMEM, weights are
    # single-buffered by construction (total working set << 1 MiB).
    return pl.pallas_call(
        kernel,
        out_shape=jax.ShapeDtypeStruct((B, T, D), f32),
        in_specs=[vmem_spec] * len(inputs),
        out_specs=vmem_spec,
        compiler_params=pltpu.CompilerParams(vmem_limit_bytes=32 * 1024 * 1024),
    )(*inputs)


# --------------------------- pure-JAX reference ------------------------------

def _mha_ref(q_in, kv_in, wq, wk, wv, bq, bk, bv, wo, bo, nhead):
    B, T, D = q_in.shape
    hd = D // nhead
    q = q_in @ wq + bq
    k = kv_in @ wk + bk
    v = kv_in @ wv + bv
    q = q.reshape(B, T, nhead, hd).transpose(0, 2, 1, 3)
    k = k.reshape(B, -1, nhead, hd).transpose(0, 2, 1, 3)
    v = v.reshape(B, -1, nhead, hd).transpose(0, 2, 1, 3)
    s = (q @ jnp.swapaxes(k, -1, -2)) / math.sqrt(hd)
    p = jax.nn.softmax(s, axis=-1)
    o = (p @ v).transpose(0, 2, 1, 3).reshape(B, T, D)
    return o @ wo + bo


def _ln_ref(x, g, b, eps=1e-5):
    mu = jnp.mean(x, axis=-1, keepdims=True)
    var = jnp.mean((x - mu) ** 2, axis=-1, keepdims=True)
    return (x - mu) / jnp.sqrt(var + eps) * g + b


def decoder_reference(tgt, memory, p, nhead):
    x = tgt
    sa = _mha_ref(x, x, p["wq_s"], p["wk_s"], p["wv_s"],
                  p["bq_s"], p["bk_s"], p["bv_s"], p["wo_s"], p["bo_s"], nhead)
    x = _ln_ref(x + sa, p["ln1_g"], p["ln1_b"])
    ca = _mha_ref(x, memory, p["wq_c"], p["wk_c"], p["wv_c"],
                  p["bq_c"], p["bk_c"], p["bv_c"], p["wo_c"], p["bo_c"], nhead)
    x = _ln_ref(x + ca, p["ln2_g"], p["ln2_b"])
    h = jax.nn.relu(x @ p["w1"] + p["b1"])
    ff = h @ p["w2"] + p["b2"]
    x = _ln_ref(x + ff, p["ln3_g"], p["ln3_b"])
    return x


# ------------------------------ param setup ---------------------------------

def make_params(key, D, dim_ff):
    """Deterministic synthetic weights. All matrices stored as (in, out), i.e.
    already transposed relative to PyTorch's (out, in) convention."""
    ks = jax.random.split(key, 16)

    def nrm(k, shape, scale=0.05):
        return scale * jax.random.normal(k, shape, jnp.float32)

    params = {
        # self attention (q/k/v/out projections)
        "wq_s": nrm(ks[0], (D, D)), "wk_s": nrm(ks[1], (D, D)), "wv_s": nrm(ks[2], (D, D)),
        "bq_s": nrm(ks[3], (1, D)), "bk_s": nrm(ks[4], (1, D)), "bv_s": nrm(ks[5], (1, D)),
        "wo_s": nrm(ks[6], (D, D)), "bo_s": nrm(ks[7], (1, D)),
        "ln1_g": jnp.ones((1, D), jnp.float32), "ln1_b": jnp.zeros((1, D), jnp.float32),
        # cross attention
        "wq_c": nrm(ks[8], (D, D)), "wk_c": nrm(ks[9], (D, D)), "wv_c": nrm(ks[10], (D, D)),
        "bq_c": nrm(ks[11], (1, D)), "bk_c": nrm(ks[12], (1, D)), "bv_c": nrm(ks[13], (1, D)),
        "wo_c": nrm(ks[14], (D, D)), "bo_c": nrm(ks[15], (1, D)),
        "ln2_g": jnp.ones((1, D), jnp.float32), "ln2_b": jnp.zeros((1, D), jnp.float32),
        # feed-forward (dim_feedforward defaults to 2048 in nn.TransformerDecoderLayer)
        "w1": nrm(jax.random.fold_in(key, 100), (D, dim_ff)),
        "b1": nrm(jax.random.fold_in(key, 101), (1, dim_ff)),
        "w2": nrm(jax.random.fold_in(key, 102), (dim_ff, D)),
        "b2": nrm(jax.random.fold_in(key, 103), (1, D)),
        "ln3_g": jnp.ones((1, D), jnp.float32), "ln3_b": jnp.zeros((1, D), jnp.float32),
    }
    return params


# --------------------------------- main --------------------------------------

if __name__ == "__main__":
    # small shapes consistent with the module's forward:
    #   rsu_intersections (tgt):  (B, T, D)
    #   encoder_state (memory):   (B, S, D)
    B, T, S = 2, 8, 8
    D, NHEAD = 32, 4
    DIM_FF = 2048            # PyTorch default dim_feedforward
    # TODO(synk): dropout (p=0.1) in the PyTorch layer is omitted (eval-mode semantics).

    key = jax.random.PRNGKey(0)
    k_tgt, k_mem, k_par = jax.random.split(key, 3)
    rsu_intersections = jax.random.normal(k_tgt, (B, T, D), jnp.float32)
    encoder_state = jax.random.normal(k_mem, (B, S, D), jnp.float32)
    params = make_params(k_par, D, DIM_FF)

    out = decoder_forward(rsu_intersections, encoder_state, params, NHEAD)
    out = jax.block_until_ready(out)

    ref = decoder_reference(rsu_intersections, encoder_state, params, NHEAD)
    ref = jax.block_until_ready(ref)

    assert out.shape == (B, T, D)
    assert bool(jnp.all(jnp.isfinite(out)))
    max_err = float(jnp.max(jnp.abs(out - ref)))
    assert max_err < 5e-2, f"mismatch vs reference: {max_err}"

    print("KERNEL_OK")
</pallas_src>

<mosaic_0001>
module attributes {stable_mosaic.version = 11 : i64} {
  func.func @_decoder_layer_kernel(%arg0: memref<2x8x32xf32, #tpu.memory_space<vmem>>, %arg1: memref<2x8x32xf32, #tpu.memory_space<vmem>>, %arg2: memref<32x96xbf16, #tpu.memory_space<vmem>>, %arg3: memref<32x32xbf16, #tpu.memory_space<vmem>>, %arg4: memref<32x64xbf16, #tpu.memory_space<vmem>>, %arg5: memref<2x4x8x32xbf16, #tpu.memory_space<vmem>>, %arg6: memref<32x2048xbf16, #tpu.memory_space<vmem>>, %arg7: memref<2048x32xbf16, #tpu.memory_space<vmem>>, %arg8: memref<1x2048xf32, #tpu.memory_space<vmem>>, %arg9: memref<15x32xf32, #tpu.memory_space<vmem>>, %arg10: memref<2x8x32xf32, #tpu.memory_space<vmem>>) attributes {dimension_semantics = [], scalar_prefetch = 0 : i64, scratch_operands = 0 : i64, tpu.core_type = #tpu.core_type<tc>} {
    %c0 = arith.constant 0 : index
    %c0_0 = arith.constant 0 : index
    %c0_1 = arith.constant 0 : index
    %0 = vector.load %arg0[%c0, %c0_0, %c0_1] : memref<2x8x32xf32, #tpu.memory_space<vmem>>, vector<2x8x32xf32>
    %1 = vector.shape_cast %0 : vector<2x8x32xf32> to vector<16x32xf32>
    %c0_2 = arith.constant 0 : index
    %c0_3 = arith.constant 0 : index
    %c0_4 = arith.constant 0 : index
    %2 = vector.load %arg1[%c0_2, %c0_3, %c0_4] : memref<2x8x32xf32, #tpu.memory_space<vmem>>, vector<2x8x32xf32>
    %3 = vector.shape_cast %2 : vector<2x8x32xf32> to vector<16x32xf32>
    %c0_5 = arith.constant 0 : index
    %c0_6 = arith.constant 0 : index
    %4 = vector.load %arg9[%c0_5, %c0_6] : memref<15x32xf32, #tpu.memory_space<vmem>>, vector<15x32xf32>
    %5 = arith.truncf %1 : vector<16x32xf32> to vector<16x32xbf16>
    %c0_7 = arith.constant 0 : index
    %c0_8 = arith.constant 0 : index
    %6 = vector.load %arg2[%c0_7, %c0_8] : memref<32x96xbf16, #tpu.memory_space<vmem>>, vector<32x96xbf16>
    %cst = arith.constant dense<0.000000e+00> : vector<16x96xf32>
    %7 = tpu.matmul %5, %6, %cst {dimension_numbers = #tpu.dot_dimension_numbers<[1], [0], [0], [1], [0, 0, 1, 1], [], []>} : vector<16x32xbf16>, vector<32x96xbf16>, vector<16x96xf32> -> vector<16x96xf32>
    %8 = vector.extract_strided_slice %7 {offsets = [0, 0], sizes = [16, 32], strides = [1, 1]} : vector<16x96xf32> to vector<16x32xf32>
    %9 = vector.extract_strided_slice %4 {offsets = [0, 0], sizes = [1, 32], strides = [1, 1]} : vector<15x32xf32> to vector<1x32xf32>
    %10 = vector.broadcast %9 : vector<1x32xf32> to vector<16x32xf32>
    %11 = arith.addf %8, %10 : vector<16x32xf32>
    %12 = vector.extract_strided_slice %7 {offsets = [0, 32], sizes = [16, 32], strides = [1, 1]} : vector<16x96xf32> to vector<16x32xf32>
    %13 = vector.extract_strided_slice %4 {offsets = [1, 0], sizes = [1, 32], strides = [1, 1]} : vector<15x32xf32> to vector<1x32xf32>
    %14 = vector.broadcast %13 : vector<1x32xf32> to vector<16x32xf32>
    %15 = arith.addf %12, %14 : vector<16x32xf32>
    %16 = vector.extract_strided_slice %7 {offsets = [0, 64], sizes = [16, 32], strides = [1, 1]} : vector<16x96xf32> to vector<16x32xf32>
    %17 = vector.extract_strided_slice %4 {offsets = [2, 0], sizes = [1, 32], strides = [1, 1]} : vector<15x32xf32> to vector<1x32xf32>
    %18 = vector.broadcast %17 : vector<1x32xf32> to vector<16x32xf32>
    %19 = arith.addf %16, %18 : vector<16x32xf32>
    %c0_9 = arith.constant 0 : index
    %c0_10 = arith.constant 0 : index
    %c0_11 = arith.constant 0 : index
    %c0_12 = arith.constant 0 : index
    %20 = vector.load %arg5[%c0_9, %c0_10, %c0_11, %c0_12] : memref<2x4x8x32xbf16, #tpu.memory_space<vmem>>, vector<1x4x8x32xbf16>
    %21 = vector.shape_cast %20 : vector<1x4x8x32xbf16> to vector<4x8x32xbf16>
    %22 = vector.extract_strided_slice %4 {offsets = [3, 0], sizes = [1, 32], strides = [1, 1]} : vector<15x32xf32> to vector<1x32xf32>
    %23 = vector.extract_strided_slice %11 {offsets = [0, 0], sizes = [16, 8], strides = [1, 1]} : vector<16x32xf32> to vector<16x8xf32>
    %cst_13 = arith.constant 0.353553385 : f32
    %24 = vector.broadcast %cst_13 : f32 to vector<16x8xf32>
    %25 = arith.mulf %23, %24 : vector<16x8xf32>
    %26 = vector.shape_cast %25 : vector<16x8xf32> to vector<2x8x8xf32>
    %27 = vector.extract_strided_slice %15 {offsets = [0, 0], sizes = [16, 8], strides = [1, 1]} : vector<16x32xf32> to vector<16x8xf32>
    %28 = vector.shape_cast %27 : vector<16x8xf32> to vector<2x8x8xf32>
    %29 = vector.extract_strided_slice %19 {offsets = [0, 0], sizes = [16, 8], strides = [1, 1]} : vector<16x32xf32> to vector<16x8xf32>
    %30 = vector.shape_cast %29 : vector<16x8xf32> to vector<2x8x8xf32>
    "tpu.trace_start"() <{level = 10 : i32, message = "btd,bsd->bts"}> : () -> ()
    %cst_14 = arith.constant dense<0.000000e+00> : vector<2x8x8xf32>
    %31 = tpu.matmul %26, %28, %cst_14 {dimension_numbers = #tpu.dot_dimension_numbers<[2], [2], [1], [1], [0, 0, 0, 1, 1, 1], [0], [0]>} : vector<2x8x8xf32>, vector<2x8x8xf32>, vector<2x8x8xf32> -> vector<2x8x8xf32>
    "tpu.trace_stop"() : () -> ()
    %cst_15 = arith.constant dense<0xFF800000> : vector<2x8xf32>
    %32 = vector.multi_reduction <maximumf>, %31, %cst_15 [2] : vector<2x8x8xf32> to vector<2x8xf32>
    %33 = vector.shape_cast %32 : vector<2x8xf32> to vector<2x8x1xf32>
    %34 = vector.broadcast %33 : vector<2x8x1xf32> to vector<2x8x8xf32>
    %35 = arith.subf %31, %34 : vector<2x8x8xf32>
    %36 = math.exp %35 : vector<2x8x8xf32>
    %cst_16 = arith.constant dense<0.000000e+00> : vector<2x8xf32>
    %37 = vector.multi_reduction <add>, %36, %cst_16 [2] : vector<2x8x8xf32> to vector<2x8xf32>
    %38 = vector.shape_cast %37 : vector<2x8xf32> to vector<2x8x1xf32>
    %39 = tpu.reciprocal %38 {approx = true} : vector<2x8x1xf32> -> vector<2x8x1xf32>
    %40 = vector.broadcast %39 : vector<2x8x1xf32> to vector<2x8x8xf32>
    %41 = arith.mulf %36, %40 : vector<2x8x8xf32>
    "tpu.trace_start"() <{level = 10 : i32, message = "bts,bsd->btd"}> : () -> ()
    %cst_17 = arith.constant dense<0.000000e+00> : vector<2x8x8xf32>
    %42 = tpu.matmul %41, %30, %cst_17 {dimension_numbers = #tpu.dot_dimension_numbers<[2], [1], [1], [2], [0, 0, 0, 1, 1, 2], [0], [0]>} : vector<2x8x8xf32>, vector<2x8x8xf32>, vector<2x8x8xf32> -> vector<2x8x8xf32>
    "tpu.trace_stop"() : () -> ()
    %43 = vector.shape_cast %42 : vector<2x8x8xf32> to vector<16x8xf32>
    %44 = arith.truncf %43 : vector<16x8xf32> to vector<16x8xbf16>
    %45 = vector.extract_strided_slice %21 {offsets = [0, 0, 0], sizes = [1, 8, 32], strides = [1, 1, 1]} : vector<4x8x32xbf16> to vector<1x8x32xbf16>
    %46 = vector.shape_cast %45 : vector<1x8x32xbf16> to vector<8x32xbf16>
    %cst_18 = arith.constant dense<0.000000e+00> : vector<16x32xf32>
    %47 = tpu.matmul %44, %46, %cst_18 {dimension_numbers = #tpu.dot_dimension_numbers<[1], [0], [0], [1], [0, 0, 1, 1], [], []>} : vector<16x8xbf16>, vector<8x32xbf16>, vector<16x32xf32> -> vector<16x32xf32>
    %48 = vector.extract_strided_slice %11 {offsets = [0, 8], sizes = [16, 8], strides = [1, 1]} : vector<16x32xf32> to vector<16x8xf32>
    %cst_19 = arith.constant 0.353553385 : f32
    %49 = vector.broadcast %cst_19 : f32 to vector<16x8xf32>
    %50 = arith.mulf %48, %49 : vector<16x8xf32>
    %51 = vector.shape_cast %50 : vector<16x8xf32> to vector<2x8x8xf32>
    %52 = vector.extract_strided_slice %15 {offsets = [0, 8], sizes = [16, 8], strides = [1, 1]} : vector<16x32xf32> to vector<16x8xf32>
    %53 = vector.shape_cast %52 : vector<16x8xf32> to vector<2x8x8xf32>
    %54 = vector.extract_strided_slice %19 {offsets = [0, 8], sizes = [16, 8], strides = [1, 1]} : vector<16x32xf32> to vector<16x8xf32>
    %55 = vector.shape_cast %54 : vector<16x8xf32> to vector<2x8x8xf32>
    "tpu.trace_start"() <{level = 10 : i32, message = "btd,bsd->bts"}> : () -> ()
    %cst_20 = arith.constant dense<0.000000e+00> : vector<2x8x8xf32>
    %56 = tpu.matmul %51, %53, %cst_20 {dimension_numbers = #tpu.dot_dimension_numbers<[2], [2], [1], [1], [0, 0, 0, 1, 1, 1], [0], [0]>} : vector<2x8x8xf32>, vector<2x8x8xf32>, vector<2x8x8xf32> -> vector<2x8x8xf32>
    "tpu.trace_stop"() : () -> ()
    %cst_21 = arith.constant dense<0xFF800000> : vector<2x8xf32>
    %57 = vector.multi_reduction <maximumf>, %56, %cst_21 [2] : vector<2x8x8xf32> to vector<2x8xf32>
    %58 = vector.shape_cast %57 : vector<2x8xf32> to vector<2x8x1xf32>
    %59 = vector.broadcast %58 : vector<2x8x1xf32> to vector<2x8x8xf32>
    %60 = arith.subf %56, %59 : vector<2x8x8xf32>
    %61 = math.exp %60 : vector<2x8x8xf32>
    %cst_22 = arith.constant dense<0.000000e+00> : vector<2x8xf32>
    %62 = vector.multi_reduction <add>, %61, %cst_22 [2] : vector<2x8x8xf32> to vector<2x8xf32>
    %63 = vector.shape_cast %62 : vector<2x8xf32> to vector<2x8x1xf32>
    %64 = tpu.reciprocal %63 {approx = true} : vector<2x8x1xf32> -> vector<2x8x1xf32>
    %65 = vector.broadcast %64 : vector<2x8x1xf32> to vector<2x8x8xf32>
    %66 = arith.mulf %61, %65 : vector<2x8x8xf32>
    "tpu.trace_start"() <{level = 10 : i32, message = "bts,bsd->btd"}> : () -> ()
    %cst_23 = arith.constant dense<0.000000e+00> : vector<2x8x8xf32>
    %67 = tpu.matmul %66, %55, %cst_23 {dimension_numbers = #tpu.dot_dimension_numbers<[2], [1], [1], [2], [0, 0, 0, 1, 1, 2], [0], [0]>} : vector<2x8x8xf32>, vector<2x8x8xf32>, vector<2x8x8xf32> -> vector<2x8x8xf32>
    "tpu.trace_stop"() : () -> ()
    %68 = vector.shape_cast %67 : vector<2x8x8xf32> to vector<16x8xf32>
    %69 = arith.truncf %68 : vector<16x8xf32> to vector<16x8xbf16>
    %70 = vector.extract_strided_slice %21 {offsets = [1, 0, 0], sizes = [1, 8, 32], strides = [1, 1, 1]} : vector<4x8x32xbf16> to vector<1x8x32xbf16>
    %71 = vector.shape_cast %70 : vector<1x8x32xbf16> to vector<8x32xbf16>
    %cst_24 = arith.constant dense<0.000000e+00> : vector<16x32xf32>
    %72 = tpu.matmul %69, %71, %cst_24 {dimension_numbers = #tpu.dot_dimension_numbers<[1], [0], [0], [1], [0, 0, 1, 1], [], []>} : vector<16x8xbf16>, vector<8x32xbf16>, vector<16x32xf32> -> vector<16x32xf32>
    %73 = arith.addf %47, %72 : vector<16x32xf32>
    %74 = vector.extract_strided_slice %11 {offsets = [0, 16], sizes = [16, 8], strides = [1, 1]} : vector<16x32xf32> to vector<16x8xf32>
    %cst_25 = arith.constant 0.353553385 : f32
    %75 = vector.broadcast %cst_25 : f32 to vector<16x8xf32>
    %76 = arith.mulf %74, %75 : vector<16x8xf32>
    %77 = vector.shape_cast %76 : vector<16x8xf32> to vector<2x8x8xf32>
    %78 = vector.extract_strided_slice %15 {offsets = [0, 16], sizes = [16, 8], strides = [1, 1]} : vector<16x32xf32> to vector<16x8xf32>
    %79 = vector.shape_cast %78 : vector<16x8xf32> to vector<2x8x8xf32>
    %80 = vector.extract_strided_slice %19 {offsets = [0, 16], sizes = [16, 8], strides = [1, 1]} : vector<16x32xf32> to vector<16x8xf32>
    %81 = vector.shape_cast %80 : vector<16x8xf32> to vector<2x8x8xf32>
    "tpu.trace_start"() <{level = 10 : i32, message = "btd,bsd->bts"}> : () -> ()
    %cst_26 = arith.constant dense<0.000000e+00> : vector<2x8x8xf32>
    %82 = tpu.matmul %77, %79, %cst_26 {dimension_numbers = #tpu.dot_dimension_numbers<[2], [2], [1], [1], [0, 0, 0, 1, 1, 1], [0], [0]>} : vector<2x8x8xf32>, vector<2x8x8xf32>, vector<2x8x8xf32> -> vector<2x8x8xf32>
    "tpu.trace_stop"() : () -> ()
    %cst_27 = arith.constant dense<0xFF800000> : vector<2x8xf32>
    %83 = vector.multi_reduction <maximumf>, %82, %cst_27 [2] : vector<2x8x8xf32> to vector<2x8xf32>
    %84 = vector.shape_cast %83 : vector<2x8xf32> to vector<2x8x1xf32>
    %85 = vector.broadcast %84 : vector<2x8x1xf32> to vector<2x8x8xf32>
    %86 = arith.subf %82, %85 : vector<2x8x8xf32>
    %87 = math.exp %86 : vector<2x8x8xf32>
    %cst_28 = arith.constant dense<0.000000e+00> : vector<2x8xf32>
    %88 = vector.multi_reduction <add>, %87, %cst_28 [2] : vector<2x8x8xf32> to vector<2x8xf32>
    %89 = vector.shape_cast %88 : vector<2x8xf32> to vector<2x8x1xf32>
    %90 = tpu.reciprocal %89 {approx = true} : vector<2x8x1xf32> -> vector<2x8x1xf32>
    %91 = vector.broadcast %90 : vector<2x8x1xf32> to vector<2x8x8xf32>
    %92 = arith.mulf %87, %91 : vector<2x8x8xf32>
    "tpu.trace_start"() <{level = 10 : i32, message = "bts,bsd->btd"}> : () -> ()
    %cst_29 = arith.constant dense<0.000000e+00> : vector<2x8x8xf32>
    %93 = tpu.matmul %92, %81, %cst_29 {dimension_numbers = #tpu.dot_dimension_numbers<[2], [1], [1], [2], [0, 0, 0, 1, 1, 2], [0], [0]>} : vector<2x8x8xf32>, vector<2x8x8xf32>, vector<2x8x8xf32> -> vector<2x8x8xf32>
    "tpu.trace_stop"() : () -> ()
    %94 = vector.shape_cast %93 : vector<2x8x8xf32> to vector<16x8xf32>
    %95 = arith.truncf %94 : vector<16x8xf32> to vector<16x8xbf16>
    %96 = vector.extract_strided_slice %21 {offsets = [2, 0, 0], sizes = [1, 8, 32], strides = [1, 1, 1]} : vector<4x8x32xbf16> to vector<1x8x32xbf16>
    %97 = vector.shape_cast %96 : vector<1x8x32xbf16> to vector<8x32xbf16>
    %cst_30 = arith.constant dense<0.000000e+00> : vector<16x32xf32>
    %98 = tpu.matmul %95, %97, %cst_30 {dimension_numbers = #tpu.dot_dimension_numbers<[1], [0], [0], [1], [0, 0, 1, 1], [], []>} : vector<16x8xbf16>, vector<8x32xbf16>, vector<16x32xf32> -> vector<16x32xf32>
    %99 = arith.addf %73, %98 : vector<16x32xf32>
    %100 = vector.extract_strided_slice %11 {offsets = [0, 24], sizes = [16, 8], strides = [1, 1]} : vector<16x32xf32> to vector<16x8xf32>
    %cst_31 = arith.constant 0.353553385 : f32
    %101 = vector.broadcast %cst_31 : f32 to vector<16x8xf32>
    %102 = arith.mulf %100, %101 : vector<16x8xf32>
    %103 = vector.shape_cast %102 : vector<16x8xf32> to vector<2x8x8xf32>
    %104 = vector.extract_strided_slice %15 {offsets = [0, 24], sizes = [16, 8], strides = [1, 1]} : vector<16x32xf32> to vector<16x8xf32>
    %105 = vector.shape_cast %104 : vector<16x8xf32> to vector<2x8x8xf32>
    %106 = vector.extract_strided_slice %19 {offsets = [0, 24], sizes = [16, 8], strides = [1, 1]} : vector<16x32xf32> to vector<16x8xf32>
    %107 = vector.shape_cast %106 : vector<16x8xf32> to vector<2x8x8xf32>
    "tpu.trace_start"() <{level = 10 : i32, message = "btd,bsd->bts"}> : () -> ()
    %cst_32 = arith.constant dense<0.000000e+00> : vector<2x8x8xf32>
    %108 = tpu.matmul %103, %105, %cst_32 {dimension_numbers = #tpu.dot_dimension_numbers<[2], [2], [1], [1], [0, 0, 0, 1, 1, 1], [0], [0]>} : vector<2x8x8xf32>, vector<2x8x8xf32>, vector<2x8x8xf32> -> vector<2x8x8xf32>
    "tpu.trace_stop"() : () -> ()
    %cst_33 = arith.constant dense<0xFF800000> : vector<2x8xf32>
    %109 = vector.multi_reduction <maximumf>, %108, %cst_33 [2] : vector<2x8x8xf32> to vector<2x8xf32>
    %110 = vector.shape_cast %109 : vector<2x8xf32> to vector<2x8x1xf32>
    %111 = vector.broadcast %110 : vector<2x8x1xf32> to vector<2x8x8xf32>
    %112 = arith.subf %108, %111 : vector<2x8x8xf32>
    %113 = math.exp %112 : vector<2x8x8xf32>
    %cst_34 = arith.constant dense<0.000000e+00> : vector<2x8xf32>
    %114 = vector.multi_reduction <add>, %113, %cst_34 [2] : vector<2x8x8xf32> to vector<2x8xf32>
    %115 = vector.shape_cast %114 : vector<2x8xf32> to vector<2x8x1xf32>
    %116 = tpu.reciprocal %115 {approx = true} : vector<2x8x1xf32> -> vector<2x8x1xf32>
    %117 = vector.broadcast %116 : vector<2x8x1xf32> to vector<2x8x8xf32>
    %118 = arith.mulf %113, %117 : vector<2x8x8xf32>
    "tpu.trace_start"() <{level = 10 : i32, message = "bts,bsd->btd"}> : () -> ()
    %cst_35 = arith.constant dense<0.000000e+00> : vector<2x8x8xf32>
    %119 = tpu.matmul %118, %107, %cst_35 {dimension_numbers = #tpu.dot_dimension_numbers<[2], [1], [1], [2], [0, 0, 0, 1, 1, 2], [0], [0]>} : vector<2x8x8xf32>, vector<2x8x8xf32>, vector<2x8x8xf32> -> vector<2x8x8xf32>
    "tpu.trace_stop"() : () -> ()
    %120 = vector.shape_cast %119 : vector<2x8x8xf32> to vector<16x8xf32>
    %121 = arith.truncf %120 : vector<16x8xf32> to vector<16x8xbf16>
    %122 = vector.extract_strided_slice %21 {offsets = [3, 0, 0], sizes = [1, 8, 32], strides = [1, 1, 1]} : vector<4x8x32xbf16> to vector<1x8x32xbf16>
    %123 = vector.shape_cast %122 : vector<1x8x32xbf16> to vector<8x32xbf16>
    %cst_36 = arith.constant dense<0.000000e+00> : vector<16x32xf32>
    %124 = tpu.matmul %121, %123, %cst_36 {dimension_numbers = #tpu.dot_dimension_numbers<[1], [0], [0], [1], [0, 0, 1, 1], [], []>} : vector<16x8xbf16>, vector<8x32xbf16>, vector<16x32xf32> -> vector<16x32xf32>
    %125 = arith.addf %99, %124 : vector<16x32xf32>
    %126 = vector.broadcast %22 : vector<1x32xf32> to vector<16x32xf32>
    %127 = arith.addf %125, %126 : vector<16x32xf32>
    %128 = arith.addf %1, %127 : vector<16x32xf32>
    %129 = vector.extract_strided_slice %4 {offsets = [9, 0], sizes = [1, 32], strides = [1, 1]} : vector<15x32xf32> to vector<1x32xf32>
    %130 = vector.extract_strided_slice %4 {offsets = [10, 0], sizes = [1, 32], strides = [1, 1]} : vector<15x32xf32> to vector<1x32xf32>
    %cst_37 = arith.constant dense<0.000000e+00> : vector<16xf32>
    %131 = vector.multi_reduction <add>, %128, %cst_37 [1] : vector<16x32xf32> to vector<16xf32>
    %132 = vector.shape_cast %131 : vector<16xf32> to vector<16x1xf32>
    %cst_38 = arith.constant 3.200000e+01 : f32
    %133 = vector.broadcast %cst_38 : f32 to vector<16x1xf32>
    %134 = arith.divf %132, %133 : vector<16x1xf32>
    %135 = vector.broadcast %134 : vector<16x1xf32> to vector<16x32xf32>
    %136 = arith.subf %128, %135 : vector<16x32xf32>
    %137 = arith.mulf %136, %136 : vector<16x32xf32>
    %cst_39 = arith.constant dense<0.000000e+00> : vector<16xf32>
    %138 = vector.multi_reduction <add>, %137, %cst_39 [1] : vector<16x32xf32> to vector<16xf32>
    %139 = vector.shape_cast %138 : vector<16xf32> to vector<16x1xf32>
    %cst_40 = arith.constant 3.200000e+01 : f32
    %140 = vector.broadcast %cst_40 : f32 to vector<16x1xf32>
    %141 = arith.divf %139, %140 : vector<16x1xf32>
    %cst_41 = arith.constant 9.99999974E-6 : f32
    %142 = vector.broadcast %cst_41 : f32 to vector<16x1xf32>
    %143 = arith.addf %141, %142 : vector<16x1xf32>
    %144 = math.rsqrt %143 : vector<16x1xf32>
    %145 = vector.broadcast %144 : vector<16x1xf32> to vector<16x32xf32>
    %146 = arith.mulf %136, %145 : vector<16x32xf32>
    %147 = vector.broadcast %129 : vector<1x32xf32> to vector<16x32xf32>
    %148 = arith.mulf %146, %147 : vector<16x32xf32>
    %149 = vector.broadcast %130 : vector<1x32xf32> to vector<16x32xf32>
    %150 = arith.addf %148, %149 : vector<16x32xf32>
    %151 = arith.truncf %3 : vector<16x32xf32> to vector<16x32xbf16>
    %c0_42 = arith.constant 0 : index
    %c0_43 = arith.constant 0 : index
    %152 = vector.load %arg4[%c0_42, %c0_43] : memref<32x64xbf16, #tpu.memory_space<vmem>>, vector<32x64xbf16>
    %cst_44 = arith.constant dense<0.000000e+00> : vector<16x64xf32>
    %153 = tpu.matmul %151, %152, %cst_44 {dimension_numbers = #tpu.dot_dimension_numbers<[1], [0], [0], [1], [0, 0, 1, 1], [], []>} : vector<16x32xbf16>, vector<32x64xbf16>, vector<16x64xf32> -> vector<16x64xf32>
    %154 = vector.extract_strided_slice %153 {offsets = [0, 0], sizes = [16, 32], strides = [1, 1]} : vector<16x64xf32> to vector<16x32xf32>
    %155 = vector.extract_strided_slice %4 {offsets = [5, 0], sizes = [1, 32], strides = [1, 1]} : vector<15x32xf32> to vector<1x32xf32>
    %156 = vector.broadcast %155 : vector<1x32xf32> to vector<16x32xf32>
    %157 = arith.addf %154, %156 : vector<16x32xf32>
    %158 = vector.extract_strided_slice %153 {offsets = [0, 32], sizes = [16, 32], strides = [1, 1]} : vector<16x64xf32> to vector<16x32xf32>
    %159 = vector.extract_strided_slice %4 {offsets = [6, 0], sizes = [1, 32], strides = [1, 1]} : vector<15x32xf32> to vector<1x32xf32>
    %160 = vector.broadcast %159 : vector<1x32xf32> to vector<16x32xf32>
    %161 = arith.addf %158, %160 : vector<16x32xf32>
    %162 = arith.truncf %150 : vector<16x32xf32> to vector<16x32xbf16>
    %c0_45 = arith.constant 0 : index
    %c0_46 = arith.constant 0 : index
    %163 = vector.load %arg3[%c0_45, %c0_46] : memref<32x32xbf16, #tpu.memory_space<vmem>>, vector<32x32xbf16>
    %cst_47 = arith.constant dense<0.000000e+00> : vector<16x32xf32>
    %164 = tpu.matmul %162, %163, %cst_47 {dimension_numbers = #tpu.dot_dimension_numbers<[1], [0], [0], [1], [0, 0, 1, 1], [], []>} : vector<16x32xbf16>, vector<32x32xbf16>, vector<16x32xf32> -> vector<16x32xf32>
    %165 = vector.extract_strided_slice %4 {offsets = [4, 0], sizes = [1, 32], strides = [1, 1]} : vector<15x32xf32> to vector<1x32xf32>
    %166 = vector.broadcast %165 : vector<1x32xf32> to vector<16x32xf32>
    %167 = arith.addf %164, %166 : vector<16x32xf32>
    %c1 = arith.constant 1 : index
    %c0_48 = arith.constant 0 : index
    %c0_49 = arith.constant 0 : index
    %c0_50 = arith.constant 0 : index
    %168 = vector.load %arg5[%c1, %c0_48, %c0_49, %c0_50] : memref<2x4x8x32xbf16, #tpu.memory_space<vmem>>, vector<1x4x8x32xbf16>
    %169 = vector.shape_cast %168 : vector<1x4x8x32xbf16> to vector<4x8x32xbf16>
    %170 = vector.extract_strided_slice %4 {offsets = [7, 0], sizes = [1, 32], strides = [1, 1]} : vector<15x32xf32> to vector<1x32xf32>
    %171 = vector.extract_strided_slice %167 {offsets = [0, 0], sizes = [16, 8], strides = [1, 1]} : vector<16x32xf32> to vector<16x8xf32>
    %cst_51 = arith.constant 0.353553385 : f32
    %172 = vector.broadcast %cst_51 : f32 to vector<16x8xf32>
    %173 = arith.mulf %171, %172 : vector<16x8xf32>
    %174 = vector.shape_cast %173 : vector<16x8xf32> to vector<2x8x8xf32>
    %175 = vector.extract_strided_slice %157 {offsets = [0, 0], sizes = [16, 8], strides = [1, 1]} : vector<16x32xf32> to vector<16x8xf32>
    %176 = vector.shape_cast %175 : vector<16x8xf32> to vector<2x8x8xf32>
    %177 = vector.extract_strided_slice %161 {offsets = [0, 0], sizes = [16, 8], strides = [1, 1]} : vector<16x32xf32> to vector<16x8xf32>
    %178 = vector.shape_cast %177 : vector<16x8xf32> to vector<2x8x8xf32>
    "tpu.trace_start"() <{level = 10 : i32, message = "btd,bsd->bts"}> : () -> ()
    %cst_52 = arith.constant dense<0.000000e+00> : vector<2x8x8xf32>
    %179 = tpu.matmul %174, %176, %cst_52 {dimension_numbers = #tpu.dot_dimension_numbers<[2], [2], [1], [1], [0, 0, 0, 1, 1, 1], [0], [0]>} : vector<2x8x8xf32>, vector<2x8x8xf32>, vector<2x8x8xf32> -> vector<2x8x8xf32>
    "tpu.trace_stop"() : () -> ()
    %cst_53 = arith.constant dense<0xFF800000> : vector<2x8xf32>
    %180 = vector.multi_reduction <maximumf>, %179, %cst_53 [2] : vector<2x8x8xf32> to vector<2x8xf32>
    %181 = vector.shape_cast %180 : vector<2x8xf32> to vector<2x8x1xf32>
    %182 = vector.broadcast %181 : vector<2x8x1xf32> to vector<2x8x8xf32>
    %183 = arith.subf %179, %182 : vector<2x8x8xf32>
    %184 = math.exp %183 : vector<2x8x8xf32>
    %cst_54 = arith.constant dense<0.000000e+00> : vector<2x8xf32>
    %185 = vector.multi_reduction <add>, %184, %cst_54 [2] : vector<2x8x8xf32> to vector<2x8xf32>
    %186 = vector.shape_cast %185 : vector<2x8xf32> to vector<2x8x1xf32>
    %187 = tpu.reciprocal %186 {approx = true} : vector<2x8x1xf32> -> vector<2x8x1xf32>
    %188 = vector.broadcast %187 : vector<2x8x1xf32> to vector<2x8x8xf32>
    %189 = arith.mulf %184, %188 : vector<2x8x8xf32>
    "tpu.trace_start"() <{level = 10 : i32, message = "bts,bsd->btd"}> : () -> ()
    %cst_55 = arith.constant dense<0.000000e+00> : vector<2x8x8xf32>
    %190 = tpu.matmul %189, %178, %cst_55 {dimension_numbers = #tpu.dot_dimension_numbers<[2], [1], [1], [2], [0, 0, 0, 1, 1, 2], [0], [0]>} : vector<2x8x8xf32>, vector<2x8x8xf32>, vector<2x8x8xf32> -> vector<2x8x8xf32>
    "tpu.trace_stop"() : () -> ()
    %191 = vector.shape_cast %190 : vector<2x8x8xf32> to vector<16x8xf32>
    %192 = arith.truncf %191 : vector<16x8xf32> to vector<16x8xbf16>
    %193 = vector.extract_strided_slice %169 {offsets = [0, 0, 0], sizes = [1, 8, 32], strides = [1, 1, 1]} : vector<4x8x32xbf16> to vector<1x8x32xbf16>
    %194 = vector.shape_cast %193 : vector<1x8x32xbf16> to vector<8x32xbf16>
    %cst_56 = arith.constant dense<0.000000e+00> : vector<16x32xf32>
    %195 = tpu.matmul %192, %194, %cst_56 {dimension_numbers = #tpu.dot_dimension_numbers<[1], [0], [0], [1], [0, 0, 1, 1], [], []>} : vector<16x8xbf16>, vector<8x32xbf16>, vector<16x32xf32> -> vector<16x32xf32>
    %196 = vector.extract_strided_slice %167 {offsets = [0, 8], sizes = [16, 8], strides = [1, 1]} : vector<16x32xf32> to vector<16x8xf32>
    %cst_57 = arith.constant 0.353553385 : f32
    %197 = vector.broadcast %cst_57 : f32 to vector<16x8xf32>
    %198 = arith.mulf %196, %197 : vector<16x8xf32>
    %199 = vector.shape_cast %198 : vector<16x8xf32> to vector<2x8x8xf32>
    %200 = vector.extract_strided_slice %157 {offsets = [0, 8], sizes = [16, 8], strides = [1, 1]} : vector<16x32xf32> to vector<16x8xf32>
    %201 = vector.shape_cast %200 : vector<16x8xf32> to vector<2x8x8xf32>
    %202 = vector.extract_strided_slice %161 {offsets = [0, 8], sizes = [16, 8], strides = [1, 1]} : vector<16x32xf32> to vector<16x8xf32>
    %203 = vector.shape_cast %202 : vector<16x8xf32> to vector<2x8x8xf32>
    "tpu.trace_start"() <{level = 10 : i32, message = "btd,bsd->bts"}> : () -> ()
    %cst_58 = arith.constant dense<0.000000e+00> : vector<2x8x8xf32>
    %204 = tpu.matmul %199, %201, %cst_58 {dimension_numbers = #tpu.dot_dimension_numbers<[2], [2], [1], [1], [0, 0, 0, 1, 1, 1], [0], [0]>} : vector<2x8x8xf32>, vector<2x8x8xf32>, vector<2x8x8xf32> -> vector<2x8x8xf32>
    "tpu.trace_stop"() : () -> ()
    %cst_59 = arith.constant dense<0xFF800000> : vector<2x8xf32>
    %205 = vector.multi_reduction <maximumf>, %204, %cst_59 [2] : vector<2x8x8xf32> to vector<2x8xf32>
    %206 = vector.shape_cast %205 : vector<2x8xf32> to vector<2x8x1xf32>
    %207 = vector.broadcast %206 : vector<2x8x1xf32> to vector<2x8x8xf32>
    %208 = arith.subf %204, %207 : vector<2x8x8xf32>
    %209 = math.exp %208 : vector<2x8x8xf32>
    %cst_60 = arith.constant dense<0.000000e+00> : vector<2x8xf32>
    %210 = vector.multi_reduction <add>, %209, %cst_60 [2] : vector<2x8x8xf32> to vector<2x8xf32>
    %211 = vector.shape_cast %210 : vector<2x8xf32> to vector<2x8x1xf32>
    %212 = tpu.reciprocal %211 {approx = true} : vector<2x8x1xf32> -> vector<2x8x1xf32>
    %213 = vector.broadcast %212 : vector<2x8x1xf32> to vector<2x8x8xf32>
    %214 = arith.mulf %209, %213 : vector<2x8x8xf32>
    "tpu.trace_start"() <{level = 10 : i32, message = "bts,bsd->btd"}> : () -> ()
    %cst_61 = arith.constant dense<0.000000e+00> : vector<2x8x8xf32>
    %215 = tpu.matmul %214, %203, %cst_61 {dimension_numbers = #tpu.dot_dimension_numbers<[2], [1], [1], [2], [0, 0, 0, 1, 1, 2], [0], [0]>} : vector<2x8x8xf32>, vector<2x8x8xf32>, vector<2x8x8xf32> -> vector<2x8x8xf32>
    "tpu.trace_stop"() : () -> ()
    %216 = vector.shape_cast %215 : vector<2x8x8xf32> to vector<16x8xf32>
    %217 = arith.truncf %216 : vector<16x8xf32> to vector<16x8xbf16>
    %218 = vector.extract_strided_slice %169 {offsets = [1, 0, 0], sizes = [1, 8, 32], strides = [1, 1, 1]} : vector<4x8x32xbf16> to vector<1x8x32xbf16>
    %219 = vector.shape_cast %218 : vector<1x8x32xbf16> to vector<8x32xbf16>
    %cst_62 = arith.constant dense<0.000000e+00> : vector<16x32xf32>
    %220 = tpu.matmul %217, %219, %cst_62 {dimension_numbers = #tpu.dot_dimension_numbers<[1], [0], [0], [1], [0, 0, 1, 1], [], []>} : vector<16x8xbf16>, vector<8x32xbf16>, vector<16x32xf32> -> vector<16x32xf32>
    %221 = arith.addf %195, %220 : vector<16x32xf32>
    %222 = vector.extract_strided_slice %167 {offsets = [0, 16], sizes = [16, 8], strides = [1, 1]} : vector<16x32xf32> to vector<16x8xf32>
    %cst_63 = arith.constant 0.353553385 : f32
    %223 = vector.broadcast %cst_63 : f32 to vector<16x8xf32>
    %224 = arith.mulf %222, %223 : vector<16x8xf32>
    %225 = vector.shape_cast %224 : vector<16x8xf32> to vector<2x8x8xf32>
    %226 = vector.extract_strided_slice %157 {offsets = [0, 16], sizes = [16, 8], strides = [1, 1]} : vector<16x32xf32> to vector<16x8xf32>
    %227 = vector.shape_cast %226 : vector<16x8xf32> to vector<2x8x8xf32>
    %228 = vector.extract_strided_slice %161 {offsets = [0, 16], sizes = [16, 8], strides = [1, 1]} : vector<16x32xf32> to vector<16x8xf32>
    %229 = vector.shape_cast %228 : vector<16x8xf32> to vector<2x8x8xf32>
    "tpu.trace_start"() <{level = 10 : i32, message = "btd,bsd->bts"}> : () -> ()
    %cst_64 = arith.constant dense<0.000000e+00> : vector<2x8x8xf32>
    %230 = tpu.matmul %225, %227, %cst_64 {dimension_numbers = #tpu.dot_dimension_numbers<[2], [2], [1], [1], [0, 0, 0, 1, 1, 1], [0], [0]>} : vector<2x8x8xf32>, vector<2x8x8xf32>, vector<2x8x8xf32> -> vector<2x8x8xf32>
    "tpu.trace_stop"() : () -> ()
    %cst_65 = arith.constant dense<0xFF800000> : vector<2x8xf32>
    %231 = vector.multi_reduction <maximumf>, %230, %cst_65 [2] : vector<2x8x8xf32> to vector<2x8xf32>
    %232 = vector.shape_cast %231 : vector<2x8xf32> to vector<2x8x1xf32>
    %233 = vector.broadcast %232 : vector<2x8x1xf32> to vector<2x8x8xf32>
    %234 = arith.subf %230, %233 : vector<2x8x8xf32>
    %235 = math.exp %234 : vector<2x8x8xf32>
    %cst_66 = arith.constant dense<0.000000e+00> : vector<2x8xf32>
    %236 = vector.multi_reduction <add>, %235, %cst_66 [2] : vector<2x8x8xf32> to vector<2x8xf32>
    %237 = vector.shape_cast %236 : vector<2x8xf32> to vector<2x8x1xf32>
    %238 = tpu.reciprocal %237 {approx = true} : vector<2x8x1xf32> -> vector<2x8x1xf32>
    %239 = vector.broadcast %238 : vector<2x8x1xf32> to vector<2x8x8xf32>
    %240 = arith.mulf %235, %239 : vector<2x8x8xf32>
    "tpu.trace_start"() <{level = 10 : i32, message = "bts,bsd->btd"}> : () -> ()
    %cst_67 = arith.constant dense<0.000000e+00> : vector<2x8x8xf32>
    %241 = tpu.matmul %240, %229, %cst_67 {dimension_numbers = #tpu.dot_dimension_numbers<[2], [1], [1], [2], [0, 0, 0, 1, 1, 2], [0], [0]>} : vector<2x8x8xf32>, vector<2x8x8xf32>, vector<2x8x8xf32> -> vector<2x8x8xf32>
    "tpu.trace_stop"() : () -> ()
    %242 = vector.shape_cast %241 : vector<2x8x8xf32> to vector<16x8xf32>
    %243 = arith.truncf %242 : vector<16x8xf32> to vector<16x8xbf16>
    %244 = vector.extract_strided_slice %169 {offsets = [2, 0, 0], sizes = [1, 8, 32], strides = [1, 1, 1]} : vector<4x8x32xbf16> to vector<1x8x32xbf16>
    %245 = vector.shape_cast %244 : vector<1x8x32xbf16> to vector<8x32xbf16>
    %cst_68 = arith.constant dense<0.000000e+00> : vector<16x32xf32>
    %246 = tpu.matmul %243, %245, %cst_68 {dimension_numbers = #tpu.dot_dimension_numbers<[1], [0], [0], [1], [0, 0, 1, 1], [], []>} : vector<16x8xbf16>, vector<8x32xbf16>, vector<16x32xf32> -> vector<16x32xf32>
    %247 = arith.addf %221, %246 : vector<16x32xf32>
    %248 = vector.extract_strided_slice %167 {offsets = [0, 24], sizes = [16, 8], strides = [1, 1]} : vector<16x32xf32> to vector<16x8xf32>
    %cst_69 = arith.constant 0.353553385 : f32
    %249 = vector.broadcast %cst_69 : f32 to vector<16x8xf32>
    %250 = arith.mulf %248, %249 : vector<16x8xf32>
    %251 = vector.shape_cast %250 : vector<16x8xf32> to vector<2x8x8xf32>
    %252 = vector.extract_strided_slice %157 {offsets = [0, 24], sizes = [16, 8], strides = [1, 1]} : vector<16x32xf32> to vector<16x8xf32>
    %253 = vector.shape_cast %252 : vector<16x8xf32> to vector<2x8x8xf32>
    %254 = vector.extract_strided_slice %161 {offsets = [0, 24], sizes = [16, 8], strides = [1, 1]} : vector<16x32xf32> to vector<16x8xf32>
    %255 = vector.shape_cast %254 : vector<16x8xf32> to vector<2x8x8xf32>
    "tpu.trace_start"() <{level = 10 : i32, message = "btd,bsd->bts"}> : () -> ()
    %cst_70 = arith.constant dense<0.000000e+00> : vector<2x8x8xf32>
    %256 = tpu.matmul %251, %253, %cst_70 {dimension_numbers = #tpu.dot_dimension_numbers<[2], [2], [1], [1], [0, 0, 0, 1, 1, 1], [0], [0]>} : vector<2x8x8xf32>, vector<2x8x8xf32>, vector<2x8x8xf32> -> vector<2x8x8xf32>
    "tpu.trace_stop"() : () -> ()
    %cst_71 = arith.constant dense<0xFF800000> : vector<2x8xf32>
    %257 = vector.multi_reduction <maximumf>, %256, %cst_71 [2] : vector<2x8x8xf32> to vector<2x8xf32>
    %258 = vector.shape_cast %257 : vector<2x8xf32> to vector<2x8x1xf32>
    %259 = vector.broadcast %258 : vector<2x8x1xf32> to vector<2x8x8xf32>
    %260 = arith.subf %256, %259 : vector<2x8x8xf32>
    %261 = math.exp %260 : vector<2x8x8xf32>
    %cst_72 = arith.constant dense<0.000000e+00> : vector<2x8xf32>
    %262 = vector.multi_reduction <add>, %261, %cst_72 [2] : vector<2x8x8xf32> to vector<2x8xf32>
    %263 = vector.shape_cast %262 : vector<2x8xf32> to vector<2x8x1xf32>
    %264 = tpu.reciprocal %263 {approx = true} : vector<2x8x1xf32> -> vector<2x8x1xf32>
    %265 = vector.broadcast %264 : vector<2x8x1xf32> to vector<2x8x8xf32>
    %266 = arith.mulf %261, %265 : vector<2x8x8xf32>
    "tpu.trace_start"() <{level = 10 : i32, message = "bts,bsd->btd"}> : () -> ()
    %cst_73 = arith.constant dense<0.000000e+00> : vector<2x8x8xf32>
    %267 = tpu.matmul %266, %255, %cst_73 {dimension_numbers = #tpu.dot_dimension_numbers<[2], [1], [1], [2], [0, 0, 0, 1, 1, 2], [0], [0]>} : vector<2x8x8xf32>, vector<2x8x8xf32>, vector<2x8x8xf32> -> vector<2x8x8xf32>
    "tpu.trace_stop"() : () -> ()
    %268 = vector.shape_cast %267 : vector<2x8x8xf32> to vector<16x8xf32>
    %269 = arith.truncf %268 : vector<16x8xf32> to vector<16x8xbf16>
    %270 = vector.extract_strided_slice %169 {offsets = [3, 0, 0], sizes = [1, 8, 32], strides = [1, 1, 1]} : vector<4x8x32xbf16> to vector<1x8x32xbf16>
    %271 = vector.shape_cast %270 : vector<1x8x32xbf16> to vector<8x32xbf16>
    %cst_74 = arith.constant dense<0.000000e+00> : vector<16x32xf32>
    %272 = tpu.matmul %269, %271, %cst_74 {dimension_numbers = #tpu.dot_dimension_numbers<[1], [0], [0], [1], [0, 0, 1, 1], [], []>} : vector<16x8xbf16>, vector<8x32xbf16>, vector<16x32xf32> -> vector<16x32xf32>
    %273 = arith.addf %247, %272 : vector<16x32xf32>
    %274 = vector.broadcast %170 : vector<1x32xf32> to vector<16x32xf32>
    %275 = arith.addf %273, %274 : vector<16x32xf32>
    %276 = arith.addf %150, %275 : vector<16x32xf32>
    %277 = vector.extract_strided_slice %4 {offsets = [11, 0], sizes = [1, 32], strides = [1, 1]} : vector<15x32xf32> to vector<1x32xf32>
    %278 = vector.extract_strided_slice %4 {offsets = [12, 0], sizes = [1, 32], strides = [1, 1]} : vector<15x32xf32> to vector<1x32xf32>
    %cst_75 = arith.constant dense<0.000000e+00> : vector<16xf32>
    %279 = vector.multi_reduction <add>, %276, %cst_75 [1] : vector<16x32xf32> to vector<16xf32>
    %280 = vector.shape_cast %279 : vector<16xf32> to vector<16x1xf32>
    %cst_76 = arith.constant 3.200000e+01 : f32
    %281 = vector.broadcast %cst_76 : f32 to vector<16x1xf32>
    %282 = arith.divf %280, %281 : vector<16x1xf32>
    %283 = vector.broadcast %282 : vector<16x1xf32> to vector<16x32xf32>
    %284 = arith.subf %276, %283 : vector<16x32xf32>
    %285 = arith.mulf %284, %284 : vector<16x32xf32>
    %cst_77 = arith.constant dense<0.000000e+00> : vector<16xf32>
    %286 = vector.multi_reduction <add>, %285, %cst_77 [1] : vector<16x32xf32> to vector<16xf32>
    %287 = vector.shape_cast %286 : vector<16xf32> to vector<16x1xf32>
    %cst_78 = arith.constant 3.200000e+01 : f32
    %288 = vector.broadcast %cst_78 : f32 to vector<16x1xf32>
    %289 = arith.divf %287, %288 : vector<16x1xf32>
    %cst_79 = arith.constant 9.99999974E-6 : f32
    %290 = vector.broadcast %cst_79 : f32 to vector<16x1xf32>
    %291 = arith.addf %289, %290 : vector<16x1xf32>
    %292 = math.rsqrt %291 : vector<16x1xf32>
    %293 = vector.broadcast %292 : vector<16x1xf32> to vector<16x32xf32>
    %294 = arith.mulf %284, %293 : vector<16x32xf32>
    %295 = vector.broadcast %277 : vector<1x32xf32> to vector<16x32xf32>
    %296 = arith.mulf %294, %295 : vector<16x32xf32>
    %297 = vector.broadcast %278 : vector<1x32xf32> to vector<16x32xf32>
    %298 = arith.addf %296, %297 : vector<16x32xf32>
    %299 = arith.truncf %298 : vector<16x32xf32> to vector<16x32xbf16>
    %c0_80 = arith.constant 0 : index
    %c0_81 = arith.constant 0 : index
    %300 = vector.load %arg6[%c0_80, %c0_81] : memref<32x2048xbf16, #tpu.memory_space<vmem>>, vector<32x2048xbf16>
    %cst_82 = arith.constant dense<0.000000e+00> : vector<16x2048xf32>
    %301 = tpu.matmul %299, %300, %cst_82 {dimension_numbers = #tpu.dot_dimension_numbers<[1], [0], [0], [1], [0, 0, 1, 1], [], []>} : vector<16x32xbf16>, vector<32x2048xbf16>, vector<16x2048xf32> -> vector<16x2048xf32>
    %c0_83 = arith.constant 0 : index
    %c0_84 = arith.constant 0 : index
    %302 = vector.load %arg8[%c0_83, %c0_84] : memref<1x2048xf32, #tpu.memory_space<vmem>>, vector<1x2048xf32>
    %303 = vector.broadcast %302 : vector<1x2048xf32> to vector<16x2048xf32>
    %304 = arith.addf %301, %303 : vector<16x2048xf32>
    %cst_85 = arith.constant 0.000000e+00 : f32
    %305 = vector.broadcast %cst_85 : f32 to vector<16x2048xf32>
    %306 = arith.maximumf %304, %305 : vector<16x2048xf32>
    %307 = arith.truncf %306 : vector<16x2048xf32> to vector<16x2048xbf16>
    %c0_86 = arith.constant 0 : index
    %c0_87 = arith.constant 0 : index
    %308 = vector.load %arg7[%c0_86, %c0_87] : memref<2048x32xbf16, #tpu.memory_space<vmem>>, vector<2048x32xbf16>
    %cst_88 = arith.constant dense<0.000000e+00> : vector<16x32xf32>
    %309 = tpu.matmul %307, %308, %cst_88 {dimension_numbers = #tpu.dot_dimension_numbers<[1], [0], [0], [1], [0, 0, 1, 1], [], []>} : vector<16x2048xbf16>, vector<2048x32xbf16>, vector<16x32xf32> -> vector<16x32xf32>
    %310 = vector.extract_strided_slice %4 {offsets = [8, 0], sizes = [1, 32], strides = [1, 1]} : vector<15x32xf32> to vector<1x32xf32>
    %311 = vector.broadcast %310 : vector<1x32xf32> to vector<16x32xf32>
    %312 = arith.addf %309, %311 : vector<16x32xf32>
    %313 = arith.addf %298, %312 : vector<16x32xf32>
    %314 = vector.extract_strided_slice %4 {offsets = [13, 0], sizes = [1, 32], strides = [1, 1]} : vector<15x32xf32> to vector<1x32xf32>
    %315 = vector.extract_strided_slice %4 {offsets = [14, 0], sizes = [1, 32], strides = [1, 1]} : vector<15x32xf32> to vector<1x32xf32>
    %cst_89 = arith.constant dense<0.000000e+00> : vector<16xf32>
    %316 = vector.multi_reduction <add>, %313, %cst_89 [1] : vector<16x32xf32> to vector<16xf32>
    %317 = vector.shape_cast %316 : vector<16xf32> to vector<16x1xf32>
    %cst_90 = arith.constant 3.200000e+01 : f32
    %318 = vector.broadcast %cst_90 : f32 to vector<16x1xf32>
    %319 = arith.divf %317, %318 : vector<16x1xf32>
    %320 = vector.broadcast %319 : vector<16x1xf32> to vector<16x32xf32>
    %321 = arith.subf %313, %320 : vector<16x32xf32>
    %322 = arith.mulf %321, %321 : vector<16x32xf32>
    %cst_91 = arith.constant dense<0.000000e+00> : vector<16xf32>
    %323 = vector.multi_reduction <add>, %322, %cst_91 [1] : vector<16x32xf32> to vector<16xf32>
    %324 = vector.shape_cast %323 : vector<16xf32> to vector<16x1xf32>
    %cst_92 = arith.constant 3.200000e+01 : f32
    %325 = vector.broadcast %cst_92 : f32 to vector<16x1xf32>
    %326 = arith.divf %324, %325 : vector<16x1xf32>
    %cst_93 = arith.constant 9.99999974E-6 : f32
    %327 = vector.broadcast %cst_93 : f32 to vector<16x1xf32>
    %328 = arith.addf %326, %327 : vector<16x1xf32>
    %329 = math.rsqrt %328 : vector<16x1xf32>
    %330 = vector.broadcast %329 : vector<16x1xf32> to vector<16x32xf32>
    %331 = arith.mulf %321, %330 : vector<16x32xf32>
    %332 = vector.broadcast %314 : vector<1x32xf32> to vector<16x32xf32>
    %333 = arith.mulf %331, %332 : vector<16x32xf32>
    %334 = vector.broadcast %315 : vector<1x32xf32> to vector<16x32xf32>
    %335 = arith.addf %333, %334 : vector<16x32xf32>
    %336 = vector.shape_cast %335 : vector<16x32xf32> to vector<2x8x32xf32>
    %c0_94 = arith.constant 0 : index
    %c0_95 = arith.constant 0 : index
    %c0_96 = arith.constant 0 : index
    %337 = vector.load %arg10[%c0_94, %c0_95, %c0_96] : memref<2x8x32xf32, #tpu.memory_space<vmem>>, vector<2x8x32xf32>
    tpu.vector_store %arg10[%c0_94, %c0_95, %c0_96], %336 {strides = array<i32>} : memref<2x8x32xf32, #tpu.memory_space<vmem>>, vector<2x8x32xf32>,
    return
  }
}

</mosaic_0001>

<bundles_post_ra>
// kernel: tpu_custom_call.1
= control target key start
LH: loop header
LB: loop body
LE: loop exit
PB: predicated region body
PF: predicated region fallthrough
CT: control target
= control target key end

     0   :  { %v105_v1 = vlaneseq  ;;  %v6489_v2 = vmov 0.0   ;;  %vm6490_vm0 = vmmov 0   ;;  %vm60_vm1 = vcmask 261120   ;;  %s7664_s0 = inlined_call_operand.vmem [shape: f32[2,8,32], index: 0, kind: input, shape index: {}]   ;;  %s7665_s1 = inlined_call_operand.vmem [shape: f32[2,8,32], index: 1, kind: input, shape index: {}]   ;;  %s7666_s2 = inlined_call_operand.vmem [shape: bf16[32,96], index: 2, kind: input, shape index: {}]   ;;  %s7667_s3 = inlined_call_operand.vmem [shape: bf16[32,32], index: 3, kind: input, shape index: {}]   ;;  %s7668_s4 = inlined_call_operand.vmem [shape: bf16[32,64], index: 4, kind: input, shape index: {}]   ;;  %s7669_s5 = inlined_call_operand.vmem [shape: bf16[2,4,8,32], index: 5, kind: input, shape index: {}]   ;;  %s7670_s6 = inlined_call_operand.vmem [shape: bf16[32,2048], index: 6, kind: input, shape index: {}]   ;;  %s7671_s7 = inlined_call_operand.vmem [shape: bf16[2048,32], index: 7, kind: input, shape index: {}]   ;;  %s7672_s8 = inlined_call_operand.vmem [shape: f32[1,2048], index: 8, kind: input, shape index: {}]   ;;  %s7673_s9 = inlined_call_operand.vmem [shape: f32[15,32], index: 9, kind: input, shape index: {}]   ;;  %s7674_s10 = inlined_call_operand.hbm [shape: f32[2,8,32], index: 10, kind: output, shape index: {}]  }
   0x1   :  { %v6251_v0 = vld [vmem:[%s7666_s2] sm:$0xff]   ;;  %6001 = vmatprep.subr.bf16.mxu0 %v6489_v2  ;;  %v6252_v3 = vld [vmem:[%s7666_s2 + $0x8] sm:$0xff]   ;;  %6009 = vmatprep.subr.mxu1 %v6489_v2  ;;  %s6491_s2 = smov 32  }
   0x2   :  { %6002 = vmatpush3.bf16.msra.mxu0 %v6251_v0  ;;  %6005 = vmatprep.mubr.msk.bf16.mxu0 %vm6490_vm0, %v6489_v2  ;;  %v37_v4 = vld [vmem:[%s7664_s0] sm:$0xff]  ;;  %v38_v5 = vld [vmem:[%s7664_s0 + $0x8] sm:$0xff]  ;;  %v6581_v7 = vshrl.u32 %v105_v1, 7 }
   0x3   :  { %v41_v6 = vld [vmem:[%s7673_s9] sm:$0xff]  ;;  %6003 = vmatprep.subr.bf16.mxu0 %v6489_v2  ;;  %6011 = vmatprep.mubr.msk.f32.mxu1 %vm6490_vm0, %v6489_v2  ;;  %v43_v9 = vpack.c.bf16 %v38_v5, %v37_v4 }
   0x4   :  { %v6587_v8 = vsub.s32 1, %v6581_v7 }
   0x6   :  { %6004 = vmatpush3.bf16.msra.mxu0 %v6252_v3  ;;  %v114_v10 = vrot.slane %v41_v6, %v6587_v8 }
   0x7   :  { %6024 = vmatprep.subr.mxu0 %v6489_v2 }
   0x8   :  { %116 = vrot.lane.b32.xlu0 %v114_v10, %s6491_s2 }
   0x9   :  { %6006 = vmatmul.mubr.msk.bf16.vlgmr.msra.gmra.mrb[0].mxu0 %vm60_vm1, %v43_v9 }
   0xa   :  { %6026 = vmatprep.mubr.msk.f32.mxu0 %vm6490_vm0, %v6489_v2 }
   0xb   :  { %15 = vsyncpa [#allocation3], 0  ;;  %s6492_s23 = smov 96   ;;  %v6604_v18 = vsub.s32 0, %v6581_v7  ;;  %vm140_vm2 = vcmask 64512   ;;  %v6626_v32 = vsub.s32 2, %v6581_v7 }
   0xc   :  { %s6493_s24 = smov 64   ;;  %s6494_s25 = smov 88   ;;  %vm805_vm3 = vcmask 1043456  }
   0xd   :  { %v108_v19 = vrot.slane %v41_v6, %v6604_v18  ;;  %v124_v33 = vrot.slane %v41_v6, %v6626_v32  ;;  %s6495_s26 = smov 120   ;;  %s6496_s27 = smov 56  }
   0xe   :  { %s6497_s28 = smov 80   ;;  %s6498_s29 = smov 112  }
   0xf   :  { %s6499_s30 = smov 72   ;;  %s6500_s15 = smov 48  }
  0x10   :  { %s6501_s16 = smov 104   ;;  %s6502_s17 = smov 40  }
  0x7a   :  { %v117_v11 = vpop.permute.xlu0 %116 }
  0xdc   :  { %v98_v12 = vpop.f32.mrb[0].mxu0 }
  0xdd   :  { %v6595_v13 = vadd.f32 %v117_v11, %v98_v12  ;;  %v6007_v14 = vpop.f32.mrb[1].mxu0  ;;  %v109_v20 = vadd.f32 %v108_v19, %v98_v12 }
  0xde   :  { %v101_v15 = vpop.f32.mrb[2].mxu0 }
  0xdf   :  { %v6597_v16 = vadd.f32 %v117_v11, %v101_v15  ;;  %138 = vrot.lane.b32.xlu0 %v6595_v13, %s6492_s23  ;;  %v6008_v17 = vpop.f32.mrb[3].mxu0  ;;  %v6608_v22 = vmul.f32 0.35355338, %v109_v20  ;;  %v110_v23 = vadd.f32 %v108_v19, %v101_v15 }
  0xe1   :  { %217 = vrot.lane.b32.xlu1 %v6597_v16, %s6492_s23  ;;  %v6616_v25 = vmul.f32 0.35355338, %v110_v23 }
 0x151   :  { %v139_v21 = vpop.permute.xlu0 %138 }
 0x152   :  { %6010 = vmatpush3.xpose.msk.msra.mxu1 %vm140_vm2, %v139_v21 }
 0x153   :  { %6014 = vmatprep.subr.mxu1 %v6489_v2  ;;  %v218_v24 = vpop.permute.xlu1 %217 }
 0x155   :  { %6012 = vmatmul.mubr.msk.f32.vlgmr.msra.gmra.mrb[0].mxu1 %vm140_vm2, %v6608_v22 }
 0x156   :  { %6015 = vmatpush3.xpose.msk.msra.mxu1 %vm140_vm2, %v218_v24  ;;  %6016 = vmatprep.mubr.msk.f32.mxu1 %vm6490_vm0, %v6489_v2 }
 0x157   :  { %6019 = vmatprep.subr.mxu1 %v6489_v2 }
 0x159   :  { %6017 = vmatmul.mubr.msk.f32.vlgmr.msra.gmra.mrb[2].mxu1 %vm140_vm2, %v6616_v25 }
 0x15a   :  { %6021 = vmatprep.mubr.msk.f32.mxu1 %vm6490_vm0, %v6489_v2 }
 0x228   :  { %v212_v26 = vpop.f32.mrb[0].mxu1 }
 0x229   :  { %v6013_v27 = vpop.f32.mrb[1].mxu1  ;;  %v294_v28 = vsel %vm140_vm2, %v212_v26, -inf }
 0x22a   :  { %295 = vmax.xlane.f32.xlu1 %v294_v28  ;;  %v132_v28 = vld [vmem:[%s7669_s5 + $0x4] sm:$0xf] }
 0x22c   :  { %v290_v29 = vpop.f32.mrb[2].mxu1 }
 0x22d   :  { %v6018_v30 = vpop.f32.mrb[3].mxu1  ;;  %v297_v31 = vsel %vm140_vm2, %v290_v29, -inf }
 0x22e   :  { %298 = vmax.xlane.f32.xlu0 %v297_v31  ;;  %v807_v31 = vsel %vm805_vm3, %v132_v28, 0 }
 0x244   :  { %126 = vrot.lane.b32.xlu0 %v124_v33, %s6493_s24 }
 0x2b7   :  { %v296_v38 = vpop.xlane.xlu1 %295 }
 0x2b8   :  { %v300_v39 = vsub.f32 %v212_v26, %v296_v38 }
 0x2ba   :  { %v302_v40 = vmul.f32 1.442695, %v300_v39 }
 0x2bb   :  { %v299_v34 = vpop.xlane.xlu0 %298 }
 0x2bc   :  { %v301_v41 = vsub.f32 %v290_v29, %v299_v34  ;;  %6385 = vpow2.f32 %v302_v40 }
 0x2be   :  { %v304_v42 = vmul.f32 1.442695, %v301_v41 }
 0x2bf   :  { %v127_v35 = vpop.permute.xlu0 %126 }
 0x2c0   :  { %v6629_v36 = vadd.f32 %v127_v35, %v98_v12  ;;  %v6631_v37 = vadd.f32 %v127_v35, %v101_v15  ;;  %6387 = vpow2.f32 %v304_v42 }
 0x2c2   :  { %394 = vrot.lane.b32.xlu0 %v6631_v37, %s6493_s24  ;;  %317 = vrot.lane.b32.xlu1 %v6629_v36, %s6493_s24 }
 0x2c6   :  { %473 = vrot.lane.b32.xlu0 %v6595_v13, %s6494_s25  ;;  %551 = vrot.lane.b32.xlu1 %v6597_v16, %s6494_s25  ;;  %v6386_v43 = vpop.eup %6385 }
 0x2c7   :  { %v306_v44 = vsel %vm140_vm2, %v6386_v43, 0.0 }
 0x2ca   :  { %471 = vrot.lane.b32.xlu0 %v6608_v22, %s6495_s26  ;;  %v6388_v45 = vpop.eup %6387 }
 0x2cb   :  { %v309_v46 = vsel %vm140_vm2, %v6388_v45, 0.0 }
 0x2ea   :  { %307 = vadd.xlane.f32.xlu1 %v306_v44 }
 0x2ee   :  { %310 = vadd.xlane.f32.xlu1 %v309_v46 }
 0x2ff   :  { %549 = vrot.lane.b32.xlu1 %v6616_v25, %s6495_s26 }
 0x334   :  { %v395_v47 = vpop.permute.xlu0 %394  ;;  %v318_v48 = vpop.permute.xlu1 %317 }
 0x335   :  { %6020 = vmatpush3.msra.mxu1 %v318_v48  ;;  %6025 = vmatpush3.msra.mxu0 %v395_v47 }
 0x336   :  { %6029 = vmatprep.subr.mxu1 %v6489_v2  ;;  %6034 = vmatprep.subr.mxu0 %v6489_v2 }
 0x338   :  { %v552_v49 = vpop.permute.xlu1 %551  ;;  %v474_v53 = vpop.permute.xlu0 %473 }
 0x33c   :  { %v472_v57 = vpop.permute.xlu0 %471 }
 0x377   :  { %v308_v50 = vpop.xlane.xlu1 %307 }
 0x378   :  { %6389 = vrcp.f32 %v308_v50 }
 0x37b   :  { %v311_v51 = vpop.xlane.xlu1 %310 }
 0x37c   :  { %6391 = vrcp.f32 %v311_v51 }
 0x37f   :  { %v550_v58 = vpop.permute.xlu1 %549 }
 0x382   :  { %v6390_v52 = vpop.eup %6389 }
 0x383   :  { %v314_v54 = vmul.f32 %v6390_v52, %v6386_v43 }
 0x385   :  { %6022 = vmatmul.mubr.msk.f32.vlgmr.msra.gmra.mrb[4].mxu1 %vm140_vm2, %v314_v54 }
 0x386   :  { %v6392_v55 = vpop.eup %6391  ;;  %6030 = vmatpush3.xpose.msk.msra.mxu1 %vm140_vm2, %v474_v53  ;;  %6031 = vmatprep.mubr.msk.f32.mxu1 %vm6490_vm0, %v6489_v2 }
 0x387   :  { %v315_v56 = vmul.f32 %v6392_v55, %v6388_v45  ;;  %6039 = vmatprep.subr.mxu1 %v6489_v2 }
 0x389   :  { %6027 = vmatmul.mubr.msk.f32.vlgmr.msra.gmra.mrb[4].mxu0 %vm140_vm2, %v315_v56  ;;  %6032 = vmatmul.mubr.msk.f32.vlgmr.msra.gmra.mrb[6].mxu1 %vm140_vm2, %v472_v57 }
 0x38a   :  { %6035 = vmatpush3.xpose.msk.msra.mxu0 %vm140_vm2, %v552_v49  ;;  %6036 = vmatprep.mubr.msk.f32.mxu0 %vm6490_vm0, %v6489_v2 }
 0x38b   :  { %6044 = vmatprep.subr.mxu0 %v6489_v2  ;;  %6041 = vmatprep.mubr.msk.f32.mxu1 %vm6490_vm0, %v6489_v2 }
 0x38d   :  { %6037 = vmatmul.mubr.msk.f32.vlgmr.msra.gmra.mrb[6].mxu0 %vm140_vm2, %v550_v58 }
 0x38e   :  { %6046 = vmatprep.mubr.msk.f32.mxu0 %vm6490_vm0, %v6489_v2 }
 0x458   :  { %v6663_v59 = vpop.f32.mrb[4].mxu1 }
 0x459   :  { %v6023_v60 = vpop.f32.mrb[5].mxu1 }
 0x45c   :  { %v6665_v61 = vpop.f32.mrb[4].mxu0  ;;  %v545_v62 = vpop.f32.mrb[6].mxu1 }
 0x45d   :  { %v470_v63 = vpack.c.bf16 %v6665_v61, %v6663_v59  ;;  %v6028_v0 = vpop.f32.mrb[5].mxu0  ;;  %v6033_v1 = vpop.f32.mrb[7].mxu1  ;;  %v627_v3 = vsel %vm140_vm2, %v545_v62, -inf }
 0x45e   :  { %628 = vmax.xlane.f32.xlu0 %v627_v3 }
 0x460   :  { %v623_v4 = vpop.f32.mrb[6].mxu0 }
 0x461   :  { %v6038_v5 = vpop.f32.mrb[7].mxu0  ;;  %v630_v6 = vsel %vm140_vm2, %v623_v4, -inf }
 0x462   :  { %631 = vmax.xlane.f32.xlu1 %v630_v6 }
 0x473   :  { %649 = vrot.lane.b32.xlu1 %v6629_v36, %s6496_s27 }
 0x477   :  { %977 = vrot.lane.b32.xlu1 %v6597_v16, %s6497_s28 }
 0x47b   :  { %975 = vrot.lane.b32.xlu1 %v6616_v25, %s6498_s29 }
 0x47f   :  { %897 = vrot.lane.b32.xlu1 %v6608_v22, %s6498_s29 }
 0x483   :  { %1279 = vrot.lane.b32.xlu1 %v6595_v13, %s6499_s30 }
 0x4eb   :  { %v629_v9 = vpop.xlane.xlu0 %628 }
 0x4ec   :  { %v633_v10 = vsub.f32 %v545_v62, %v629_v9 }
 0x4ee   :  { %v635_v11 = vmul.f32 1.442695, %v633_v10 }
 0x4ef   :  { %v632_v12 = vpop.xlane.xlu1 %631 }
 0x4f0   :  { %6393 = vpow2.f32 %v635_v11  ;;  %v634_v14 = vsub.f32 %v623_v4, %v632_v12 }
 0x4f2   :  { %v637_v15 = vmul.f32 1.442695, %v634_v14 }
 0x4f3   :  { %v650_v17 = vpop.permute.xlu1 %649 }
 0x4f4   :  { %6395 = vpow2.f32 %v637_v15  ;;  %6040 = vmatpush3.msra.mxu1 %v650_v17 }
 0x4f5   :  { %6049 = vmatprep.subr.bf16.mxu1 %v6489_v2 }
 0x4f7   :  { %v978_v38 = vpop.permute.xlu1 %977 }
 0x4fa   :  { %v6394_v19 = vpop.eup %6393 }
 0x4fb   :  { %v639_v20 = vsel %vm140_vm2, %v6394_v19, 0.0  ;;  %v976_v39 = vpop.permute.xlu1 %975 }
 0x4fc   :  { %640 = vadd.xlane.f32.xlu0 %v639_v20 }
 0x4fe   :  { %v6396_v21 = vpop.eup %6395 }
 0x4ff   :  { %v642_v23 = vsel %vm140_vm2, %v6396_v21, 0.0  ;;  %v898_v50 = vpop.permute.xlu1 %897 }
 0x500   :  { %643 = vadd.xlane.f32.xlu0 %v642_v23 }
 0x503   :  { %v1280_v4 = vpop.permute.xlu1 %1279 }
 0x516   :  { %725 = vrot.lane.b32.xlu0 %v6631_v37, %s6496_s27 }
 0x51a   :  { %899 = vrot.lane.b32.xlu0 %v6595_v13, %s6497_s28  ;;  %v131_v13 = vld [vmem:[%s7669_s5] sm:$0xf] }
 0x51b   :  { %v854_v35 = vsel %vm805_vm3, %v131_v13, 0 }
 0x589   :  { %v641_v24 = vpop.xlane.xlu0 %640 }
 0x58a   :  { %6397 = vrcp.f32 %v641_v24 }
 0x58d   :  { %v644_v26 = vpop.xlane.xlu0 %643 }
 0x58e   :  { %6399 = vrcp.f32 %v644_v26 }
 0x591   :  { %v726_v27 = vpop.permute.xlu0 %725 }
 0x592   :  { %6045 = vmatpush3.msra.mxu0 %v726_v27 }
 0x593   :  { %6055 = vmatprep.subr.bf16.mxu0 %v6489_v2 }
 0x594   :  { %v6398_v29 = vpop.eup %6397 }
 0x595   :  { %v647_v30 = vmul.f32 %v6398_v29, %v6394_v19  ;;  %v900_v45 = vpop.permute.xlu0 %899 }
 0x597   :  { %6042 = vmatmul.mubr.msk.f32.vlgmr.msra.gmra.mrb[8].mxu1 %vm140_vm2, %v647_v30 }
 0x598   :  { %v6400_v33 = vpop.eup %6399  ;;  %6050 = vmatpush3.bf16.msra.mxu1 %v807_v31  ;;  %6051 = vmatprep.mubr.msk.bf16.mxu1 %vm6490_vm0, %v6489_v2 }
 0x599   :  { %v648_v34 = vmul.f32 %v6400_v33, %v6396_v21  ;;  %6061 = vmatprep.subr.mxu1 %v6489_v2 }
 0x59b   :  { %6047 = vmatmul.mubr.msk.f32.vlgmr.msra.gmra.mrb[8].mxu0 %vm140_vm2, %v648_v34  ;;  %v133_v34 = vld [vmem:[%s7669_s5 + $0x8] sm:$0xf] }
 0x59c   :  { %6056 = vmatpush3.bf16.msra.mxu0 %v854_v35  ;;  %6057 = vmatprep.mubr.msk.bf16.mxu0 %vm6490_vm0, %v6489_v2  ;;  %v1232_v35 = vsel %vm805_vm3, %v133_v34, 0 }
 0x59d   :  { %6066 = vmatprep.subr.mxu0 %v6489_v2 }
 0x59f   :  { %6058 = vmatmul.mubr.msk.bf16.vlgmr.msra.gmra.mrb[12].mxu0 %vm140_vm2, %v470_v63 }
 0x5a0   :  { %6068 = vmatprep.mubr.msk.f32.mxu0 %vm6490_vm0, %v6489_v2 }
 0x5a5   :  { %6067 = vmatpush3.xpose.msk.msra.mxu0 %vm140_vm2, %v978_v38 }
 0x5a6   :  { %6076 = vmatprep.subr.mxu0 %v6489_v2 }
 0x5a8   :  { %6069 = vmatmul.mubr.msk.f32.vlgmr.msra.gmra.mrb[10].mxu0 %vm140_vm2, %v976_v39 }
 0x5a9   :  { %6078 = vmatprep.mubr.msk.f32.mxu0 %vm6490_vm0, %v6489_v2 }
 0x66a   :  { %v721_v40 = vpop.f32.mrb[8].mxu1 }
 0x66b   :  { %v6043_v41 = vpop.f32.mrb[9].mxu1 }
 0x66e   :  { %v797_v42 = vpop.f32.mrb[8].mxu0 }
 0x66f   :  { %v801_v43 = vpack.c.bf16 %v797_v42, %v721_v40  ;;  %v6048_v44 = vpop.f32.mrb[9].mxu0 }
 0x671   :  { %6052 = vmatmul.mubr.msk.bf16.vlgmr.msra.gmra.mrb[12].mxu1 %vm140_vm2, %v801_v43 }
 0x672   :  { %6062 = vmatpush3.xpose.msk.msra.mxu1 %vm140_vm2, %v900_v45  ;;  %v890_v46 = vpop.f32.mrb[12].mxu0  ;;  %6063 = vmatprep.mubr.msk.f32.mxu1 %vm6490_vm0, %v6489_v2 }
 0x673   :  { %v6059_v47 = vpop.f32.mrb[13].mxu0  ;;  %6071 = vmatprep.subr.mxu1 %v6489_v2 }
 0x674   :  { %v893_v48 = vpop.f32.mrb[14].mxu0 }
 0x675   :  { %v6060_v49 = vpop.f32.mrb[15].mxu0 }
 0x679   :  { %6064 = vmatmul.mubr.msk.f32.vlgmr.msra.gmra.mrb[10].mxu1 %vm140_vm2, %v898_v50 }
 0x67a   :  { %6073 = vmatprep.mubr.msk.f32.mxu1 %vm6490_vm0, %v6489_v2 }
 0x67b   :  { %v1049_v51 = vpop.f32.mrb[10].mxu0 }
 0x67c   :  { %v6070_v52 = vpop.f32.mrb[11].mxu0  ;;  %v1056_v53 = vsel %vm140_vm2, %v1049_v51, -inf }
 0x67d   :  { %1057 = vmax.xlane.f32.xlu0 %v1056_v53 }
 0x693   :  { %1151 = vrot.lane.b32.xlu0 %v6631_v37, %s6500_s15 }
 0x697   :  { %1277 = vrot.lane.b32.xlu0 %v6608_v22, %s6501_s16 }
 0x69b   :  { %1355 = vrot.lane.b32.xlu0 %v6616_v25, %s6501_s16 }
 0x70a   :  { %v1058_v54 = vpop.xlane.xlu0 %1057 }
 0x70b   :  { %v1060_v55 = vsub.f32 %v1049_v51, %v1058_v54 }
 0x70d   :  { %v1063_v56 = vmul.f32 1.442695, %v1060_v55 }
 0x70e   :  { %v1152_v57 = vpop.permute.xlu0 %1151 }
 0x70f   :  { %6401 = vpow2.f32 %v1063_v56  ;;  %6077 = vmatpush3.msra.mxu0 %v1152_v57  ;;  %v134_v57 = vld [vmem:[%s7669_s5 + $0xc] sm:$0xf] }
 0x710   :  { %6087 = vmatprep.subr.mxu0 %v6489_v2 }
 0x719   :  { %v6402_v58 = vpop.eup %6401 }
 0x71a   :  { %v1068_v59 = vsel %vm140_vm2, %v6402_v58, 0.0 }
 0x71b   :  { %1069 = vadd.xlane.f32.xlu1 %v1068_v59 }
 0x72c   :  { %1357 = vrot.lane.b32.xlu1 %v6597_v16, %s6499_s30  ;;  %v1278_v16 = vpop.permute.xlu0 %1277 }
 0x730   :  { %v1356_v11 = vpop.permute.xlu0 %1355 }
 0x744   :  { %v843_v60 = vpop.f32.mrb[12].mxu1 }
 0x745   :  { %v6730_v22 = vadd.f32 %v890_v46, %v843_v60  ;;  %v6053_v61 = vpop.f32.mrb[13].mxu1 }
 0x746   :  { %v846_v25 = vpop.f32.mrb[14].mxu1 }
 0x747   :  { %v6732_v62 = vadd.f32 %v893_v48, %v846_v25  ;;  %v6054_v63 = vpop.f32.mrb[15].mxu1 }
 0x74c   :  { %v971_v0 = vpop.f32.mrb[10].mxu1 }
 0x74d   :  { %v6065_v1 = vpop.f32.mrb[11].mxu1  ;;  %v1053_v3 = vsel %vm140_vm2, %v971_v0, -inf }
 0x750   :  { %1054 = vmax.xlane.f32.xlu1 %v1053_v3 }
 0x7a8   :  { %v1070_v5 = vpop.xlane.xlu1 %1069 }
 0x7a9   :  { %6403 = vrcp.f32 %v1070_v5 }
 0x7ac   :  { %v1358_v10 = vpop.permute.xlu1 %1357 }
 0x7b3   :  { %v6404_v6 = vpop.eup %6403 }
 0x7b4   :  { %v1074_v9 = vmul.f32 %v6404_v6, %v6402_v58  ;;  %v1612_v58 = vsel %vm805_vm3, %v134_v57, 0 }
 0x7b6   :  { %6079 = vmatmul.mubr.msk.f32.vlgmr.msra.gmra.mrb[16].mxu0 %vm140_vm2, %v1074_v9  ;;  %v6790_v9 = vsub.s32 3, %v6581_v7 }
 0x7b7   :  { %6088 = vmatpush3.xpose.msk.msra.mxu0 %vm140_vm2, %v1280_v4  ;;  %6089 = vmatprep.mubr.msk.f32.mxu0 %vm6490_vm0, %v6489_v2 }
 0x7b8   :  { %6092 = vmatprep.subr.mxu0 %v6489_v2 }
 0x7ba   :  { %6090 = vmatmul.mubr.msk.f32.vlgmr.msra.gmra.mrb[18].mxu0 %vm140_vm2, %v1278_v16 }
 0x7bb   :  { %6093 = vmatpush3.xpose.msk.msra.mxu0 %vm140_vm2, %v1358_v10  ;;  %6094 = vmatprep.mubr.msk.f32.mxu0 %vm6490_vm0, %v6489_v2 }
 0x7bc   :  { %6102 = vmatprep.subr.mxu0 %v6489_v2 }
 0x7be   :  { %6095 = vmatmul.mubr.msk.f32.vlgmr.msra.gmra.mrb[20].mxu0 %vm140_vm2, %v1356_v11 }
 0x7bf   :  { %6104 = vmatprep.mubr.msk.f32.mxu0 %vm6490_vm0, %v6489_v2 }
 0x7dd   :  { %v1055_v12 = vpop.xlane.xlu1 %1054 }
 0x7de   :  { %v1059_v14 = vsub.f32 %v971_v0, %v1055_v12 }
 0x7e0   :  { %v1061_v15 = vmul.f32 1.442695, %v1059_v14 }
 0x7e2   :  { %6405 = vpow2.f32 %v1061_v15 }
 0x7ec   :  { %v6406_v17 = vpop.eup %6405 }
 0x7ed   :  { %v1065_v19 = vsel %vm140_vm2, %v6406_v17, 0.0 }
 0x7ee   :  { %1066 = vadd.xlane.f32.xlu0 %v1065_v19 }
 0x804   :  { %1075 = vrot.lane.b32.xlu0 %v6629_v36, %s6500_s15 }
 0x808   :  { %1531 = vrot.lane.b32.xlu0 %v6631_v37, %s6502_s17 }
 0x87b   :  { %v1067_v20 = vpop.xlane.xlu0 %1066 }
 0x87c   :  { %6407 = vrcp.f32 %v1067_v20  ;;  %v6462_v20 = vld [vmem:[%s7664_s0] sm:$0xff] }
 0x87f   :  { %v1076_v21 = vpop.permute.xlu0 %1075 }
 0x880   :  { %6072 = vmatpush3.msra.mxu1 %v1076_v21 }
 0x881   :  { %6081 = vmatprep.subr.bf16.mxu1 %v6489_v2 }
 0x883   :  { %v1532_v23 = vpop.permute.xlu0 %1531 }
 0x884   :  { %6103 = vmatpush3.msra.mxu0 %v1532_v23 }
 0x885   :  { %6113 = vmatprep.subr.bf16.mxu0 %v6489_v2 }
 0x886   :  { %v6408_v24 = vpop.eup %6407 }
 0x887   :  { %v1073_v26 = vmul.f32 %v6408_v24, %v6406_v17  ;;  %v6463_v24 = vld [vmem:[%s7664_s0 + $0x8] sm:$0xff] }
 0x889   :  { %6074 = vmatmul.mubr.msk.f32.vlgmr.msra.gmra.mrb[16].mxu1 %vm140_vm2, %v1073_v26  ;;  %v1223_v27 = vpop.f32.mrb[16].mxu0 }
 0x88a   :  { %v6080_v28 = vpop.f32.mrb[17].mxu0  ;;  %6083 = vmatprep.mubr.msk.bf16.mxu1 %vm6490_vm0, %v6489_v2  ;;  %6082 = vmatpush3.bf16.msra.mxu1 %v1232_v35 }
 0x88b   :  { %6097 = vmatprep.subr.mxu1 %v6489_v2 }
 0x88d   :  { %v1351_v37 = vpop.f32.mrb[18].mxu0 }
 0x88e   :  { %v6091_v29 = vpop.f32.mrb[19].mxu0  ;;  %v1433_v30 = vsel %vm140_vm2, %v1351_v37, -inf }
 0x88f   :  { %1434 = vmax.xlane.f32.xlu1 %v1433_v30 }
 0x891   :  { %v1429_v31 = vpop.f32.mrb[20].mxu0 }
 0x892   :  { %v6096_v13 = vpop.f32.mrb[21].mxu0  ;;  %v1436_v33 = vsel %vm140_vm2, %v1429_v31, -inf }
 0x893   :  { %1437 = vmax.xlane.f32.xlu1 %v1436_v33 }
 0x91c   :  { %v1435_v38 = vpop.xlane.xlu1 %1434 }
 0x91d   :  { %v1439_v39 = vsub.f32 %v1351_v37, %v1435_v38 }
 0x91f   :  { %v1441_v40 = vmul.f32 1.442695, %v1439_v39  ;;  %v6253_v39 = vld [vmem:[%s7668_s4] sm:$0xff]  }
 0x920   :  { %v1438_v41 = vpop.xlane.xlu1 %1437 }
 0x921   :  { %6409 = vpow2.f32 %v1441_v40  ;;  %v1440_v42 = vsub.f32 %v1429_v31, %v1438_v41  ;;  %v6254_v40 = vld [vmem:[%s7668_s4 + $0x8] sm:$0xff]   ;;  %v39_v41 = vld [vmem:[%s7665_s1] sm:$0xff] }
 0x923   :  { %v1443_v43 = vmul.f32 1.442695, %v1440_v42  ;;  %v40_v42 = vld [vmem:[%s7665_s1 + $0x8] sm:$0xff] }
 0x925   :  { %6411 = vpow2.f32 %v1443_v43  ;;  %v1704_v43 = vpack.c.bf16 %v40_v42, %v39_v41 }
 0x92b   :  { %v6410_v44 = vpop.eup %6409 }
 0x92c   :  { %v1445_v45 = vsel %vm140_vm2, %v6410_v44, 0.0 }
 0x92d   :  { %1446 = vadd.xlane.f32.xlu1 %v1445_v45  ;;  %v6256_v45 = vld [vmem:[%s7667_s3 + $0x8] sm:$0xff]  }
 0x92f   :  { %v6412_v46 = vpop.eup %6411 }
 0x930   :  { %v1448_v47 = vsel %vm140_vm2, %v6412_v46, 0.0 }
 0x931   :  { %1449 = vadd.xlane.f32.xlu1 %v1448_v47 }
 0x942   :  { %1455 = vrot.lane.b32.xlu1 %v6629_v36, %s6502_s17 }
 0x95c   :  { %v1147_v48 = vpop.f32.mrb[16].mxu1 }
 0x95d   :  { %v1227_v49 = vpack.c.bf16 %v1223_v27, %v1147_v48  ;;  %v6075_v50 = vpop.f32.mrb[17].mxu1 }
 0x95f   :  { %6084 = vmatmul.mubr.msk.bf16.vlgmr.msra.gmra.mrb[20].mxu1 %vm140_vm2, %v1227_v49 }
 0x960   :  { %6099 = vmatprep.mubr.msk.f32.mxu1 %vm6490_vm0, %v6489_v2 }
 0x9ba   :  { %v1447_v51 = vpop.xlane.xlu1 %1446 }
 0x9bb   :  { %6413 = vrcp.f32 %v1447_v51 }
 0x9be   :  { %v1450_v52 = vpop.xlane.xlu1 %1449 }
 0x9bf   :  { %6415 = vrcp.f32 %v1450_v52 }
 0x9c2   :  { %v1456_v53 = vpop.permute.xlu1 %1455 }
 0x9c3   :  { %6098 = vmatpush3.msra.mxu1 %v1456_v53 }
 0x9c4   :  { %6107 = vmatprep.subr.bf16.mxu1 %v6489_v2 }
 0x9c5   :  { %v6414_v54 = vpop.eup %6413 }
 0x9c6   :  { %v1453_v55 = vmul.f32 %v6414_v54, %v6410_v44  ;;  %v6255_v44 = vld [vmem:[%s7667_s3] sm:$0xff]   ;;  %v6843_v54 = vld [vmem:[%s7673_s9 + $0x8] sm:$0x7f] }
 0x9c8   :  { %6100 = vmatmul.mubr.msk.f32.vlgmr.msra.gmra.mrb[18].mxu1 %vm140_vm2, %v1453_v55 }
 0x9c9   :  { %v6416_v36 = vpop.eup %6415  ;;  %6109 = vmatprep.mubr.msk.bf16.mxu1 %vm6490_vm0, %v6489_v2  ;;  %6108 = vmatpush3.bf16.msra.mxu1 %v1612_v58 }
 0x9ca   :  { %v1454_v56 = vmul.f32 %v6416_v36, %v6412_v46  ;;  %6121 = vmatprep.subr.bf16.mxu1 %v6489_v2  ;;  %v6835_v46 = vsub.s32 6, %v6581_v7  ;;  %v1695_v36 = vrot.slane %v6843_v54, %v6587_v8 }
 0x9cc   :  { %6105 = vmatmul.mubr.msk.f32.vlgmr.msra.gmra.mrb[22].mxu0 %vm140_vm2, %v1454_v56 }
 0x9cd   :  { %6117 = vmatprep.mubr.msk.bf16.mxu0 %vm6490_vm0, %v6489_v2  ;;  %6114 = vmatpush3.bf16.msra.mxu0 %v6253_v39 }
 0x9ce   :  { %6115 = vmatprep.subr.bf16.mxu0 %v6489_v2 }
 0x9d1   :  { %6116 = vmatpush3.bf16.msra.mxu0 %v6254_v40 }
 0x9d2   :  { %6129 = vmatprep.subr.mxu0 %v6489_v2 }
 0x9d4   :  { %6118 = vmatmul.mubr.msk.bf16.vlgmr.msra.gmra.mrb[24].mxu0 %vm60_vm1, %v1704_v43 }
 0x9d5   :  { %6131 = vmatprep.mubr.msk.f32.mxu0 %vm6490_vm0, %v6489_v2 }
 0xa32   :  { %v1268_v59 = vpop.f32.mrb[20].mxu1 }
 0xa33   :  { %v1275_v60 = vadd.f32 %v1268_v59, %v6730_v22  ;;  %v6085_v61 = vpop.f32.mrb[21].mxu1  ;;  %v6795_v22 = vld [vmem:[%s7673_s9] sm:$0xff] }
 0xa34   :  { %v1271_v25 = vpop.f32.mrb[22].mxu1  ;;  %v1774_v47 = vrot.slane %v6795_v22, %v6835_v46 }
 0xa35   :  { %v1276_v63 = vadd.f32 %v1271_v25, %v6732_v62  ;;  %v6086_v0 = vpop.f32.mrb[23].mxu1  ;;  %v1660_v62 = vrot.slane %v6795_v22, %v6790_v9 }
 0xa9b   :  { %v1527_v1 = vpop.f32.mrb[18].mxu1 }
 0xa9c   :  { %v6101_v3 = vpop.f32.mrb[19].mxu1 }
 0xa9f   :  { %v1603_v4 = vpop.f32.mrb[22].mxu0 }
 0xaa0   :  { %v1607_v5 = vpack.c.bf16 %v1603_v4, %v1527_v1  ;;  %v6106_v6 = vpop.f32.mrb[23].mxu0  ;;  %v6859_v1 = vsub.s32 5, %v6581_v7 }
 0xaa2   :  { %6110 = vmatmul.mubr.msk.bf16.vlgmr.msra.gmra.mrb[24].mxu1 %vm140_vm2, %v1607_v5  ;;  %v1768_v3 = vrot.slane %v6795_v22, %v6859_v1 }
 0xaa3   :  { %6125 = vmatprep.mubr.msk.bf16.mxu1 %vm6490_vm0, %v6489_v2  ;;  %6122 = vmatpush3.bf16.msra.mxu1 %v6255_v44 }
 0xaa4   :  { %6123 = vmatprep.subr.bf16.mxu1 %v6489_v2 }
 0xaa7   :  { %6124 = vmatpush3.bf16.msra.mxu1 %v6256_v45  ;;  %v1758_v4 = vpop.f32.mrb[24].mxu0 }
 0xaa8   :  { %6134 = vmatprep.subr.mxu1 %v6489_v2  ;;  %v6863_v6 = vadd.f32 %v1768_v3, %v1758_v4 }
 0xaaa   :  { %6130 = vmatpush3.xpose.msk.msra.mxu0 %vm140_vm2, %v6863_v6 }
 0xaab   :  { %6139 = vmatprep.subr.mxu0 %v6489_v2 }
 0xb75   :  { %v1648_v16 = vpop.f32.mrb[24].mxu1 }
 0xb76   :  { %v1655_v10 = vadd.f32 %v1648_v16, %v1275_v60  ;;  %v6111_v11 = vpop.f32.mrb[25].mxu1  ;;  %v1701_v60 = vrot.slane %v6843_v54, %v6626_v32 }
 0xb77   :  { %v1651_v12 = vpop.f32.mrb[26].mxu1 }
 0xb78   :  { %v1661_v14 = vadd.f32 %v1660_v62, %v1655_v10  ;;  %v1656_v15 = vadd.f32 %v1651_v12, %v1276_v63  ;;  %v6112_v17 = vpop.f32.mrb[27].mxu1 }
 0xb7a   :  { %v1662_v19 = vadd.f32 %v1660_v62, %v1656_v15  ;;  %v1663_v21 = vadd.f32 %v6462_v20, %v1661_v14  ;;  %v6119_v62 = vpop.f32.mrb[25].mxu0  ;;  %v6882_v14 = vsub.s32 4, %v6581_v7 }
 0xb7b   :  { %v1761_v16 = vpop.f32.mrb[26].mxu0 }
 0xb7c   :  { %v1665_v23 = vsel %vm60_vm1, %v1663_v21, 0.0  ;;  %v1664_v26 = vadd.f32 %v6463_v24, %v1662_v19  ;;  %v6865_v10 = vadd.f32 %v1768_v3, %v1761_v16  ;;  %v6120_v12 = vpop.f32.mrb[27].mxu0  ;;  %v1789_v15 = vrot.slane %v6795_v22, %v6882_v14 }
 0xb7d   :  { %1666 = vadd.xlane.f32.xlu0 %v1665_v23 }
 0xb7e   :  { %v1668_v27 = vsel %vm60_vm1, %v1664_v26, 0.0 }
 0xb7f   :  { %1669 = vadd.xlane.f32.xlu1 %v1668_v27 }
 0xb90   :  { %1776 = vrot.lane.b32.xlu1 %v1774_v47, %s6491_s2 }
 0xc0a   :  { %v1667_v28 = vpop.xlane.xlu0 %1666 }
 0xc0b   :  { %v1672_v37 = vmul.f32 0.03125, %v1667_v28 }
 0xc0c   :  { %v1670_v29 = vpop.xlane.xlu1 %1669 }
 0xc0d   :  { %v1674_v30 = vsub.f32 %v1663_v21, %v1672_v37  ;;  %v1673_v31 = vmul.f32 0.03125, %v1670_v29 }
 0xc0f   :  { %v1675_v13 = vsub.f32 %v1664_v26, %v1673_v31  ;;  %v1676_v33 = vmul.f32 %v1674_v30, %v1674_v30 }
 0xc10   :  { %v1777_v5 = vpop.permute.xlu1 %1776 }
 0xc11   :  { %v1678_v34 = vsel %vm60_vm1, %v1676_v33, 0.0  ;;  %v1677_v35 = vmul.f32 %v1675_v13, %v1675_v13  ;;  %v6867_v11 = vadd.f32 %v1777_v5, %v1761_v16 }
 0xc12   :  { %1679 = vadd.xlane.f32.xlu0 %v1678_v34  ;;  %v6903_v34 = vadd.f32 %v1777_v5, %v1758_v4 }
 0xc13   :  { %v1681_v38 = vsel %vm60_vm1, %v1677_v35, 0.0  ;;  %2105 = vrot.lane.b32.xlu1 %v6867_v11, %s6492_s23 }
 0xc16   :  { %1682 = vadd.xlane.f32.xlu0 %v1681_v38 }
 0xc17   :  { %2184 = vrot.lane.b32.xlu1 %v6863_v6, %s6495_s26 }
 0xc1b   :  { %2262 = vrot.lane.b32.xlu1 %v6865_v10, %s6495_s26 }
 0xc85   :  { %v2106_v28 = vpop.permute.xlu1 %2105 }
 0xc9f   :  { %v1680_v48 = vpop.xlane.xlu0 %1679 }
 0xca0   :  { %v1684_v49 = vmul.f32 0.03125, %v1680_v48 }
 0xca2   :  { %v1686_v50 = vadd.f32 1e-05, %v1684_v49 }
 0xca3   :  { %v1683_v51 = vpop.xlane.xlu0 %1682 }
 0xca4   :  { %6417 = vrsqrt.f32 %v1686_v50  ;;  %v1685_v52 = vmul.f32 0.03125, %v1683_v51  ;;  %v2185_v51 = vpop.permute.xlu1 %2184 }
 0xca6   :  { %v1687_v53 = vadd.f32 1e-05, %v1685_v52 }
 0xca8   :  { %6419 = vrsqrt.f32 %v1687_v53  ;;  %v2263_v53 = vpop.permute.xlu1 %2262 }
 0xcae   :  { %v6418_v55 = vpop.eup %6417 }
 0xcaf   :  { %v1690_v56 = vmul.f32 %v6418_v55, %v1674_v30 }
 0xcb1   :  { %v1696_v58 = vmul.f32 %v1695_v36, %v1690_v56 }
 0xcb2   :  { %v6420_v57 = vpop.eup %6419 }
 0xcb3   :  { %v1691_v59 = vmul.f32 %v6420_v57, %v1675_v13  ;;  %v6849_v25 = vadd.f32 %v1701_v60, %v1696_v58 }
 0xcb5   :  { %v1697_v61 = vmul.f32 %v1695_v36, %v1691_v59 }
 0xcb7   :  { %v6851_v63 = vadd.f32 %v1701_v60, %v1697_v61 }
 0xcb9   :  { %v1781_v0 = vpack.c.bf16 %v6851_v63, %v6849_v25 }
 0xcbb   :  { %6126 = vmatmul.mubr.msk.bf16.vlgmr.msra.gmra.mrb[28].mxu1 %vm60_vm1, %v1781_v0 }
 0xcbc   :  { %6136 = vmatprep.mubr.msk.f32.mxu1 %vm6490_vm0, %v6489_v2  ;;  %6135 = vmatpush3.xpose.msk.msra.mxu1 %vm140_vm2, %v6865_v10 }
 0xcbd   :  { %6144 = vmatprep.subr.mxu1 %v6489_v2 }
 0xd8e   :  { %v1839_v17 = vpop.f32.mrb[28].mxu1 }
 0xd8f   :  { %v1840_v19 = vadd.f32 %v1839_v17, %v1789_v15  ;;  %v6127_v20 = vpop.f32.mrb[29].mxu1 }
 0xd90   :  { %v1842_v21 = vpop.f32.mrb[30].mxu1 }
 0xd91   :  { %v6886_v23 = vmul.f32 0.35355338, %v1840_v19  ;;  %v1843_v24 = vadd.f32 %v1842_v21, %v1789_v15  ;;  %v6128_v26 = vpop.f32.mrb[31].mxu1 }
 0xd93   :  { %v6888_v27 = vmul.f32 0.35355338, %v1843_v24  ;;  %6132 = vmatmul.mubr.msk.f32.vlgmr.msra.gmra.mrb[28].mxu0 %vm140_vm2, %v6886_v23  ;;  %2182 = vrot.lane.b32.xlu1 %v6886_v23, %s6495_s26 }
 0xd94   :  { %6141 = vmatprep.mubr.msk.f32.mxu0 %vm6490_vm0, %v6489_v2 }
 0xd95   :  { %6137 = vmatmul.mubr.msk.f32.vlgmr.msra.gmra.mrb[32].mxu1 %vm140_vm2, %v6888_v27 }
 0xd96   :  { %6145 = vmatpush3.msra.mxu1 %v2106_v28  ;;  %6146 = vmatprep.mubr.msk.f32.mxu1 %vm6490_vm0, %v6489_v2 }
 0xd97   :  { %6154 = vmatprep.subr.mxu1 %v6489_v2 }
 0xe05   :  { %v2183_v57 = vpop.permute.xlu1 %2182 }
 0xe66   :  { %v1925_v37 = vpop.f32.mrb[28].mxu0 }
 0xe67   :  { %v6133_v29 = vpop.f32.mrb[29].mxu0  ;;  %v2005_v30 = vsel %vm140_vm2, %v1925_v37, -inf }
 0xe68   :  { %v2001_v31 = vpop.f32.mrb[32].mxu1  ;;  %2006 = vmax.xlane.f32.xlu0 %v2005_v30 }
 0xe69   :  { %v6138_v13 = vpop.f32.mrb[33].mxu1  ;;  %v2008_v33 = vsel %vm140_vm2, %v2001_v31, -inf }
 0xe6c   :  { %2009 = vmax.xlane.f32.xlu0 %v2008_v33 }
 0xe82   :  { %2028 = vrot.lane.b32.xlu0 %v6903_v34, %s6492_s23 }
 0xef5   :  { %v2007_v35 = vpop.xlane.xlu0 %2006 }
 0xef6   :  { %v2011_v38 = vsub.f32 %v1925_v37, %v2007_v35 }
 0xef8   :  { %v2013_v39 = vmul.f32 1.442695, %v2011_v38  ;;  %v5537_v38 = vld [vmem:[%s7669_s5 + $0x14] sm:$0xf] }
 0xef9   :  { %v2010_v40 = vpop.xlane.xlu0 %2009 }
 0xefa   :  { %6421 = vpow2.f32 %v2013_v39  ;;  %v2012_v41 = vsub.f32 %v2001_v31, %v2010_v40 }
 0xefc   :  { %v2015_v42 = vmul.f32 1.442695, %v2012_v41  ;;  %v2517_v41 = vsel %vm805_vm3, %v5537_v38, 0 }
 0xefd   :  { %v2029_v43 = vpop.permute.xlu0 %2028 }
 0xefe   :  { %6423 = vpow2.f32 %v2015_v42  ;;  %6140 = vmatpush3.msra.mxu0 %v2029_v43  ;;  %v5536_v42 = vld [vmem:[%s7669_s5 + $0x10] sm:$0xf] }
 0xeff   :  { %6149 = vmatprep.subr.mxu0 %v6489_v2 }
 0xf04   :  { %v6422_v44 = vpop.eup %6421 }
 0xf05   :  { %v2017_v45 = vsel %vm140_vm2, %v6422_v44, 0.0 }
 0xf06   :  { %2018 = vadd.xlane.f32.xlu0 %v2017_v45  ;;  %v2564_v45 = vsel %vm805_vm3, %v5536_v42, 0 }
 0xf08   :  { %v6424_v47 = vpop.eup %6423 }
 0xf09   :  { %v2020_v48 = vsel %vm140_vm2, %v6424_v47, 0.0 }
 0xf0a   :  { %2021 = vadd.xlane.f32.xlu0 %v2020_v48 }
 0xf20   :  { %2260 = vrot.lane.b32.xlu0 %v6888_v27, %s6495_s26 }
 0xf93   :  { %v2019_v49 = vpop.xlane.xlu0 %2018 }
 0xf94   :  { %6425 = vrcp.f32 %v2019_v49 }
 0xf97   :  { %v2022_v50 = vpop.xlane.xlu0 %2021 }
 0xf98   :  { %6427 = vrcp.f32 %v2022_v50 }
 0xf9b   :  { %v2261_v58 = vpop.permute.xlu0 %2260 }
 0xf9e   :  { %v6426_v52 = vpop.eup %6425 }
 0xf9f   :  { %v2025_v55 = vmul.f32 %v6426_v52, %v6422_v44 }
 0xfa1   :  { %6142 = vmatmul.mubr.msk.f32.vlgmr.msra.gmra.mrb[30].mxu0 %vm140_vm2, %v2025_v55 }
 0xfa2   :  { %v6428_v36 = vpop.eup %6427  ;;  %6150 = vmatpush3.xpose.msk.msra.mxu0 %vm140_vm2, %v2185_v51  ;;  %6151 = vmatprep.mubr.msk.f32.mxu0 %vm6490_vm0, %v6489_v2 }
 0xfa3   :  { %v2026_v56 = vmul.f32 %v6428_v36, %v6424_v47  ;;  %6159 = vmatprep.subr.mxu0 %v6489_v2 }
 0xfa5   :  { %6147 = vmatmul.mubr.msk.f32.vlgmr.msra.gmra.mrb[34].mxu1 %vm140_vm2, %v2026_v56  ;;  %6152 = vmatmul.mubr.msk.f32.vlgmr.msra.gmra.mrb[32].mxu0 %vm140_vm2, %v2183_v57 }
 0xfa6   :  { %6155 = vmatpush3.xpose.msk.msra.mxu1 %vm140_vm2, %v2263_v53  ;;  %6156 = vmatprep.mubr.msk.f32.mxu1 %vm6490_vm0, %v6489_v2 }
 0xfa7   :  { %6164 = vmatprep.subr.mxu1 %v6489_v2  ;;  %6161 = vmatprep.mubr.msk.f32.mxu0 %vm6490_vm0, %v6489_v2 }
 0xfa9   :  { %6157 = vmatmul.mubr.msk.f32.vlgmr.msra.gmra.mrb[36].mxu1 %vm140_vm2, %v2261_v58 }
 0xfaa   :  { %6166 = vmatprep.mubr.msk.f32.mxu1 %vm6490_vm0, %v6489_v2 }
0x1074   :  { %v2100_v59 = vpop.f32.mrb[30].mxu0 }
0x1075   :  { %v6143_v60 = vpop.f32.mrb[31].mxu0 }
0x1078   :  { %v2177_v61 = vpop.f32.mrb[34].mxu1  ;;  %v2256_v0 = vpop.f32.mrb[32].mxu0 }
0x1079   :  { %v2181_v3 = vpack.c.bf16 %v2177_v61, %v2100_v59  ;;  %v6148_v4 = vpop.f32.mrb[35].mxu1  ;;  %v6153_v5 = vpop.f32.mrb[33].mxu0  ;;  %v2338_v62 = vsel %vm140_vm2, %v2256_v0, -inf }
0x107a   :  { %2339 = vmax.xlane.f32.xlu1 %v2338_v62 }
0x107c   :  { %v2334_v16 = vpop.f32.mrb[36].mxu1 }
0x107d   :  { %v6158_v12 = vpop.f32.mrb[37].mxu1  ;;  %v2341_v15 = vsel %vm140_vm2, %v2334_v16, -inf }
0x107e   :  { %2342 = vmax.xlane.f32.xlu0 %v2341_v15 }
0x1107   :  { %v2340_v17 = vpop.xlane.xlu1 %2339 }
0x1108   :  { %v2344_v19 = vsub.f32 %v2256_v0, %v2340_v17 }
0x110a   :  { %v2346_v20 = vmul.f32 1.442695, %v2344_v19 }
0x110b   :  { %v2343_v21 = vpop.xlane.xlu0 %2342 }
0x110c   :  { %6429 = vpow2.f32 %v2346_v20  ;;  %v2345_v24 = vsub.f32 %v2334_v16, %v2343_v21 }
0x110e   :  { %v2348_v26 = vmul.f32 1.442695, %v2345_v24 }
0x1110   :  { %6431 = vpow2.f32 %v2348_v26 }
0x1116   :  { %v6430_v28 = vpop.eup %6429 }
0x1117   :  { %v2350_v37 = vsel %vm140_vm2, %v6430_v28, 0.0 }
0x1118   :  { %2351 = vadd.xlane.f32.xlu0 %v2350_v37 }
0x111a   :  { %v6432_v29 = vpop.eup %6431 }
0x111b   :  { %v2353_v30 = vsel %vm140_vm2, %v6432_v29, 0.0 }
0x111c   :  { %2354 = vadd.xlane.f32.xlu1 %v2353_v30 }
0x112d   :  { %2436 = vrot.lane.b32.xlu1 %v6867_v11, %s6494_s25 }
0x112e   :  { %2360 = vrot.lane.b32.xlu0 %v6903_v34, %s6494_s25 }
0x1131   :  { %2687 = vrot.lane.b32.xlu1 %v6865_v10, %s6498_s29 }
0x1132   :  { %2685 = vrot.lane.b32.xlu0 %v6888_v27, %s6498_s29 }
0x1135   :  { %2609 = vrot.lane.b32.xlu1 %v6863_v6, %s6498_s29 }
0x1136   :  { %2607 = vrot.lane.b32.xlu0 %v6886_v23, %s6498_s29 }
0x11a5   :  { %v2352_v31 = vpop.xlane.xlu0 %2351 }
0x11a6   :  { %6433 = vrcp.f32 %v2352_v31 }
0x11a9   :  { %v2361_v13 = vpop.permute.xlu0 %2360  ;;  %v2355_v33 = vpop.xlane.xlu1 %2354 }
0x11aa   :  { %6435 = vrcp.f32 %v2355_v33  ;;  %6160 = vmatpush3.msra.mxu0 %v2361_v13 }
0x11ab   :  { %6169 = vmatprep.subr.bf16.mxu0 %v6489_v2 }
0x11ad   :  { %v2437_v35 = vpop.permute.xlu1 %2436  ;;  %v2686_v48 = vpop.permute.xlu0 %2685 }
0x11ae   :  { %6165 = vmatpush3.msra.mxu1 %v2437_v35 }
0x11af   :  { %6175 = vmatprep.subr.bf16.mxu1 %v6489_v2 }
0x11b0   :  { %v6434_v39 = vpop.eup %6433 }
0x11b1   :  { %v2358_v40 = vmul.f32 %v6434_v39, %v6430_v28  ;;  %v2688_v47 = vpop.permute.xlu1 %2687  ;;  %v2608_v59 = vpop.permute.xlu0 %2607 }
0x11b3   :  { %6162 = vmatmul.mubr.msk.f32.vlgmr.msra.gmra.mrb[34].mxu0 %vm140_vm2, %v2358_v40 }
0x11b4   :  { %v6436_v43 = vpop.eup %6435  ;;  %6170 = vmatpush3.bf16.msra.mxu0 %v2517_v41  ;;  %6171 = vmatprep.mubr.msk.bf16.mxu0 %vm6490_vm0, %v6489_v2 }
0x11b5   :  { %v2359_v44 = vmul.f32 %v6436_v43, %v6432_v29  ;;  %6181 = vmatprep.subr.mxu0 %v6489_v2  ;;  %v2610_v55 = vpop.permute.xlu1 %2609 }
0x11b7   :  { %6167 = vmatmul.mubr.msk.f32.vlgmr.msra.gmra.mrb[38].mxu1 %vm140_vm2, %v2359_v44 }
0x11b8   :  { %6176 = vmatpush3.bf16.msra.mxu1 %v2564_v45  ;;  %6177 = vmatprep.mubr.msk.bf16.mxu1 %vm6490_vm0, %v6489_v2 }
0x11b9   :  { %6186 = vmatprep.subr.mxu1 %v6489_v2 }
0x11bb   :  { %6178 = vmatmul.mubr.msk.bf16.vlgmr.msra.gmra.mrb[40].mxu1 %vm140_vm2, %v2181_v3 }
0x11bc   :  { %6188 = vmatprep.mubr.msk.f32.mxu1 %vm6490_vm0, %v6489_v2 }
0x11c1   :  { %6187 = vmatpush3.xpose.msk.msra.mxu1 %vm140_vm2, %v2688_v47 }
0x11c2   :  { %6196 = vmatprep.subr.mxu1 %v6489_v2 }
0x11c4   :  { %6189 = vmatmul.mubr.msk.f32.vlgmr.msra.gmra.mrb[44].mxu1 %vm140_vm2, %v2686_v48 }
0x11c5   :  { %6198 = vmatprep.mubr.msk.f32.mxu1 %vm6490_vm0, %v6489_v2 }
0x1286   :  { %v2432_v49 = vpop.f32.mrb[34].mxu0 }
0x1287   :  { %v6163_v50 = vpop.f32.mrb[35].mxu0 }
0x128a   :  { %v2508_v51 = vpop.f32.mrb[38].mxu1 }
0x128b   :  { %v2512_v52 = vpack.c.bf16 %v2508_v51, %v2432_v49  ;;  %v6168_v53 = vpop.f32.mrb[39].mxu1 }
0x128c   :  { %v5538_v53 = vld [vmem:[%s7669_s5 + $0x18] sm:$0xf] }
0x128d   :  { %6172 = vmatmul.mubr.msk.bf16.vlgmr.msra.gmra.mrb[36].mxu0 %vm140_vm2, %v2512_v52 }
0x128e   :  { %6182 = vmatpush3.xpose.msk.msra.mxu0 %vm140_vm2, %v2610_v55  ;;  %v2600_v36 = vpop.f32.mrb[40].mxu1  ;;  %6183 = vmatprep.mubr.msk.f32.mxu0 %vm6490_vm0, %v6489_v2  ;;  %v2942_v55 = vsel %vm805_vm3, %v5538_v53, 0 }
0x128f   :  { %v6179_v56 = vpop.f32.mrb[41].mxu1  ;;  %6191 = vmatprep.subr.mxu0 %v6489_v2 }
0x1290   :  { %v2603_v57 = vpop.f32.mrb[42].mxu1 }
0x1291   :  { %v6180_v58 = vpop.f32.mrb[43].mxu1 }
0x1295   :  { %6184 = vmatmul.mubr.msk.f32.vlgmr.msra.gmra.mrb[40].mxu0 %vm140_vm2, %v2608_v59 }
0x1296   :  { %6193 = vmatprep.mubr.msk.f32.mxu0 %vm6490_vm0, %v6489_v2 }
0x1297   :  { %v2759_v60 = vpop.f32.mrb[44].mxu1 }
0x1298   :  { %v6190_v61 = vpop.f32.mrb[45].mxu1  ;;  %v2766_v0 = vsel %vm140_vm2, %v2759_v60, -inf }
0x1299   :  { %2767 = vmax.xlane.f32.xlu1 %v2766_v0 }
0x12aa   :  { %2989 = vrot.lane.b32.xlu1 %v6863_v6, %s6501_s16 }
0x12ae   :  { %2987 = vrot.lane.b32.xlu1 %v6886_v23, %s6501_s16 }
0x12b2   :  { %3065 = vrot.lane.b32.xlu1 %v6888_v27, %s6501_s16 }
0x1326   :  { %v2768_v3 = vpop.xlane.xlu1 %2767 }
0x1327   :  { %v2770_v4 = vsub.f32 %v2759_v60, %v2768_v3 }
0x1329   :  { %v2773_v5 = vmul.f32 1.442695, %v2770_v4 }
0x132a   :  { %v2990_v26 = vpop.permute.xlu1 %2989 }
0x132b   :  { %6437 = vpow2.f32 %v2773_v5 }
0x132e   :  { %v2988_v29 = vpop.permute.xlu1 %2987 }
0x1332   :  { %v3066_v30 = vpop.permute.xlu1 %3065 }
0x1335   :  { %v6438_v62 = vpop.eup %6437 }
0x1336   :  { %v2778_v16 = vsel %vm140_vm2, %v6438_v62, 0.0 }
0x1337   :  { %2779 = vadd.xlane.f32.xlu0 %v2778_v16 }
0x134d   :  { %2861 = vrot.lane.b32.xlu0 %v6867_v11, %s6497_s28 }
0x1351   :  { %3067 = vrot.lane.b32.xlu0 %v6865_v10, %s6501_s16 }
0x1360   :  { %v2553_v6 = vpop.f32.mrb[36].mxu0 }
0x1361   :  { %v6990_v12 = vadd.f32 %v2600_v36, %v2553_v6  ;;  %v6173_v23 = vpop.f32.mrb[37].mxu0 }
0x1362   :  { %v2556_v15 = vpop.f32.mrb[38].mxu0 }
0x1363   :  { %v6992_v27 = vadd.f32 %v2603_v57, %v2556_v15  ;;  %v6174_v17 = vpop.f32.mrb[39].mxu0 }
0x1368   :  { %v2681_v19 = vpop.f32.mrb[40].mxu0 }
0x1369   :  { %v6185_v20 = vpop.f32.mrb[41].mxu0  ;;  %v2763_v21 = vsel %vm140_vm2, %v2681_v19, -inf }
0x1370   :  { %2764 = vmax.xlane.f32.xlu0 %v2763_v21  ;;  %v5539_v21 = vld [vmem:[%s7669_s5 + $0x1c] sm:$0xf] }
0x1386   :  { %2785 = vrot.lane.b32.xlu0 %v6903_v34, %s6497_s28 }
0x138a   :  { %3241 = vrot.lane.b32.xlu0 %v6867_v11, %s6499_s30 }
0x13c4   :  { %v2780_v10 = vpop.xlane.xlu0 %2779 }
0x13c5   :  { %6439 = vrcp.f32 %v2780_v10  ;;  %v3322_v10 = vsel %vm805_vm3, %v5539_v21, 0  ;;  %v6503_v21 = vmov 0  }
0x13c8   :  { %v2862_v24 = vpop.permute.xlu0 %2861 }
0x13c9   :  { %6197 = vmatpush3.msra.mxu1 %v2862_v24 }
0x13ca   :  { %6207 = vmatprep.subr.mxu1 %v6489_v2 }
0x13cc   :  { %v3068_v11 = vpop.permute.xlu0 %3067 }
0x13cf   :  { %v6440_v28 = vpop.eup %6439 }
0x13d0   :  { %v2784_v37 = vmul.f32 %v6440_v28, %v6438_v62 }
0x13d2   :  { %6199 = vmatmul.mubr.msk.f32.vlgmr.msra.gmra.mrb[46].mxu1 %vm140_vm2, %v2784_v37 }
0x13d3   :  { %6208 = vmatpush3.xpose.msk.msra.mxu1 %vm140_vm2, %v2990_v26  ;;  %6209 = vmatprep.mubr.msk.f32.mxu1 %vm6490_vm0, %v6489_v2 }
0x13d4   :  { %6212 = vmatprep.subr.mxu1 %v6489_v2 }
0x13d6   :  { %6210 = vmatmul.mubr.msk.f32.vlgmr.msra.gmra.mrb[48].mxu1 %vm140_vm2, %v2988_v29 }
0x13d7   :  { %6213 = vmatpush3.xpose.msk.msra.mxu1 %vm140_vm2, %v3068_v11  ;;  %6214 = vmatprep.mubr.msk.f32.mxu1 %vm6490_vm0, %v6489_v2 }
0x13d8   :  { %6222 = vmatprep.subr.mxu1 %v6489_v2 }
0x13da   :  { %6215 = vmatmul.mubr.msk.f32.vlgmr.msra.gmra.mrb[50].mxu1 %vm140_vm2, %v3066_v30 }
0x13db   :  { %6224 = vmatprep.mubr.msk.f32.mxu1 %vm6490_vm0, %v6489_v2 }
0x13fd   :  { %v2765_v31 = vpop.xlane.xlu0 %2764 }
0x13fe   :  { %v2769_v13 = vsub.f32 %v2681_v19, %v2765_v31 }
0x1400   :  { %v2771_v33 = vmul.f32 1.442695, %v2769_v13 }
0x1401   :  { %v2786_v35 = vpop.permute.xlu0 %2785 }
0x1402   :  { %6441 = vpow2.f32 %v2771_v33  ;;  %6192 = vmatpush3.msra.mxu0 %v2786_v35  ;;  %v7045_v35 = vsub.s32 7, %v6581_v7 }
0x1403   :  { %6201 = vmatprep.subr.bf16.mxu0 %v6489_v2 }
0x1405   :  { %v3242_v38 = vpop.permute.xlu0 %3241 }
0x1406   :  { %6223 = vmatpush3.msra.mxu1 %v3242_v38  ;;  %v3370_v38 = vrot.slane %v6795_v22, %v7045_v35 }
0x140c   :  { %v6442_v39 = vpop.eup %6441 }
0x140d   :  { %v2775_v40 = vsel %vm140_vm2, %v6442_v39, 0.0 }
0x140e   :  { %2776 = vadd.xlane.f32.xlu1 %v2775_v40 }
0x149b   :  { %v2777_v41 = vpop.xlane.xlu1 %2776 }
0x149c   :  { %6443 = vrcp.f32 %v2777_v41 }
0x14a5   :  { %v2933_v42 = vpop.f32.mrb[46].mxu1 }
0x14a6   :  { %v6444_v43 = vpop.eup %6443  ;;  %v6200_v44 = vpop.f32.mrb[47].mxu1 }
0x14a7   :  { %v2783_v45 = vmul.f32 %v6444_v43, %v6442_v39 }
0x14a9   :  { %6194 = vmatmul.mubr.msk.f32.vlgmr.msra.gmra.mrb[42].mxu0 %vm140_vm2, %v2783_v45  ;;  %v3061_v47 = vpop.f32.mrb[48].mxu1 }
0x14aa   :  { %v6211_v48 = vpop.f32.mrb[49].mxu1  ;;  %v3143_v49 = vsel %vm140_vm2, %v3061_v47, -inf  ;;  %6203 = vmatprep.mubr.msk.bf16.mxu0 %vm6490_vm0, %v6489_v2  ;;  %6202 = vmatpush3.bf16.msra.mxu0 %v2942_v55 }
0x14ab   :  { %3144 = vmax.xlane.f32.xlu1 %v3143_v49  ;;  %6217 = vmatprep.subr.mxu0 %v6489_v2 }
0x14ad   :  { %v3139_v50 = vpop.f32.mrb[50].mxu1 }
0x14ae   :  { %v6216_v51 = vpop.f32.mrb[51].mxu1  ;;  %v3146_v52 = vsel %vm140_vm2, %v3139_v50, -inf }
0x14af   :  { %3147 = vmax.xlane.f32.xlu1 %v3146_v52 }
0x1538   :  { %v3145_v36 = vpop.xlane.xlu1 %3144 }
0x1539   :  { %v3149_v56 = vsub.f32 %v3061_v47, %v3145_v36 }
0x153b   :  { %v3151_v57 = vmul.f32 1.442695, %v3149_v56 }
0x153c   :  { %v3148_v58 = vpop.xlane.xlu1 %3147 }
0x153d   :  { %6445 = vpow2.f32 %v3151_v57  ;;  %v3150_v59 = vsub.f32 %v3139_v50, %v3148_v58  ;;  %v3422_v57 = vld [vmem:[%s7670_s6 + $0x40] sm:$0xff]  ;;  %v3415_v58 = vld [vmem:[%s7670_s6 + $0x8] sm:$0xff] }
0x153f   :  { %v3153_v60 = vmul.f32 1.442695, %v3150_v59 }
0x1541   :  { %6447 = vpow2.f32 %v3153_v60  ;;  %v3423_v60 = vld [vmem:[%s7670_s6 + $0x48] sm:$0xff] }
0x1547   :  { %v6446_v61 = vpop.eup %6445 }
0x1548   :  { %v3155_v0 = vsel %vm140_vm2, %v6446_v61, 0.0 }
0x1549   :  { %3156 = vadd.xlane.f32.xlu1 %v3155_v0  ;;  %v5570_v0 = vcombine.low %v3415_v58, %v3423_v60 }
0x154b   :  { %v6448_v3 = vpop.eup %6447 }
0x154c   :  { %v3158_v4 = vsel %vm140_vm2, %v6448_v3, 0.0 }
0x154d   :  { %3159 = vadd.xlane.f32.xlu1 %v3158_v4  ;;  %v3430_v4 = vld [vmem:[%s7670_s6 + $0x80] sm:$0xff] }
0x155e   :  { %3165 = vrot.lane.b32.xlu1 %v6903_v34, %s6499_s30 }
0x157c   :  { %v2857_v5 = vpop.f32.mrb[42].mxu0 }
0x157d   :  { %v2937_v62 = vpack.c.bf16 %v2933_v42, %v2857_v5  ;;  %v6195_v16 = vpop.f32.mrb[43].mxu0  ;;  %v3438_v5 = vld [vmem:[%s7670_s6 + $0xc0] sm:$0xff] }
0x157e   :  { %v5585_v16 = vcombine.high %v3430_v4, %v3438_v5 }
0x157f   :  { %6204 = vmatmul.mubr.msk.bf16.vlgmr.msra.gmra.mrb[44].mxu0 %vm140_vm2, %v2937_v62  ;;  %v3431_v62 = vld [vmem:[%s7670_s6 + $0x88] sm:$0xff] }
0x1580   :  { %6219 = vmatprep.mubr.msk.f32.mxu0 %vm6490_vm0, %v6489_v2 }
0x15d6   :  { %v3157_v6 = vpop.xlane.xlu1 %3156 }
0x15d7   :  { %6449 = vrcp.f32 %v3157_v6  ;;  %v3439_v6 = vld [vmem:[%s7670_s6 + $0xc8] sm:$0xff] }
0x15da   :  { %v3160_v23 = vpop.xlane.xlu1 %3159 }
0x15db   :  { %6451 = vrcp.f32 %v3160_v23  ;;  %v5584_v23 = vcombine.low %v3430_v4, %v3438_v5  ;;  %v3420_v4 = vld [vmem:[%s7670_s6 + $0x30] sm:$0xff] }
0x15dc   :  { %v3428_v5 = vld [vmem:[%s7670_s6 + $0x70] sm:$0xff] }
0x15de   :  { %v3166_v15 = vpop.permute.xlu1 %3165 }
0x15df   :  { %6218 = vmatpush3.msra.mxu0 %v3166_v15  ;;  %v5586_v15 = vcombine.low %v3431_v62, %v3439_v6 }
0x15e0   :  { %6227 = vmatprep.subr.bf16.mxu0 %v6489_v2 }
0x15e1   :  { %v6450_v17 = vpop.eup %6449 }
0x15e2   :  { %v3163_v19 = vmul.f32 %v6450_v17, %v6446_v61  ;;  %v5587_v17 = vcombine.high %v3431_v62, %v3439_v6  ;;  %v3421_v62 = vld [vmem:[%s7670_s6 + $0x38] sm:$0xff] }
0x15e4   :  { %6220 = vmatmul.mubr.msk.f32.vlgmr.msra.gmra.mrb[48].mxu0 %vm140_vm2, %v3163_v19  ;;  %v3416_v19 = vld [vmem:[%s7670_s6 + $0x10] sm:$0xff] }
0x15e5   :  { %v6452_v34 = vpop.eup %6451  ;;  %6229 = vmatprep.mubr.msk.bf16.mxu0 %vm6490_vm0, %v6489_v2  ;;  %6228 = vmatpush3.bf16.msra.mxu0 %v3322_v10 }
0x15e6   :  { %v3164_v20 = vmul.f32 %v6452_v34, %v6448_v3  ;;  %v5571_v3 = vcombine.high %v3415_v58, %v3423_v60  ;;  %v3424_v34 = vld [vmem:[%s7670_s6 + $0x50] sm:$0xff]  ;;  %v3435_v58 = vld [vmem:[%s7670_s6 + $0xa8] sm:$0xff] }
0x15e7   :  { %v5573_v10 = vcombine.high %v3416_v19, %v3424_v34 }
0x15e8   :  { %6225 = vmatmul.mubr.msk.f32.vlgmr.msra.gmra.mrb[52].mxu1 %vm140_vm2, %v3164_v20  ;;  %3736 = vmatprep.subr.bf16.mxu0 %v5571_v3  ;;  %v3417_v20 = vld [vmem:[%s7670_s6 + $0x18] sm:$0xff] }
0x15e9   :  { %3725 = vmatprep.mubr.bf16.mxu1 %v6503_v21 }
0x1652   :  { %v2978_v24 = vpop.f32.mrb[44].mxu0 }
0x1653   :  { %v2985_v26 = vadd.f32 %v2978_v24, %v6990_v12  ;;  %v6205_v28 = vpop.f32.mrb[45].mxu0  ;;  %v3425_v24 = vld [vmem:[%s7670_s6 + $0x58] sm:$0xff] }
0x1654   :  { %v2981_v37 = vpop.f32.mrb[46].mxu0  ;;  %v5574_v28 = vcombine.low %v3417_v20, %v3425_v24 }
0x1655   :  { %v2986_v29 = vadd.f32 %v2981_v37, %v6992_v27  ;;  %v6206_v11 = vpop.f32.mrb[47].mxu0  ;;  %v5575_v37 = vcombine.high %v3417_v20, %v3425_v24  ;;  %v3437_v20 = vld [vmem:[%s7670_s6 + $0xb8] sm:$0xff]  ;;  %v5580_v24 = vcombine.low %v3420_v4, %v3428_v5 }
0x16b7   :  { %v3237_v30 = vpop.f32.mrb[48].mxu0 }
0x16b8   :  { %v6221_v2 = vpop.f32.mrb[49].mxu0 }
0x16bb   :  { %v3313_v31 = vpop.f32.mrb[52].mxu1 }
0x16bc   :  { %v3317_v13 = vpack.c.bf16 %v3313_v31, %v3237_v30  ;;  %v6226_v33 = vpop.f32.mrb[53].mxu1 }
0x16be   :  { %6230 = vmatmul.mubr.msk.bf16.vlgmr.msra.gmra.mrb[52].mxu0 %vm140_vm2, %v3317_v13 }
0x16bf   :  { %3737 = vmatpush1.bf16.msra.mxu0 %v5570_v0  ;;  %3768 = vmatprep.mubr.bf16.mxu0 %v6503_v21 }
0x16c0   :  { %3738 = vmatprep.subr.bf16.mxu0 %v5587_v17 }
0x16c3   :  { %3739 = vmatpush1.bf16.msra.mxu0 %v5586_v15  ;;  %v5581_v15 = vcombine.high %v3420_v4, %v3428_v5 }
0x16c4   :  { %3822 = vmatprep.subr.bf16.mxu0 %v5575_v37 }
0x1791   :  { %v3358_v39 = vpop.f32.mrb[52].mxu0 }
0x1792   :  { %v3365_v12 = vadd.f32 %v3358_v39, %v2985_v26  ;;  %v6231_v40 = vpop.f32.mrb[53].mxu0  ;;  %v5572_v26 = vcombine.low %v3416_v19, %v3424_v34  ;;  %v3436_v19 = vld [vmem:[%s7670_s6 + $0xb0] sm:$0xff] }
0x1793   :  { %v3361_v41 = vpop.f32.mrb[54].mxu0  ;;  %v3410_v40 = vrot.slane %v6843_v54, %v6882_v14  ;;  %v3444_v34 = vld [vmem:[%s7670_s6 + $0xf0] sm:$0xff] }
0x1794   :  { %v3371_v42 = vadd.f32 %v3370_v38, %v3365_v12  ;;  %v3366_v27 = vadd.f32 %v3361_v41, %v2986_v29  ;;  %v6232_v43 = vpop.f32.mrb[55].mxu0 }
0x1795   :  { %v3432_v43 = vld [vmem:[%s7670_s6 + $0x90] sm:$0xff] }
0x1796   :  { %v3372_v44 = vadd.f32 %v3370_v38, %v3366_v27  ;;  %v3373_v45 = vadd.f32 %v3371_v42, %v6849_v25  ;;  %v3404_v38 = vrot.slane %v6843_v54, %v6790_v9 }
0x1798   :  { %v3375_v47 = vsel %vm60_vm1, %v3373_v45, 0.0  ;;  %v3374_v48 = vadd.f32 %v3372_v44, %v6851_v63  ;;  %v3414_v63 = vld [vmem:[%s7670_s6] sm:$0xff]  ;;  %v3440_v44 = vld [vmem:[%s7670_s6 + $0xd0] sm:$0xff] }
0x1799   :  { %3376 = vadd.xlane.f32.xlu0 %v3375_v47  ;;  %v5569_v59 = vcombine.high %v3414_v63, %v3422_v57  ;;  %v5568_v61 = vcombine.low %v3414_v63, %v3422_v57  ;;  %v3441_v47 = vld [vmem:[%s7670_s6 + $0xd8] sm:$0xff]  ;;  %v3434_v63 = vld [vmem:[%s7670_s6 + $0xa0] sm:$0xff] }
0x179a   :  { %v3378_v7 = vsel %vm60_vm1, %v3374_v48, 0.0  ;;  %v3442_v57 = vld [vmem:[%s7670_s6 + $0xe0] sm:$0xff] }
0x179b   :  { %3379 = vadd.xlane.f32.xlu1 %v3378_v7  ;;  %3693 = vmatprep.subr.bf16.mxu1 %v5569_v59  ;;  %v3443_v59 = vld [vmem:[%s7670_s6 + $0xe8] sm:$0xff]  ;;  %v5593_v0 = vcombine.high %v3434_v63, %v3442_v57  ;;  %v5592_v6 = vcombine.low %v3434_v63, %v3442_v57  ;;  %v6285_v63 = vld [vmem:[%s7671_s7 + $0x78] sm:$0xff]  }
0x179c   :  { %3694 = vmatpush1.bf16.msra.mxu1 %v5568_v61  ;;  %v5595_v3 = vcombine.high %v3435_v58, %v3443_v59  ;;  %v6286_v57 = vld [vmem:[%s7671_s7 + $0xf8] sm:$0xff]  }
0x179d   :  { %3695 = vmatprep.subr.bf16.mxu1 %v5585_v16  ;;  %v3429_v16 = vld [vmem:[%s7670_s6 + $0x78] sm:$0xff] }
0x179e   :  { %v5583_v17 = vcombine.high %v3421_v62, %v3429_v16 }
0x17a0   :  { %3696 = vmatpush1.bf16.msra.mxu1 %v5584_v23  ;;  %v5594_v23 = vcombine.low %v3435_v58, %v3443_v59  ;;  %v6287_v58 = vld [vmem:[%s7671_s7 + $0x38] sm:$0xff]  }
0x17a1   :  { %3779 = vmatprep.subr.bf16.mxu1 %v5573_v10  ;;  %v3445_v10 = vld [vmem:[%s7670_s6 + $0xf8] sm:$0xff] }
0x17a2   :  { %v5599_v37 = vcombine.high %v3437_v20, %v3445_v10  ;;  %v6288_v59 = vld [vmem:[%s7671_s7 + $0xb8] sm:$0xff]  }
0x1826   :  { %v3377_v49 = vpop.xlane.xlu0 %3376 }
0x1827   :  { %v3381_v22 = vmul.f32 0.03125, %v3377_v49  ;;  %v5589_v49 = vcombine.high %v3432_v43, %v3440_v44 }
0x1828   :  { %v3380_v50 = vpop.xlane.xlu1 %3379 }
0x1829   :  { %v3383_v51 = vsub.f32 %v3373_v45, %v3381_v22  ;;  %v3382_v52 = vmul.f32 0.03125, %v3380_v50  ;;  %v3433_v45 = vld [vmem:[%s7670_s6 + $0x98] sm:$0xff]  ;;  %v3418_v50 = vld [vmem:[%s7670_s6 + $0x20] sm:$0xff] }
0x182a   :  { %v5591_v22 = vcombine.high %v3433_v45, %v3441_v47 }
0x182b   :  { %v3384_v53 = vsub.f32 %v3374_v48, %v3382_v52  ;;  %v3385_v55 = vmul.f32 %v3383_v51, %v3383_v51  ;;  %v3419_v52 = vld [vmem:[%s7670_s6 + $0x28] sm:$0xff] }
0x182d   :  { %v3387_v36 = vsel %vm60_vm1, %v3385_v55, 0.0  ;;  %v3386_v56 = vmul.f32 %v3384_v53, %v3384_v53  ;;  %v5588_v55 = vcombine.low %v3432_v43, %v3440_v44  ;;  %v6270_v43 = vld [vmem:[%s7671_s7 + $0xd8] sm:$0xff]  }
0x182e   :  { %3388 = vadd.xlane.f32.xlu0 %v3387_v36  ;;  %v5590_v36 = vcombine.low %v3433_v45, %v3441_v47  ;;  %v6271_v44 = vld [vmem:[%s7671_s7 + $0x18] sm:$0xff]   ;;  %v6273_v47 = vld [vmem:[%s7671_s7 + $0x60] sm:$0xff]  }
0x182f   :  { %v3390_v25 = vsel %vm60_vm1, %v3386_v56, 0.0  ;;  %v6272_v45 = vld [vmem:[%s7671_s7 + $0x98] sm:$0xff]  }
0x1832   :  { %3391 = vadd.xlane.f32.xlu0 %v3390_v25 }
0x18bb   :  { %v3389_v29 = vpop.xlane.xlu0 %3388 }
0x18bc   :  { %v3393_v11 = vmul.f32 0.03125, %v3389_v29  ;;  %v5596_v29 = vcombine.low %v3436_v19, %v3444_v34 }
0x18be   :  { %v3395_v30 = vadd.f32 1e-05, %v3393_v11  ;;  %v5598_v11 = vcombine.low %v3437_v20, %v3445_v10 }
0x18bf   :  { %v3392_v2 = vpop.xlane.xlu0 %3391 }
0x18c0   :  { %6453 = vrsqrt.f32 %v3395_v30  ;;  %v3394_v31 = vmul.f32 0.03125, %v3392_v2  ;;  %v6257_v30 = vld [vmem:[%s7671_s7 + $0x40] sm:$0xff]  }
0x18c1   :  { %v6258_v2 = vld [vmem:[%s7671_s7 + $0xc0] sm:$0xff]  }
0x18c2   :  { %v3396_v13 = vadd.f32 1e-05, %v3394_v31  ;;  %v6259_v31 = vld [vmem:[%s7671_s7] sm:$0xff]  }
0x18c4   :  { %6455 = vrsqrt.f32 %v3396_v13  ;;  %v6260_v13 = vld [vmem:[%s7671_s7 + $0x80] sm:$0xff]  }
0x18ca   :  { %v6454_v33 = vpop.eup %6453 }
0x18cb   :  { %v3399_v39 = vmul.f32 %v6454_v33, %v3383_v51  ;;  %v3426_v51 = vld [vmem:[%s7670_s6 + $0x60] sm:$0xff]  ;;  %v6261_v33 = vld [vmem:[%s7671_s7 + $0x48] sm:$0xff]  }
0x18cc   :  { %v5577_v56 = vcombine.high %v3418_v50, %v3426_v51  ;;  %v5576_v60 = vcombine.low %v3418_v50, %v3426_v51  ;;  %v6277_v50 = vld [vmem:[%s7671_s7 + $0x68] sm:$0xff]  }
0x18cd   :  { %v3405_v41 = vmul.f32 %v3404_v38, %v3399_v39  ;;  %v6264_v39 = vld [vmem:[%s7671_s7 + $0x88] sm:$0xff]  }
0x18ce   :  { %v6456_v12 = vpop.eup %6455  ;;  %v6278_v51 = vld [vmem:[%s7671_s7 + $0xe8] sm:$0xff]  }
0x18cf   :  { %v3400_v42 = vmul.f32 %v6456_v12, %v3384_v53  ;;  %v7109_v54 = vadd.f32 %v3410_v40, %v3405_v41  ;;  %v3427_v53 = vld [vmem:[%s7670_s6 + $0x68] sm:$0xff]  ;;  %v6265_v12 = vld [vmem:[%s7671_s7 + $0x50] sm:$0xff]  }
0x18d0   :  { %v5579_v25 = vcombine.high %v3419_v52, %v3427_v53  ;;  %v5578_v61 = vcombine.low %v3419_v52, %v3427_v53  ;;  %v6267_v41 = vld [vmem:[%s7671_s7 + $0x10] sm:$0xff]   ;;  %v6279_v52 = vld [vmem:[%s7671_s7 + $0x28] sm:$0xff]  }
0x18d1   :  { %v3406_v27 = vmul.f32 %v3404_v38, %v3400_v42  ;;  %v6263_v38 = vld [vmem:[%s7671_s7 + $0x8] sm:$0xff]   ;;  %v6268_v42 = vld [vmem:[%s7671_s7 + $0x90] sm:$0xff]  }
0x18d2   :  { %v6280_v53 = vld [vmem:[%s7671_s7 + $0xa8] sm:$0xff]  }
0x18d3   :  { %v7111_v48 = vadd.f32 %v3410_v40, %v3406_v27  ;;  %v6266_v40 = vld [vmem:[%s7671_s7 + $0xd0] sm:$0xff]   ;;  %v6269_v27 = vld [vmem:[%s7671_s7 + $0x58] sm:$0xff]  }
0x18d5   :  { %v7115_v7 = vpack.c.bf16 %v7111_v48, %v7109_v54 }
0x18d7   :  { %5600 = vmatmul.mubr.msk.bf16.vlgmr.msra.gmra.mrb[56].mxu1 %vm60_vm1, %v7115_v7  ;;  %5601 = vmatmul.mubr.msk.bf16.vlgmr.msra.gmra.mrb[56].mxu0 %vm60_vm1, %v7115_v7 }
0x18d8   :  { %3780 = vmatpush1.bf16.msra.mxu1 %v5572_v26  ;;  %3823 = vmatpush1.bf16.msra.mxu0 %v5574_v28  ;;  %v5582_v26 = vcombine.low %v3421_v62, %v3429_v16  ;;  %v5597_v28 = vcombine.high %v3436_v19, %v3444_v34 }
0x18d9   :  { %3781 = vmatprep.subr.bf16.mxu1 %v5589_v49  ;;  %3824 = vmatprep.subr.bf16.mxu0 %v5591_v22  ;;  %v6275_v49 = vld [vmem:[%s7671_s7 + $0x20] sm:$0xff]  }
0x18da   :  { %3811 = vmatprep.mubr.bf16.mxu1 %v6503_v21  ;;  %3854 = vmatprep.mubr.bf16.mxu0 %v6503_v21  ;;  %v6276_v22 = vld [vmem:[%s7671_s7 + $0xa0] sm:$0xff]  }
0x18dc   :  { %3782 = vmatpush1.bf16.msra.mxu1 %v5588_v55  ;;  %3825 = vmatpush1.bf16.msra.mxu0 %v5590_v36  ;;  %v6281_v55 = vld [vmem:[%s7671_s7 + $0x70] sm:$0xff]  }
0x18dd   :  { %3865 = vmatprep.subr.bf16.mxu1 %v5577_v56  ;;  %3908 = vmatprep.subr.bf16.mxu0 %v5579_v25  ;;  %v6282_v36 = vld [vmem:[%s7671_s7 + $0xf0] sm:$0xff]  }
0x18de   :  { %v6283_v56 = vld [vmem:[%s7671_s7 + $0x30] sm:$0xff]  }
0x18df   :  { %5602 = vmatmul.mubr.msk.bf16.vlgmr.msra.gmra.mrb[60].mxu1 %vm60_vm1, %v7115_v7  ;;  %5603 = vmatmul.mubr.msk.bf16.vlgmr.msra.gmra.mrb[60].mxu0 %vm60_vm1, %v7115_v7  ;;  %v6284_v25 = vld [vmem:[%s7671_s7 + $0xb0] sm:$0xff]  }
0x18e0   :  { %3866 = vmatpush1.bf16.msra.mxu1 %v5576_v60  ;;  %3909 = vmatpush1.bf16.msra.mxu0 %v5578_v61  ;;  %v6289_v60 = vld [vmem:[%s7671_s7 + $0x140] sm:$0xff]  }
0x18e1   :  { %3867 = vmatprep.subr.bf16.mxu1 %v5593_v0  ;;  %3910 = vmatprep.subr.bf16.mxu0 %v5595_v3  ;;  %v6290_v61 = vld [vmem:[%s7671_s7 + $0x1c0] sm:$0xff]  }
0x18e2   :  { %3897 = vmatprep.mubr.bf16.mxu1 %v6503_v21  ;;  %3940 = vmatprep.mubr.bf16.mxu0 %v6503_v21  ;;  %v3446_v0 = vld [vmem:[%s7672_s8] sm:$0xff] }
0x18e3   :  { %v3453_v3 = vrot.slane %v3446_v0, %v6604_v18  ;;  %v3461_v4 = vrot.slane %v3446_v0, %v6626_v32  ;;  %v3457_v5 = vrot.slane %v3446_v0, %v6587_v8  ;;  %v3465_v62 = vrot.slane %v3446_v0, %v6790_v9 }
0x18e4   :  { %3868 = vmatpush1.bf16.msra.mxu1 %v5592_v6  ;;  %3911 = vmatpush1.bf16.msra.mxu0 %v5594_v23 }
0x18e5   :  { %3951 = vmatprep.subr.bf16.mxu1 %v5581_v15  ;;  %3994 = vmatprep.subr.bf16.mxu0 %v5583_v17 }
0x18e7   :  { %5604 = vmatmul.mubr.msk.bf16.vlgmr.msra.gmra.mrb[64].mxu1 %vm60_vm1, %v7115_v7  ;;  %5605 = vmatmul.mubr.msk.bf16.vlgmr.msra.gmra.mrb[64].mxu0 %vm60_vm1, %v7115_v7 }
0x18e8   :  { %3952 = vmatpush1.bf16.msra.mxu1 %v5580_v24  ;;  %3995 = vmatpush1.bf16.msra.mxu0 %v5582_v26 }
0x18e9   :  { %3953 = vmatprep.subr.bf16.mxu1 %v5597_v28  ;;  %3996 = vmatprep.subr.bf16.mxu0 %v5599_v37 }
0x18ea   :  { %3983 = vmatprep.mubr.bf16.mxu1 %v6503_v21  ;;  %4026 = vmatprep.mubr.bf16.mxu0 %v6503_v21  ;;  %v6262_v21 = vld [vmem:[%s7671_s7 + $0xc8] sm:$0xff]  }
0x18ec   :  { %3954 = vmatpush1.bf16.msra.mxu1 %v5596_v29  ;;  %3997 = vmatpush1.bf16.msra.mxu0 %v5598_v11  ;;  %v3469_v11 = vrot.slane %v3446_v0, %v6882_v14 }
0x18ed   :  { %5825 = vmatprep.subr.bf16.mxu1 %v6257_v30  ;;  %5847 = vmatprep.subr.bf16.mxu0 %v6258_v2  ;;  %v3477_v30 = vrot.slane %v3446_v0, %v6835_v46 }
0x18ef   :  { %5606 = vmatmul.mubr.msk.bf16.vlgmr.msra.gmra.mrb[68].mxu1 %vm60_vm1, %v7115_v7  ;;  %5607 = vmatmul.mubr.msk.bf16.vlgmr.msra.gmra.mrb[68].mxu0 %vm60_vm1, %v7115_v7  ;;  %v6274_v7 = vld [vmem:[%s7671_s7 + $0xe0] sm:$0xff]  }
0x18f0   :  { %5826 = vmatpush3.bf16.msra.mxu1 %v6259_v31  ;;  %5848 = vmatpush3.bf16.msra.mxu0 %v6260_v13  ;;  %v3473_v13 = vrot.slane %v3446_v0, %v6859_v1 }
0x18f1   :  { %5827 = vmatprep.subr.bf16.mxu1 %v6261_v33  ;;  %5849 = vmatprep.subr.bf16.mxu0 %v6262_v21  ;;  %v3481_v33 = vrot.slane %v3446_v0, %v7045_v35 }
0x18f4   :  { %5828 = vmatpush3.bf16.msra.mxu1 %v6263_v38  ;;  %5850 = vmatpush3.bf16.msra.mxu0 %v6264_v39 }
0x18f5   :  { %5829 = vmatprep.subr.bf16.mxu1 %v6265_v12  ;;  %5851 = vmatprep.subr.bf16.mxu0 %v6266_v40 }
0x18f8   :  { %5830 = vmatpush3.bf16.msra.mxu1 %v6267_v41  ;;  %5852 = vmatpush3.bf16.msra.mxu0 %v6268_v42 }
0x18f9   :  { %5831 = vmatprep.subr.bf16.mxu1 %v6269_v27  ;;  %5853 = vmatprep.subr.bf16.mxu0 %v6270_v43  ;;  %v7303_v43 = vld [vmem:[%s7672_s8 + $0x8] sm:$0xff] }
0x18fc   :  { %5832 = vmatpush3.bf16.msra.mxu1 %v6271_v44  ;;  %5854 = vmatpush3.bf16.msra.mxu0 %v6272_v45 }
0x18fd   :  { %5833 = vmatprep.subr.bf16.mxu1 %v6273_v47  ;;  %5855 = vmatprep.subr.bf16.mxu0 %v6274_v7 }
0x1900   :  { %5834 = vmatpush3.bf16.msra.mxu1 %v6275_v49  ;;  %5856 = vmatpush3.bf16.msra.mxu0 %v6276_v22 }
0x1901   :  { %5835 = vmatprep.subr.bf16.mxu1 %v6277_v50  ;;  %5857 = vmatprep.subr.bf16.mxu0 %v6278_v51  ;;  %v6291_v50 = vld [vmem:[%s7671_s7 + $0x100] sm:$0xff]  }
0x1902   :  { %v6292_v51 = vld [vmem:[%s7671_s7 + $0x180] sm:$0xff]  }
0x1904   :  { %5836 = vmatpush3.bf16.msra.mxu1 %v6279_v52  ;;  %5858 = vmatpush3.bf16.msra.mxu0 %v6280_v53 }
0x1905   :  { %5837 = vmatprep.subr.bf16.mxu1 %v6281_v55  ;;  %5859 = vmatprep.subr.bf16.mxu0 %v6282_v36 }
0x1908   :  { %5838 = vmatpush3.bf16.msra.mxu1 %v6283_v56  ;;  %5860 = vmatpush3.bf16.msra.mxu0 %v6284_v25  ;;  %v6293_v56 = vld [vmem:[%s7671_s7 + $0x148] sm:$0xff]  }
0x1909   :  { %5839 = vmatprep.subr.bf16.mxu1 %v6285_v63  ;;  %5861 = vmatprep.subr.bf16.mxu0 %v6286_v57  ;;  %v6294_v25 = vld [vmem:[%s7671_s7 + $0x1c8] sm:$0xff]   ;;  %v3485_v63 = vrot.slane %v7303_v43, %v6604_v18 }
0x190c   :  { %5840 = vmatpush3.bf16.msra.mxu1 %v6287_v58  ;;  %5862 = vmatpush3.bf16.msra.mxu0 %v6288_v59 }
0x190d   :  { %5869 = vmatprep.subr.bf16.mxu1 %v6289_v60  ;;  %5891 = vmatprep.subr.bf16.mxu0 %v6290_v61  ;;  %v3493_v61 = vrot.slane %v7303_v43, %v6626_v32  ;;  %v6296_v32 = vld [vmem:[%s7671_s7 + $0x188] sm:$0xff]  }
0x19aa   :  { %v3727_v16 = vpop.f32.mrb[56].mxu1  ;;  %v3770_v6 = vpop.f32.mrb[56].mxu0 }
0x19ab   :  { %v3728_v23 = vadd.f32 %v3727_v16, %v3453_v3  ;;  %v3771_v15 = vadd.f32 %v3770_v6, %v3461_v4  ;;  %v3729_v17 = vpop.f32.mrb[57].mxu1  ;;  %v3772_v19 = vpop.f32.mrb[57].mxu0 }
0x19ac   :  { %v3730_v34 = vadd.f32 %v3729_v17, %v3457_v5  ;;  %v3773_v20 = vadd.f32 %v3772_v19, %v3465_v62  ;;  %v3731_v10 = vpop.f32.mrb[58].mxu1  ;;  %v3774_v24 = vpop.f32.mrb[58].mxu0 }
0x19ad   :  { %v3732_v26 = vadd.f32 %v3731_v10, %v3453_v3  ;;  %v3775_v28 = vadd.f32 %v3774_v24, %v3461_v4  ;;  %v3733_v37 = vpop.f32.mrb[59].mxu1  ;;  %v3776_v29 = vpop.f32.mrb[59].mxu0  ;;  %v4037_v21 = vmax.f32 %v3728_v23, 0.0  ;;  %v4039_v38 = vmax.f32 %v3771_v15, 0.0  ;;  %v6295_v23 = vld [vmem:[%s7671_s7 + $0x108] sm:$0xff]   ;;  %v6298_v10 = vld [vmem:[%s7671_s7 + $0x1d0] sm:$0xff]  }
0x19ae   :  { %v3734_v2 = vadd.f32 %v3733_v37, %v3457_v5  ;;  %v3777_v31 = vadd.f32 %v3776_v29, %v3465_v62  ;;  %v4038_v40 = vmax.f32 %v3730_v34, 0.0  ;;  %v4040_v41 = vmax.f32 %v3773_v20, 0.0 }
0x19af   :  { %v4053_v39 = vmax.f32 %v3732_v26, 0.0  ;;  %v4055_v12 = vmax.f32 %v3775_v28, 0.0  ;;  %v3489_v62 = vrot.slane %v7303_v43, %v6587_v8  ;;  %v3497_v15 = vrot.slane %v7303_v43, %v6790_v9  ;;  %v6297_v8 = vld [vmem:[%s7671_s7 + $0x150] sm:$0xff]  }
0x19b0   :  { %v4054_v42 = vmax.f32 %v3734_v2, 0.0  ;;  %v4056_v27 = vmax.f32 %v3777_v31, 0.0 }
0x19b1   :  { %v4069_v44 = vpack.c.bf16 %v4053_v39, %v4037_v21  ;;  %v4071_v45 = vpack.c.bf16 %v4055_v12, %v4039_v38 }
0x19b2   :  { %v4070_v47 = vpack.c.bf16 %v4054_v42, %v4038_v40  ;;  %v4072_v7 = vpack.c.bf16 %v4056_v27, %v4040_v41  ;;  %v3813_v49 = vpop.f32.mrb[60].mxu1  ;;  %v3856_v22 = vpop.f32.mrb[60].mxu0  ;;  %v6301_v40 = vld [vmem:[%s7671_s7 + $0x158] sm:$0xff]  }
0x19b3   :  { %v3814_v52 = vadd.f32 %v3813_v49, %v3469_v11  ;;  %v3857_v53 = vadd.f32 %v3856_v22, %v3477_v30  ;;  %v3815_v55 = vpop.f32.mrb[61].mxu1  ;;  %v3858_v36 = vpop.f32.mrb[61].mxu0  ;;  %v6302_v41 = vld [vmem:[%s7671_s7 + $0x1d8] sm:$0xff]  }
0x19b4   :  { %v3816_v57 = vadd.f32 %v3815_v55, %v3473_v13  ;;  %v3859_v58 = vadd.f32 %v3858_v36, %v3481_v33  ;;  %v3817_v59 = vpop.f32.mrb[62].mxu1  ;;  %v3860_v60 = vpop.f32.mrb[62].mxu0  ;;  %5145 = vmatprep.mubr.bf16.mxu1 %v4070_v47  ;;  %5186 = vmatprep.mubr.bf16.mxu0 %v4072_v7  ;;  %v3501_v47 = vrot.slane %v7303_v43, %v6882_v14  ;;  %v6303_v36 = vld [vmem:[%s7671_s7 + $0x118] sm:$0xff]  }
0x19b5   :  { %v3818_v0 = vadd.f32 %v3817_v59, %v3469_v11  ;;  %v3861_v3 = vadd.f32 %v3860_v60, %v3477_v30  ;;  %v3819_v4 = vpop.f32.mrb[63].mxu1  ;;  %v3862_v5 = vpop.f32.mrb[63].mxu0  ;;  %5146 = vmatmul.mubr.bf16.vlgmr.msra.gmra.mrb[72].mxu1 %v4069_v44  ;;  %5187 = vmatmul.mubr.bf16.vlgmr.msra.gmra.mrb[72].mxu0 %v4071_v45  ;;  %v4041_v17 = vmax.f32 %v3814_v52, 0.0  ;;  %v4043_v19 = vmax.f32 %v3857_v53, 0.0  ;;  %v6304_v14 = vld [vmem:[%s7671_s7 + $0x198] sm:$0xff]   ;;  %v6305_v59 = vld [vmem:[%s7671_s7 + $0x160] sm:$0xff]  }
0x19b6   :  { %v3820_v16 = vadd.f32 %v3819_v4, %v3473_v13  ;;  %v3863_v6 = vadd.f32 %v3862_v5, %v3481_v33  ;;  %5870 = vmatpush3.bf16.msra.mxu1 %v6291_v50  ;;  %5892 = vmatpush3.bf16.msra.mxu0 %v6292_v51  ;;  %v4042_v24 = vmax.f32 %v3816_v57, 0.0  ;;  %v4044_v26 = vmax.f32 %v3859_v58, 0.0  ;;  %v6299_v13 = vld [vmem:[%s7671_s7 + $0x110] sm:$0xff]   ;;  %v6306_v60 = vld [vmem:[%s7671_s7 + $0x1e0] sm:$0xff]  }
0x19b7   :  { %v4057_v34 = vmax.f32 %v3818_v0, 0.0  ;;  %v4059_v20 = vmax.f32 %v3861_v3, 0.0  ;;  %5871 = vmatprep.subr.bf16.mxu1 %v6293_v56  ;;  %5893 = vmatprep.subr.bf16.mxu0 %v6294_v25  ;;  %v6300_v33 = vld [vmem:[%s7671_s7 + $0x190] sm:$0xff]   ;;  %v3509_v51 = vrot.slane %v7303_v43, %v6835_v46  ;;  %v3505_v52 = vrot.slane %v7303_v43, %v6859_v1 }
0x19b8   :  { %v4058_v28 = vmax.f32 %v3820_v16, 0.0  ;;  %v4060_v37 = vmax.f32 %v3863_v6, 0.0  ;;  %v3513_v56 = vrot.slane %v7303_v43, %v7045_v35 }
0x19b9   :  { %v7337_v29 = vpack.c.bf16 %v4057_v34, %v4041_v17  ;;  %v7339_v9 = vpack.c.bf16 %v4059_v20, %v4043_v19  ;;  %v6309_v20 = vld [vmem:[%s7671_s7 + $0x168] sm:$0xff]  }
0x19ba   :  { %v4074_v11 = vpack.c.bf16 %v4058_v28, %v4042_v24  ;;  %v4076_v30 = vpack.c.bf16 %v4060_v37, %v4044_v26  ;;  %5872 = vmatpush3.bf16.msra.mxu1 %v6295_v23  ;;  %5894 = vmatpush3.bf16.msra.mxu0 %v6296_v32  ;;  %v3899_v2 = vpop.f32.mrb[64].mxu1  ;;  %v3942_v31 = vpop.f32.mrb[64].mxu0  ;;  %v6307_v23 = vld [vmem:[%s7671_s7 + $0x120] sm:$0xff]  }
0x19bb   :  { %v3900_v21 = vadd.f32 %v3899_v2, %v3485_v63  ;;  %v3943_v38 = vadd.f32 %v3942_v31, %v3493_v61  ;;  %v3901_v39 = vpop.f32.mrb[65].mxu1  ;;  %v3944_v12 = vpop.f32.mrb[65].mxu0  ;;  %5873 = vmatprep.subr.bf16.mxu1 %v6297_v8  ;;  %5895 = vmatprep.subr.bf16.mxu0 %v6298_v10  ;;  %v6308_v32 = vld [vmem:[%s7671_s7 + $0x1a0] sm:$0xff]   ;;  %v6310_v8 = vld [vmem:[%s7671_s7 + $0x1e8] sm:$0xff]  }
0x19bc   :  { %v3902_v42 = vadd.f32 %v3901_v39, %v3489_v62  ;;  %v3945_v27 = vadd.f32 %v3944_v12, %v3497_v15  ;;  %v3903_v44 = vpop.f32.mrb[66].mxu1  ;;  %v3946_v45 = vpop.f32.mrb[66].mxu0  ;;  %5227 = vmatprep.mubr.bf16.mxu1 %v4074_v11  ;;  %5268 = vmatprep.mubr.bf16.mxu0 %v4076_v30 }
0x19bd   :  { %v3904_v7 = vadd.f32 %v3903_v44, %v3485_v63  ;;  %v3947_v49 = vadd.f32 %v3946_v45, %v3493_v61  ;;  %v3905_v22 = vpop.f32.mrb[67].mxu1  ;;  %v3948_v50 = vpop.f32.mrb[67].mxu0  ;;  %v4045_v25 = vmax.f32 %v3900_v21, 0.0  ;;  %v4047_v63 = vmax.f32 %v3943_v38, 0.0  ;;  %v6312_v21 = vld [vmem:[%s7671_s7 + $0x1a8] sm:$0xff]  }
0x19be   :  { %v3906_v53 = vadd.f32 %v3905_v22, %v3489_v62  ;;  %v3949_v55 = vadd.f32 %v3948_v50, %v3497_v15  ;;  %5874 = vmatpush3.bf16.msra.mxu1 %v6299_v13  ;;  %5896 = vmatpush3.bf16.msra.mxu0 %v6300_v33  ;;  %v4046_v61 = vmax.f32 %v3902_v42, 0.0  ;;  %v4048_v0 = vmax.f32 %v3945_v27, 0.0  ;;  %v6311_v33 = vld [vmem:[%s7671_s7 + $0x128] sm:$0xff]   ;;  %v6314_v42 = vld [vmem:[%s7671_s7 + $0x1f0] sm:$0xff]  }
0x19bf   :  { %v4061_v57 = vmax.f32 %v3904_v7, 0.0  ;;  %v4063_v58 = vmax.f32 %v3947_v49, 0.0  ;;  %5875 = vmatprep.subr.bf16.mxu1 %v6301_v40  ;;  %5897 = vmatprep.subr.bf16.mxu0 %v6302_v41  ;;  %v6313_v41 = vld [vmem:[%s7671_s7 + $0x170] sm:$0xff]  }
0x19c0   :  { %v4062_v3 = vmax.f32 %v3906_v53, 0.0  ;;  %v4064_v4 = vmax.f32 %v3949_v55, 0.0  ;;  %v6317_v53 = vld [vmem:[%s7671_s7 + $0x178] sm:$0xff]  }
0x19c1   :  { %v7373_v5 = vpack.c.bf16 %v4061_v57, %v4045_v25  ;;  %v7375_v35 = vpack.c.bf16 %v4063_v58, %v4047_v63  ;;  %v6318_v55 = vld [vmem:[%s7671_s7 + $0x1f8] sm:$0xff]   ;;  %v6322_v25 = vld [vmem:[%s7671_s7 + $0x2c0] sm:$0xff]   ;;  %v6325_v58 = vld [vmem:[%s7671_s7 + $0x248] sm:$0xff]  }
0x19c2   :  { %v7377_v43 = vpack.c.bf16 %v4062_v3, %v4046_v61  ;;  %v7379_v62 = vpack.c.bf16 %v4064_v4, %v4048_v0  ;;  %5876 = vmatpush3.bf16.msra.mxu1 %v6303_v36  ;;  %5898 = vmatpush3.bf16.msra.mxu0 %v6304_v14  ;;  %v3985_v16 = vpop.f32.mrb[68].mxu1  ;;  %v4028_v6 = vpop.f32.mrb[68].mxu0  ;;  %v6319_v36 = vld [vmem:[%s7671_s7 + $0x138] sm:$0xff]   ;;  %v6323_v63 = vld [vmem:[%s7671_s7 + $0x200] sm:$0xff]   ;;  %v6328_v61 = vld [vmem:[%s7671_s7 + $0x288] sm:$0xff]  }
0x19c3   :  { %v3986_v15 = vadd.f32 %v3985_v16, %v3501_v47  ;;  %v4029_v17 = vadd.f32 %v4028_v6, %v3509_v51  ;;  %v3987_v19 = vpop.f32.mrb[69].mxu1  ;;  %v4030_v34 = vpop.f32.mrb[69].mxu0  ;;  %5877 = vmatprep.subr.bf16.mxu1 %v6305_v59  ;;  %5899 = vmatprep.subr.bf16.mxu0 %v6306_v60  ;;  %v6320_v14 = vld [vmem:[%s7671_s7 + $0x1b8] sm:$0xff]   ;;  %v6324_v57 = vld [vmem:[%s7671_s7 + $0x280] sm:$0xff]   ;;  %v6326_v59 = vld [vmem:[%s7671_s7 + $0x2c8] sm:$0xff]  }
0x19c4   :  { %v3988_v10 = vadd.f32 %v3987_v19, %v3505_v52  ;;  %v4031_v24 = vadd.f32 %v4030_v34, %v3513_v56  ;;  %v3989_v26 = vpop.f32.mrb[70].mxu1  ;;  %v4032_v28 = vpop.f32.mrb[70].mxu0  ;;  %v6327_v60 = vld [vmem:[%s7671_s7 + $0x208] sm:$0xff]   ;;  %v6331_v0 = vld [vmem:[%s7671_s7 + $0x210] sm:$0xff]   ;;  %v6333_v4 = vld [vmem:[%s7671_s7 + $0x258] sm:$0xff]  }
0x19c5   :  { %v3990_v37 = vadd.f32 %v3989_v26, %v3501_v47  ;;  %v4033_v11 = vadd.f32 %v4032_v28, %v3509_v51  ;;  %v3991_v30 = vpop.f32.mrb[71].mxu1  ;;  %v4034_v2 = vpop.f32.mrb[71].mxu0  ;;  %v4049_v38 = vmax.f32 %v3986_v15, 0.0  ;;  %v4051_v39 = vmax.f32 %v4029_v17, 0.0  ;;  %v6315_v51 = vld [vmem:[%s7671_s7 + $0x130] sm:$0xff]   ;;  %v6336_v16 = vld [vmem:[%s7671_s7 + $0x298] sm:$0xff]  }
0x19c6   :  { %v3992_v31 = vadd.f32 %v3991_v30, %v3505_v52  ;;  %v4035_v13 = vadd.f32 %v4034_v2, %v3513_v56  ;;  %5878 = vmatpush3.bf16.msra.mxu1 %v6307_v23  ;;  %5900 = vmatpush3.bf16.msra.mxu0 %v6308_v32  ;;  %v4050_v27 = vmax.f32 %v3988_v10, 0.0  ;;  %v4052_v44 = vmax.f32 %v4031_v24, 0.0  ;;  %v6316_v52 = vld [vmem:[%s7671_s7 + $0x1b0] sm:$0xff]   ;;  %v6321_v56 = vld [vmem:[%s7671_s7 + $0x240] sm:$0xff]   ;;  %v6341_v17 = vld [vmem:[%s7671_s7 + $0x268] sm:$0xff]  }
0x19c7   :  { %v4065_v12 = vmax.f32 %v3990_v37, 0.0  ;;  %v4067_v40 = vmax.f32 %v4033_v11, 0.0  ;;  %5879 = vmatprep.subr.bf16.mxu1 %v6309_v20  ;;  %5901 = vmatprep.subr.bf16.mxu0 %v6310_v8  ;;  %v6332_v3 = vld [vmem:[%s7671_s7 + $0x290] sm:$0xff]   ;;  %v6337_v6 = vld [vmem:[%s7671_s7 + $0x260] sm:$0xff]   ;;  %v6342_v19 = vld [vmem:[%s7671_s7 + $0x2e8] sm:$0xff]  }
0x19c8   :  { %v4066_v45 = vmax.f32 %v3992_v31, 0.0  ;;  %v4068_v47 = vmax.f32 %v4035_v13, 0.0  ;;  %v6338_v23 = vld [vmem:[%s7671_s7 + $0x2e0] sm:$0xff]   ;;  %v6343_v34 = vld [vmem:[%s7671_s7 + $0x228] sm:$0xff]   ;;  %v6345_v8 = vld [vmem:[%s7671_s7 + $0x270] sm:$0xff]  }
0x19c9   :  { %v7405_v7 = vpack.c.bf16 %v4065_v12, %v4049_v38  ;;  %v7407_v49 = vpack.c.bf16 %v4067_v40, %v4051_v39  ;;  %v6339_v32 = vld [vmem:[%s7671_s7 + $0x220] sm:$0xff]   ;;  %v6344_v20 = vld [vmem:[%s7671_s7 + $0x2a8] sm:$0xff]   ;;  %v6346_v10 = vld [vmem:[%s7671_s7 + $0x2f0] sm:$0xff]  }
0x19ca   :  { %v7409_v22 = vpack.c.bf16 %v4066_v45, %v4050_v27  ;;  %v7411_v50 = vpack.c.bf16 %v4068_v47, %v4052_v44  ;;  %5880 = vmatpush3.bf16.msra.mxu1 %v6311_v33  ;;  %5902 = vmatpush3.bf16.msra.mxu0 %v6312_v21  ;;  %v6340_v15 = vld [vmem:[%s7671_s7 + $0x2a0] sm:$0xff]   ;;  %v6347_v24 = vld [vmem:[%s7671_s7 + $0x230] sm:$0xff]   ;;  %v6349_v28 = vld [vmem:[%s7671_s7 + $0x278] sm:$0xff]  }
0x19cb   :  { %5881 = vmatprep.subr.bf16.mxu1 %v6313_v41  ;;  %5903 = vmatprep.subr.bf16.mxu0 %v6314_v42  ;;  %v6348_v26 = vld [vmem:[%s7671_s7 + $0x2b0] sm:$0xff]   ;;  %v6350_v37 = vld [vmem:[%s7671_s7 + $0x2f8] sm:$0xff]   ;;  %v6353_v2 = vld [vmem:[%s7671_s7 + $0x340] sm:$0xff]  }
0x19cc   :  { %v6351_v11 = vld [vmem:[%s7671_s7 + $0x238] sm:$0xff]   ;;  %v6354_v31 = vld [vmem:[%s7671_s7 + $0x3c0] sm:$0xff]   ;;  %v6357_v21 = vld [vmem:[%s7671_s7 + $0x348] sm:$0xff]  }
0x19cd   :  { %v6352_v30 = vld [vmem:[%s7671_s7 + $0x2b8] sm:$0xff]   ;;  %v6355_v13 = vld [vmem:[%s7671_s7 + $0x300] sm:$0xff]   ;;  %v6358_v38 = vld [vmem:[%s7671_s7 + $0x3c8] sm:$0xff]  }
0x19ce   :  { %5882 = vmatpush3.bf16.msra.mxu1 %v6315_v51  ;;  %5904 = vmatpush3.bf16.msra.mxu0 %v6316_v52  ;;  %v6356_v33 = vld [vmem:[%s7671_s7 + $0x380] sm:$0xff]   ;;  %v6359_v39 = vld [vmem:[%s7671_s7 + $0x308] sm:$0xff]   ;;  %v6363_v40 = vld [vmem:[%s7671_s7 + $0x310] sm:$0xff]  }
0x19cf   :  { %5883 = vmatprep.subr.bf16.mxu1 %v6317_v53  ;;  %5905 = vmatprep.subr.bf16.mxu0 %v6318_v55  ;;  %v6360_v12 = vld [vmem:[%s7671_s7 + $0x388] sm:$0xff]   ;;  %v6364_v41 = vld [vmem:[%s7671_s7 + $0x390] sm:$0xff]   ;;  %v6365_v42 = vld [vmem:[%s7671_s7 + $0x358] sm:$0xff]  }
0x19d0   :  { %v6366_v27 = vld [vmem:[%s7671_s7 + $0x3d8] sm:$0xff]   ;;  %v6369_v47 = vld [vmem:[%s7671_s7 + $0x360] sm:$0xff]   ;;  %v6373_v52 = vld [vmem:[%s7671_s7 + $0x368] sm:$0xff]  }
0x19d1   :  { %v6367_v44 = vld [vmem:[%s7671_s7 + $0x318] sm:$0xff]   ;;  %v6372_v51 = vld [vmem:[%s7671_s7 + $0x3a0] sm:$0xff]   ;;  %v6374_v53 = vld [vmem:[%s7671_s7 + $0x3e8] sm:$0xff]  }
0x19d2   :  { %5884 = vmatpush3.bf16.msra.mxu1 %v6319_v36  ;;  %5906 = vmatpush3.bf16.msra.mxu0 %v6320_v14  ;;  %v6368_v45 = vld [vmem:[%s7671_s7 + $0x398] sm:$0xff]   ;;  %v6375_v55 = vld [vmem:[%s7671_s7 + $0x328] sm:$0xff]   ;;  %v6377_v14 = vld [vmem:[%s7671_s7 + $0x370] sm:$0xff]  }
0x19d3   :  { %5913 = vmatprep.subr.bf16.mxu1 %v6321_v56  ;;  %5935 = vmatprep.subr.bf16.mxu0 %v6322_v25  ;;  %v6376_v36 = vld [vmem:[%s7671_s7 + $0x3a8] sm:$0xff]   ;;  %v6378_v56 = vld [vmem:[%s7671_s7 + $0x3f0] sm:$0xff]  }
0x19d4   :  { %v6379_v25 = vld [vmem:[%s7671_s7 + $0x330] sm:$0xff]  }
0x19d5   :  { %5228 = vmatmul.mubr.bf16.vlgmr.msra.gmra.mrb[76].mxu1 %v7337_v29  ;;  %5269 = vmatmul.mubr.bf16.vlgmr.msra.gmra.mrb[76].mxu0 %v7339_v9  ;;  %v6329_v29 = vld [vmem:[%s7671_s7 + $0x250] sm:$0xff]  }
0x19d6   :  { %5914 = vmatpush3.bf16.msra.mxu1 %v6323_v63  ;;  %5309 = vmatprep.mubr.bf16.mxu1 %v7377_v43  ;;  %v6330_v9 = vld [vmem:[%s7671_s7 + $0x2d0] sm:$0xff]   ;;  %v6334_v43 = vld [vmem:[%s7671_s7 + $0x2d8] sm:$0xff]  }
0x19d7   :  { %5936 = vmatpush3.bf16.msra.mxu0 %v6324_v57  ;;  %5350 = vmatprep.mubr.bf16.mxu0 %v7379_v62  ;;  %v6335_v62 = vld [vmem:[%s7671_s7 + $0x218] sm:$0xff]   ;;  %v6380_v63 = vld [vmem:[%s7671_s7 + $0x3b0] sm:$0xff]  }
0x19d8   :  { %5915 = vmatprep.subr.bf16.mxu1 %v6325_v58  ;;  %5937 = vmatprep.subr.bf16.mxu0 %v6326_v59  ;;  %v6381_v57 = vld [vmem:[%s7671_s7 + $0x378] sm:$0xff]  }
0x19d9   :  { %v6382_v58 = vld [vmem:[%s7671_s7 + $0x3f8] sm:$0xff]  }
0x19da   :  { %5916 = vmatpush3.bf16.msra.mxu1 %v6327_v60  ;;  %v6383_v59 = vld [vmem:[%s7671_s7 + $0x338] sm:$0xff]  }
0x19db   :  { %5938 = vmatpush3.bf16.msra.mxu0 %v6328_v61  ;;  %5917 = vmatprep.subr.bf16.mxu1 %v6329_v29  ;;  %v6384_v60 = vld [vmem:[%s7671_s7 + $0x3b8] sm:$0xff]  }
0x19dc   :  { %5939 = vmatprep.subr.bf16.mxu0 %v6330_v9  ;;  %v7636_v9 = vld [vmem:[%s7673_s9 + $0x8] sm:$0x7f] }
0x19de   :  { %5918 = vmatpush3.bf16.msra.mxu1 %v6331_v0  ;;  %v4344_v0 = vrot.slane %v7636_v9, %v6604_v18 }
0x19df   :  { %5940 = vmatpush3.bf16.msra.mxu0 %v6332_v3  ;;  %5919 = vmatprep.subr.bf16.mxu1 %v6333_v4 }
0x19e0   :  { %5941 = vmatprep.subr.bf16.mxu0 %v6334_v43 }
0x19e2   :  { %5920 = vmatpush3.bf16.msra.mxu1 %v6335_v62 }
0x19e3   :  { %5942 = vmatpush3.bf16.msra.mxu0 %v6336_v16  ;;  %5921 = vmatprep.subr.bf16.mxu1 %v6337_v6 }
0x19e4   :  { %5943 = vmatprep.subr.bf16.mxu0 %v6338_v23 }
0x19e6   :  { %5922 = vmatpush3.bf16.msra.mxu1 %v6339_v32 }
0x19e7   :  { %5944 = vmatpush3.bf16.msra.mxu0 %v6340_v15  ;;  %5923 = vmatprep.subr.bf16.mxu1 %v6341_v17 }
0x19e8   :  { %5945 = vmatprep.subr.bf16.mxu0 %v6342_v19 }
0x19ea   :  { %5924 = vmatpush3.bf16.msra.mxu1 %v6343_v34 }
0x19eb   :  { %5946 = vmatpush3.bf16.msra.mxu0 %v6344_v20  ;;  %5925 = vmatprep.subr.bf16.mxu1 %v6345_v8 }
0x19ec   :  { %5947 = vmatprep.subr.bf16.mxu0 %v6346_v10 }
0x19ee   :  { %5926 = vmatpush3.bf16.msra.mxu1 %v6347_v24 }
0x19ef   :  { %5948 = vmatpush3.bf16.msra.mxu0 %v6348_v26  ;;  %5927 = vmatprep.subr.bf16.mxu1 %v6349_v28 }
0x19f0   :  { %5949 = vmatprep.subr.bf16.mxu0 %v6350_v37 }
0x19f2   :  { %5928 = vmatpush3.bf16.msra.mxu1 %v6351_v11 }
0x19f3   :  { %5950 = vmatpush3.bf16.msra.mxu0 %v6352_v30  ;;  %5957 = vmatprep.subr.bf16.mxu1 %v6353_v2 }
0x19f4   :  { %5979 = vmatprep.subr.bf16.mxu0 %v6354_v31 }
0x19f5   :  { %5310 = vmatmul.mubr.bf16.vlgmr.msra.gmra.mrb[80].mxu1 %v7373_v5  ;;  %v6361_v5 = vld [vmem:[%s7671_s7 + $0x350] sm:$0xff]  }
0x19f6   :  { %5351 = vmatmul.mubr.bf16.vlgmr.msra.gmra.mrb[80].mxu0 %v7375_v35  ;;  %5958 = vmatpush3.bf16.msra.mxu1 %v6355_v13  ;;  %v6362_v35 = vld [vmem:[%s7671_s7 + $0x3d0] sm:$0xff]  }
0x19f7   :  { %5391 = vmatprep.mubr.bf16.mxu1 %v7409_v22  ;;  %5980 = vmatpush3.bf16.msra.mxu0 %v6356_v33  ;;  %v6370_v22 = vld [vmem:[%s7671_s7 + $0x3e0] sm:$0xff]  }
0x19f8   :  { %5432 = vmatprep.mubr.bf16.mxu0 %v7411_v50  ;;  %5959 = vmatprep.subr.bf16.mxu1 %v6357_v21  ;;  %v6371_v50 = vld [vmem:[%s7671_s7 + $0x320] sm:$0xff]   ;;  %s6504_s7 = smov [#allocation2]  }
0x19f9   :  { %5981 = vmatprep.subr.bf16.mxu0 %v6358_v38  ;;  %s5488_s9 = sshll.u32 %s6504_s7, 4  ;;  %s5489_s9 = int_to_ptr.vmem [resolvable:$true] %s5488_s9 }
0x19fa   :  { %5960 = vmatpush3.bf16.msra.mxu1 %v6359_v39  ;;  %s6465_s29 = scalar_lea.vmem %s5489_s9, 256  ;;  %p6470_p1 = scmp.lt.s32.totalorder %s5489_s9, %s5489_s9 }
0x19fb   :  { %5982 = vmatpush3.bf16.msra.mxu0 %v6360_v12  ;;  %5961 = vmatprep.subr.bf16.mxu1 %v6361_v5  ;;  %p6466_p0 = scmp.ne.s32.totalorder %s5489_s9, %s6465_s29  ;;  %p6471_p2 = scmp.lt.s32.totalorder %s6465_s29, %s6465_s29 }
0x19fc   :  { %5983 = vmatprep.subr.bf16.mxu0 %v6362_v35 }
0x19fd   :  { %p6472_p3 = por %p6471_p2, %p6470_p1 }
0x19fe   :  { %5962 = vmatpush3.bf16.msra.mxu1 %v6363_v40 }
0x19ff   :  { %5984 = vmatpush3.bf16.msra.mxu0 %v6364_v41  ;;  %5963 = vmatprep.subr.bf16.mxu1 %v6365_v42  ;;  %p6473_p4 = pnand %p6472_p3, %p6466_p0 }
0x1a00   :  { %5985 = vmatprep.subr.bf16.mxu0 %v6366_v27 }
0x1a02   :  { %5964 = vmatpush3.bf16.msra.mxu1 %v6367_v44 }
0x1a03   :  { %5986 = vmatpush3.bf16.msra.mxu0 %v6368_v45  ;;  %5965 = vmatprep.subr.bf16.mxu1 %v6369_v47 }
0x1a04   :  { %5987 = vmatprep.subr.bf16.mxu0 %v6370_v22 }
0x1a06   :  { %5966 = vmatpush3.bf16.msra.mxu1 %v6371_v50 }
0x1a07   :  { %5988 = vmatpush3.bf16.msra.mxu0 %v6372_v51  ;;  %5967 = vmatprep.subr.bf16.mxu1 %v6373_v52 }
0x1a08   :  { %5989 = vmatprep.subr.bf16.mxu0 %v6374_v53 }
0x1a0a   :  { %5968 = vmatpush3.bf16.msra.mxu1 %v6375_v55 }
0x1a0b   :  { %5990 = vmatpush3.bf16.msra.mxu0 %v6376_v36  ;;  %5969 = vmatprep.subr.bf16.mxu1 %v6377_v14 }
0x1a0c   :  { %5991 = vmatprep.subr.bf16.mxu0 %v6378_v56 }
0x1a0e   :  { %5970 = vmatpush3.bf16.msra.mxu1 %v6379_v25 }
0x1a0f   :  { %5992 = vmatpush3.bf16.msra.mxu0 %v6380_v63  ;;  %5971 = vmatprep.subr.bf16.mxu1 %v6381_v57 }
0x1a10   :  { %5993 = vmatprep.subr.bf16.mxu0 %v6382_v58 }
0x1a12   :  { %5972 = vmatpush3.bf16.msra.mxu1 %v6383_v59 }
0x1a13   :  { %5994 = vmatpush3.bf16.msra.mxu0 %v6384_v60 }
0x1a15   :  { %5392 = vmatmul.mubr.bf16.vlgmr.msra.gmra.mrb[84].mxu1 %v7405_v7 }
0x1a16   :  { %5433 = vmatmul.mubr.bf16.vlgmr.msra.gmra.mrb[84].mxu0 %v7407_v49 }
0x1a88   :  { %v5841_v61 = vpop.f32.mrb[72].mxu1  ;;  %v5863_v29 = vpop.f32.mrb[72].mxu0 }
0x1a89   :  { %v5842_v3 = vpop.f32.mrb[73].mxu1  ;;  %v5864_v4 = vpop.f32.mrb[73].mxu0 }
0x1a8a   :  { %v5843_v43 = vadd.f32 %v5842_v3, %v5841_v61  ;;  %v5865_v62 = vadd.f32 %v5864_v4, %v5863_v29  ;;  %v5844_v16 = vpop.f32.mrb[74].mxu1  ;;  %v5866_v6 = vpop.f32.mrb[74].mxu0 }
0x1a8b   :  { %v5845_v23 = vpop.f32.mrb[75].mxu1  ;;  %v5867_v7 = vpop.f32.mrb[75].mxu0 }
0x1a8c   :  { %v5148_v32 = vadd.f32 %v5843_v43, %v4344_v0  ;;  %v5846_v49 = vadd.f32 %v5845_v23, %v5844_v16  ;;  %v5868_v15 = vadd.f32 %v5867_v7, %v5866_v6 }
0x1a8e   :  { %v5189_v17 = vadd.f32 %v5865_v62, %v5148_v32  ;;  %v5151_v19 = vadd.f32 %v5846_v49, %v4344_v0 }
0x1a90   :  { %v5192_v34 = vadd.f32 %v5868_v15, %v5151_v19 }
0x1aa8   :  { %v5885_v20 = vpop.f32.mrb[76].mxu1  ;;  %v5907_v8 = vpop.f32.mrb[76].mxu0 }
0x1aa9   :  { %v5886_v10 = vpop.f32.mrb[77].mxu1  ;;  %v5908_v24 = vpop.f32.mrb[77].mxu0 }
0x1aaa   :  { %v5887_v26 = vadd.f32 %v5886_v10, %v5885_v20  ;;  %v5909_v18 = vadd.f32 %v5908_v24, %v5907_v8  ;;  %v5888_v28 = vpop.f32.mrb[78].mxu1  ;;  %v5910_v37 = vpop.f32.mrb[78].mxu0 }
0x1aab   :  { %v5889_v11 = vpop.f32.mrb[79].mxu1  ;;  %v5911_v30 = vpop.f32.mrb[79].mxu0 }
0x1aac   :  { %v5230_v2 = vadd.f32 %v5887_v26, %v5189_v17  ;;  %v5890_v31 = vadd.f32 %v5889_v11, %v5888_v28  ;;  %v5912_v13 = vadd.f32 %v5911_v30, %v5910_v37  ;;  %v5472_v37 = vrot.slane %v7636_v9, %v6859_v1 }
0x1aae   :  { %v5271_v33 = vadd.f32 %v5909_v18, %v5230_v2  ;;  %v5233_v21 = vadd.f32 %v5890_v31, %v5192_v34  ;;  %v5478_v2 = vrot.slane %v7636_v9, %v6835_v46 }
0x1ab0   :  { %v5274_v38 = vadd.f32 %v5912_v13, %v5233_v21 }
0x1ac8   :  { %v5929_v39 = vpop.f32.mrb[80].mxu1 }
0x1ac9   :  { %v5951_v12 = vpop.f32.mrb[80].mxu0  ;;  %v5930_v5 = vpop.f32.mrb[81].mxu1 }
0x1aca   :  { %v5931_v35 = vadd.f32 %v5930_v5, %v5929_v39  ;;  %v5952_v40 = vpop.f32.mrb[81].mxu0  ;;  %v5932_v41 = vpop.f32.mrb[82].mxu1 }
0x1acb   :  { %v5953_v42 = vadd.f32 %v5952_v40, %v5951_v12  ;;  %v5954_v27 = vpop.f32.mrb[82].mxu0  ;;  %v5933_v44 = vpop.f32.mrb[83].mxu1 }
0x1acc   :  { %v5312_v45 = vadd.f32 %v5931_v35, %v5271_v33  ;;  %v5934_v47 = vadd.f32 %v5933_v44, %v5932_v41  ;;  %v5955_v22 = vpop.f32.mrb[83].mxu0 }
0x1acd   :  { %v5956_v50 = vadd.f32 %v5955_v22, %v5954_v27 }
0x1ace   :  { %v5353_v51 = vadd.f32 %v5953_v42, %v5312_v45  ;;  %v5315_v52 = vadd.f32 %v5934_v47, %v5274_v38 }
0x1ad0   :  { %v5356_v53 = vadd.f32 %v5956_v50, %v5315_v52 }
0x1ae8   :  { %v5973_v55 = vpop.f32.mrb[84].mxu1 }
0x1ae9   :  { %v5995_v36 = vpop.f32.mrb[84].mxu0  ;;  %v5974_v14 = vpop.f32.mrb[85].mxu1 }
0x1aea   :  { %v5975_v56 = vadd.f32 %v5974_v14, %v5973_v55  ;;  %v5996_v25 = vpop.f32.mrb[85].mxu0  ;;  %v5976_v63 = vpop.f32.mrb[86].mxu1 }
0x1aeb   :  { %v5997_v57 = vadd.f32 %v5996_v25, %v5995_v36  ;;  %v5998_v58 = vpop.f32.mrb[86].mxu0  ;;  %v5977_v59 = vpop.f32.mrb[87].mxu1 }
0x1aec   :  { %v5394_v60 = vadd.f32 %v5975_v56, %v5353_v51  ;;  %v5978_v61 = vadd.f32 %v5977_v59, %v5976_v63  ;;  %v5999_v29 = vpop.f32.mrb[87].mxu0 }
0x1aed   :  { %v6000_v0 = vadd.f32 %v5999_v29, %v5998_v58 }
0x1aee   :  { %v5435_v3 = vadd.f32 %v5997_v57, %v5394_v60  ;;  %v5397_v4 = vadd.f32 %v5978_v61, %v5356_v53 }
0x1af0   :  { %v5438_v43 = vadd.f32 %v6000_v0, %v5397_v4  ;;  %v5441_v62 = vadd.f32 %v5435_v3, %v7109_v54 }
0x1af2   :  { %v5443_v16 = vsel %vm60_vm1, %v5441_v62, 0.0  ;;  %v5442_v6 = vadd.f32 %v5438_v43, %v7111_v48 }
0x1af3   :  { %5444 = vadd.xlane.f32.xlu0 %v5443_v16 }
0x1af4   :  { %v5446_v23 = vsel %vm60_vm1, %v5442_v6, 0.0 }
0x1af7   :  { %5447 = vadd.xlane.f32.xlu0 %v5446_v23 }
0x1b80   :  { %v5445_v7 = vpop.xlane.xlu0 %5444 }
0x1b81   :  { %v5449_v32 = vmul.f32 0.03125, %v5445_v7 }
0x1b83   :  { %v5451_v49 = vsub.f32 %v5441_v62, %v5449_v32 }
0x1b84   :  { %v5448_v15 = vpop.xlane.xlu0 %5447 }
0x1b85   :  { %v5450_v17 = vmul.f32 0.03125, %v5448_v15  ;;  %v5453_v19 = vmul.f32 %v5451_v49, %v5451_v49 }
0x1b87   :  { %v5452_v34 = vsub.f32 %v5442_v6, %v5450_v17  ;;  %v5455_v20 = vsel %vm60_vm1, %v5453_v19, 0.0 }
0x1b88   :  { %5456 = vadd.xlane.f32.xlu0 %v5455_v20 }
0x1b89   :  { %v5454_v8 = vmul.f32 %v5452_v34, %v5452_v34 }
0x1b8b   :  { %v5458_v54 = vsel %vm60_vm1, %v5454_v8, 0.0 }
0x1b8c   :  { %5459 = vadd.xlane.f32.xlu1 %v5458_v54 }
0x1c15   :  { %v5457_v10 = vpop.xlane.xlu0 %5456 }
0x1c16   :  { %v5461_v48 = vmul.f32 0.03125, %v5457_v10 }
0x1c18   :  { %v5463_v24 = vadd.f32 1e-05, %v5461_v48 }
0x1c19   :  { %v5460_v26 = vpop.xlane.xlu1 %5459 }
0x1c1a   :  { %6457 = vrsqrt.f32 %v5463_v24  ;;  %v5462_v18 = vmul.f32 0.03125, %v5460_v26 }
0x1c1c   :  { %v5464_v28 = vadd.f32 1e-05, %v5462_v18 }
0x1c1e   :  { %6459 = vrsqrt.f32 %v5464_v28 }
0x1c24   :  { %v6458_v11 = vpop.eup %6457 }
0x1c25   :  { %v5467_v30 = vmul.f32 %v6458_v11, %v5451_v49 }
0x1c27   :  { %v5473_v31 = vmul.f32 %v5472_v37, %v5467_v30 }
0x1c28   :  { %v6460_v13 = vpop.eup %6459 }
0x1c29   :  { %v5468_v33 = vmul.f32 %v6460_v13, %v5452_v34  ;;  %v5479_v21 = vadd.f32 %v5478_v2, %v5473_v31 }
0x1c2b   :  { %v5474_v38 = vmul.f32 %v5472_v37, %v5468_v33  ;;  %5481 = vst.msk [vmem:[#allocation2] sm:$0xff] %vm60_vm1, %v5479_v21 }
0x1c2d   :  { %v5480_v39 = vadd.f32 %v5478_v2, %v5474_v38 }
0x1c2f   :  { %5482 = vst.msk [vmem:[#allocation2 + $0x8] sm:$0xff] %vm60_vm1, %v5480_v39 }
0x1c30   :  { %6476 = shalt.err (!%p6473_p4)
}
0x1c31   :  { %s6477_s5 = scalar_lea.hbm %s7674_s10, 256 }
0x1c32   :  { %p6478_p5 = scmp.ne.s32.totalorder %s7674_s10, %s6477_s5  ;;  %p6481_p6 = scmp.lt.u32.totalorder %s6477_s5, %s7674_s10 }
0x1c34   :  { %p6483_p7 = pnand %p6481_p6, %p6478_p5 }
0x1c36   :  { %6486 = shalt.err (!%p6483_p7)
}
0x1c37   :  { %s6505_s14 = smov 128   ;;  %s6506_s15 = smov 8  }
0x1c38   :  { %5494 = dma.vmem_to_hbm [thread:$0]  %s5489_s9, 256, %s7674_s10, [#allocation3], %s6505_s14, %s6505_s14, %s6506_s15  }
0x1c39   :  { %6487 = dma.done.wait [#allocation3], 256  }
0x1c3a   :  { %6488 = vsyncadd [#allocation3], 4294967040 }
0x1c3b   :  { %5498 = vsyncpa [#allocation3], 1 }

</bundles_post_ra>
